<compile_context>
chip_gen: v7x
topology: tpu7x:2x2x1
jax: 0.10.0
libtpu: 0.0.40
codegen_flags: <defaults>
</compile_context>

<pallas_src>
from functools import partial

import numpy as np
import jax
import jax.numpy as jnp
from jax.experimental import pallas as pl
from jax.experimental.pallas import tpu as pltpu


# ---------------------------------------------------------------------------
# Deterministic parameter construction (mirrors OnnxSTFT.__init__)
# ---------------------------------------------------------------------------
def make_stft_basis(filter_length, hop_length, win_length):
    scale = filter_length / hop_length
    fourier_basis = np.fft.fft(np.eye(filter_length))
    cutoff = filter_length // 2 + 1
    fourier_basis = np.vstack(
        [np.real(fourier_basis[:cutoff, :]), np.imag(fourier_basis[:cutoff, :])]
    )
    forward_basis = fourier_basis.astype(np.float32)                            # (2C, L)
    inverse_basis = np.linalg.pinv(scale * fourier_basis).T.astype(np.float32)  # (2C, L)

    # hann window, periodic (fftbins=True), pad_center to filter_length
    n = np.arange(win_length)
    fft_window = (0.5 - 0.5 * np.cos(2.0 * np.pi * n / win_length)).astype(np.float32)
    lpad = (filter_length - win_length) // 2
    fft_window = np.pad(fft_window, (lpad, filter_length - win_length - lpad))

    forward_basis = forward_basis * fft_window[None, :].astype(np.float32)
    inverse_basis = inverse_basis * fft_window[None, :].astype(np.float32)
    return forward_basis, inverse_basis


# ---------------------------------------------------------------------------
# Arithmetic-only atan2 (VPU/EUP-safe: abs/min/max/div/sqrt/where only)
# ---------------------------------------------------------------------------
def _atan2(y, x):
    """Elementwise atan2 without relying on a math.atan2 lowering.

    Two half-angle reductions + a 5-term odd polynomial: |error| < ~1e-6 rad.
    """
    pi = 3.141592653589793
    ax = jnp.abs(x)
    ay = jnp.abs(y)
    num = jnp.minimum(ax, ay)
    den = jnp.maximum(ax, ay)
    den = jnp.where(den > 0.0, den, 1.0)
    a = num / den                                           # in [0, 1]
    # atan(a) = 2 * atan(a / (1 + sqrt(1 + a^2)))  (applied twice -> a <= tan(pi/16))
    a = a / (1.0 + jnp.sqrt(1.0 + a * a))
    a = a / (1.0 + jnp.sqrt(1.0 + a * a))
    s = a * a
    r = 4.0 * a * (1.0 + s * (-1.0 / 3.0 + s * (0.2 + s * (-1.0 / 7.0 + s * (1.0 / 9.0)))))
    r = jnp.where(ay > ax, 0.5 * pi - r, r)
    r = jnp.where(x < 0.0, pi - r, r)
    return jnp.where(y < 0.0, -r, r)


# ---------------------------------------------------------------------------
# Fused Pallas kernel: in-kernel framing + forward transform + mag/phase +
# inverse transform + lane-oriented overlap-add, per (batch, time-tile) cell.
# ---------------------------------------------------------------------------
def fused_stft_kernel(xt_ref, halo_ref, wspec_ref, winv_ref,
                      mag_ref, phase_ref, rint_ref, rhalo_ref, *, n_frames):
    # xt_ref    : (1, hop, tt)        hop-major signal tile (frame index on lanes)
    # halo_ref  : (1, 1, hop, 128)    next 128 hop-columns (right halo; only K-1 used)
    # wspec_ref : (K, 2, C_pad, hop)  forward basis split per hop-chunk / real-imag
    # winv_ref  : (K, L, hop)         M = inverse_basis.T @ forward_basis, per hop-chunk
    # mag_ref   : (1, C_pad, tt)
    # phase_ref : (1, C_pad, tt)
    # rint_ref  : (1, hop, tt)        overlap-add interior rows (final coordinates)
    # rhalo_ref : (1, 1, hop, 128)    overlap-add halo spilling into the next tile
    hop = xt_ref.shape[1]
    tt = xt_ref.shape[2]
    K = wspec_ref.shape[0]
    L = winv_ref.shape[1]
    f32 = jnp.float32

    xt = xt_ref[0]                                  # (hop, tt)
    halo = halo_ref[0, 0]                           # (hop, 128)
    if tt > 128:
        halo_buf = jnp.concatenate(
            [halo, jnp.zeros((hop, tt - 128), halo.dtype)], axis=1)
    else:
        halo_buf = halo

    lane = jax.lax.broadcasted_iota(jnp.int32, (hop, tt), 1)
    # Mask out the frames that only exist because of the time-tile padding: they would
    # otherwise be built from *real* tail hop-columns and corrupt the overlap-add.
    frame_ok = (lane + pl.program_id(1) * tt) < n_frames

    z_re = jnp.zeros((wspec_ref.shape[2], tt), f32)
    z_im = jnp.zeros((wspec_ref.shape[2], tt), f32)
    z_inv = jnp.zeros((L, tt), f32)
    for j in range(K):                              # static unroll, K = L // hop (small)
        if j == 0:
            rhs = xt
        else:
            # rhs[:, t] = hop-column (tile_start + t + j): splice the halo into the
            # lanes that will wrap (selected *before* the roll), then roll left by j.
            rhs = pltpu.roll(jnp.where(lane < j, halo_buf, xt), shift=tt - j, axis=1)
        rhs = jnp.where(frame_ok, rhs, jnp.zeros_like(rhs))
        z_re = z_re + jnp.dot(wspec_ref[j, 0], rhs, preferred_element_type=f32)
        z_im = z_im + jnp.dot(wspec_ref[j, 1], rhs, preferred_element_type=f32)
        z_inv = z_inv + jnp.dot(winv_ref[j], rhs, preferred_element_type=f32)

    # magnitude / phase fused in-kernel (no spectrum HBM round trip)
    mag_ref[0] = jnp.sqrt(z_re * z_re + z_im * z_im).astype(mag_ref.dtype)
    phase_ref[0] = _atan2(z_im, z_re).astype(phase_ref.dtype)

    # lane-oriented overlap-add: acc[:, t + jo] += z_inv[jo*hop:(jo+1)*hop, t]
    acc = jnp.concatenate([z_inv[0:hop], jnp.zeros((hop, 128), f32)], axis=1)
    for jo in range(1, K):
        chunk = jnp.concatenate(
            [z_inv[jo * hop:(jo + 1) * hop], jnp.zeros((hop, 128), f32)], axis=1)
        acc = acc + pltpu.roll(chunk, shift=jo, axis=1)
    rint_ref[0] = acc[:, :tt].astype(rint_ref.dtype)
    rhalo_ref[0, 0] = acc[:, tt:].astype(rhalo_ref.dtype)


# ---------------------------------------------------------------------------
# Wrapper (tiny XLA glue: reflect pad, hop-major relayout, halo combine, crop)
# ---------------------------------------------------------------------------
def onnx_stft_forward(x, forward_basis, inverse_basis, filter_length, hop_length,
                      *, time_tile=256, use_bf16=False):
    """Forward pass of OnnxSTFT: returns (reconstruction, magnitude, phase)."""
    B, S = x.shape
    L = int(filter_length)
    hop = int(hop_length)
    C = L // 2 + 1
    assert L % hop == 0, "overlap-add path assumes hop_length divides filter_length"
    K = L // hop
    assert K <= 128, "halo buffer holds at most 128 extra hop-columns"
    assert hop % 8 == 0, "hop-major layout needs hop to be a sublane multiple"
    tt = int(time_tile)
    # NOTE: on v5e/v6e (128 MiB VMEM) time_tile=512 amortises per-step overhead better;
    # 256 is a safe default for v7x's 64 MiB.  Demo uses 128 to exercise multi-tile halos.
    assert tt % 128 == 0 and tt >= 128, "time tile must be a positive multiple of 128"

    # --- XLA glue: reflect pad + hop-major relayout (no K x im2col duplication) ---------
    x_pad = jnp.pad(x.astype(jnp.float32), ((0, 0), (L // 2, L // 2)), mode="reflect")
    T = S // hop + 1                         # number of STFT frames (== conv1d output len)
    n_rows = T + K - 1                       # hop-columns consumed by those frames
    n_t = -(-T // tt)                        # time tiles (cdiv)
    T_pad = n_t * tt

    xt = x_pad[:, :n_rows * hop].reshape(B, n_rows, hop).transpose(0, 2, 1)  # (B, hop, n_rows)
    xt = jnp.pad(xt, ((0, 0), (0, 0), (0, T_pad + tt - n_rows)))             # zero tail
    xt_main = xt[:, :, :T_pad]                                               # (B, hop, T_pad)
    halo = xt[:, :, tt:].reshape(B, hop, n_t, tt)[:, :, :, :128]             # cols (i+1)*tt ...
    halo = halo.transpose(0, 2, 1, 3)                                        # (B, n_t, hop, 128)

    # --- host-side basis preparation -----------------------------------------------------
    C_pad = ((C + 7) // 8) * 8
    fwd = np.asarray(forward_basis, np.float64)        # (2C, L)
    inv = np.asarray(inverse_basis, np.float64)        # (2C, L)
    # mag*cos(phase) == real and mag*sin(phase) == imag exactly (also at mag == 0), so the
    # mag/phase -> inverse path collapses to M = inverse_basis.T @ forward_basis.
    M = inv.T @ fwd                                    # (L, L)
    wspec = np.zeros((K, 2, C_pad, hop), np.float64)
    winv = np.zeros((K, L, hop), np.float64)
    for j in range(K):
        wspec[j, 0, :C] = fwd[:C, j * hop:(j + 1) * hop]
        wspec[j, 1, :C] = fwd[C:, j * hop:(j + 1) * hop]
        winv[j] = M[:, j * hop:(j + 1) * hop]

    # bf16 halves weight/signal VMEM and runs the v6e/v7x MXU at full rate (f32 accum).
    # TODO(synk): at production L=1024 consider keeping winv (the L x L operator) in f32.
    compute_dtype = jnp.bfloat16 if use_bf16 else jnp.float32
    wspec = jnp.asarray(wspec, compute_dtype)
    winv = jnp.asarray(winv, compute_dtype)
    xt_main = xt_main.astype(compute_dtype)
    halo = halo.astype(compute_dtype)

    out_shape = (
        jax.ShapeDtypeStruct((B, C_pad, T_pad), jnp.float32),      # magnitude
        jax.ShapeDtypeStruct((B, C_pad, T_pad), jnp.float32),      # phase
        jax.ShapeDtypeStruct((B, hop, T_pad), jnp.float32),        # OLA interior rows
        jax.ShapeDtypeStruct((B, n_t, hop, 128), jnp.float32),     # OLA per-tile halos
    )
    out_specs = (
        pl.BlockSpec((1, C_pad, tt), lambda b, i: (b, 0, i)),
        pl.BlockSpec((1, C_pad, tt), lambda b, i: (b, 0, i)),
        pl.BlockSpec((1, hop, tt), lambda b, i: (b, 0, i)),
        pl.BlockSpec((1, 1, hop, 128), lambda b, i: (b, i, 0, 0)),
    )
    itemsize = 2 if use_bf16 else 4
    cost = pl.CostEstimate(
        flops=2 * B * T_pad * L * (2 * C_pad + L),
        transcendentals=3 * B * T_pad * C_pad,
        bytes_accessed=(itemsize * (B * hop * (T_pad + n_t * 128)
                                    + K * hop * (2 * C_pad + L))
                        + 4 * B * (2 * C_pad + hop) * T_pad
                        + 4 * B * n_t * hop * 128),
    )

    def run(single_buffer_weights):
        wmode = {"pipeline_mode": pl.Buffered(1)} if single_buffer_weights else {}
        in_specs = [
            pl.BlockSpec((1, hop, tt), lambda b, i: (b, 0, i)),
            pl.BlockSpec((1, 1, hop, 128), lambda b, i: (b, i, 0, 0)),
            pl.BlockSpec((K, 2, C_pad, hop), lambda b, i: (0, 0, 0, 0), **wmode),
            pl.BlockSpec((K, L, hop), lambda b, i: (0, 0, 0), **wmode),
        ]
        return pl.pallas_call(
            partial(fused_stft_kernel, n_frames=T),
            out_shape=out_shape,
            grid_spec=pltpu.PrefetchScalarGridSpec(
                num_scalar_prefetch=0,
                grid=(B, n_t),
                in_specs=in_specs,
                out_specs=out_specs,
            ),
            compiler_params=pltpu.CompilerParams(
                dimension_semantics=("parallel", "parallel"),   # megacore / v7x dual-TC
                vmem_limit_bytes=48 * 1024 * 1024,
            ),
            cost_estimate=cost,
        )(xt_main, halo, wspec, winv)

    try:
        # constant bases single-buffered: saves ~8 MiB VMEM at production sizes (v7x)
        mag_p, phase_p, rint, rhalo = run(True)
    except Exception:
        # fallback for jax builds where single-buffered pipeline_mode is unavailable
        mag_p, phase_p, rint, rhalo = run(False)

    magnitude = mag_p[:, :C, :T]
    phase = phase_p[:, :C, :T]

    # --- combine the tiny OLA halos (only K-1 nonzero columns each) with interior rows ---
    f32 = jnp.float32
    full = jnp.concatenate([rint, jnp.zeros((B, hop, 128), f32)], axis=2)     # (B,hop,T_pad+128)
    halo_p = jnp.pad(rhalo, ((0, 0), (0, 0), (0, 0), (0, tt - 128)))          # (B,n_t,hop,tt)
    halo_p = halo_p.transpose(0, 2, 1, 3).reshape(B, hop, T_pad)
    halo_p = jnp.concatenate([jnp.zeros((B, hop, tt), f32), halo_p],
                             axis=2)[:, :, :T_pad + 128]
    full = full + halo_p

    # hop-major -> sample order, then centre crop (== conv_transpose1d + slicing)
    sig = full.transpose(0, 2, 1).reshape(B, (T_pad + 128) * hop)
    out_len = (T - 1) * hop + L - 2 * (L // 2)
    recon = sig[:, L // 2: L // 2 + out_len]
    return recon.reshape(B, 1, out_len), magnitude, phase


# ---------------------------------------------------------------------------
# Pure numpy reference (explicit conv / atan2 / cos / sin / conv_transpose path)
# ---------------------------------------------------------------------------
def reference_forward(x, forward_basis, inverse_basis, filter_length, hop_length):
    B, S = x.shape
    L = filter_length
    hop = hop_length
    C = L // 2 + 1
    x_pad = np.pad(np.asarray(x, np.float32), ((0, 0), (L // 2, L // 2)), mode="reflect")
    T = (x_pad.shape[1] - L) // hop + 1
    frames = np.stack([x_pad[:, t * hop: t * hop + L] for t in range(T)], axis=2)  # (B, L, T)
    s = np.einsum("cl,blt->bct", forward_basis, frames)
    real, imag = s[:, :C], s[:, C:]
    mag = np.sqrt(real * real + imag * imag)
    ph = np.arctan2(imag, real)
    coeffs = np.concatenate([mag * np.cos(ph), mag * np.sin(ph)], axis=1)           # (B, 2C, T)
    contrib = np.einsum("bct,cl->btl", coeffs, inverse_basis)                       # (B, T, L)
    out = np.zeros((B, (T - 1) * hop + L), np.float32)
    for t in range(T):
        out[:, t * hop: t * hop + L] += contrib[:, t]
    out = out[:, L // 2: out.shape[1] - L // 2]
    return out.reshape(B, 1, -1), mag, ph


if __name__ == "__main__":
    # small but consistent with the module: filter_length=64, hop=16, win=64, hann
    FILTER_LENGTH, HOP_LENGTH, WIN_LENGTH = 64, 16, 64
    B, S = 2, 2560                      # -> T = 161 frames -> two 128-frame time tiles

    fwd_basis, inv_basis = make_stft_basis(FILTER_LENGTH, HOP_LENGTH, WIN_LENGTH)

    key = jax.random.PRNGKey(0)
    x = jax.random.normal(key, (B, S), dtype=jnp.float32)

    recon, mag, phase = onnx_stft_forward(
        x, fwd_basis, inv_basis, FILTER_LENGTH, HOP_LENGTH,
        time_tile=128,     # small tile so the demo exercises the in-kernel halo + OLA halos
        use_bf16=False,    # keep f32 so the strict reference tolerances below hold
    )
    recon = jax.block_until_ready(recon)

    ref_recon, ref_mag, ref_phase = reference_forward(
        np.asarray(x), fwd_basis, inv_basis, FILTER_LENGTH, HOP_LENGTH)

    assert recon.shape == (B, 1, S), recon.shape
    err_r = float(np.max(np.abs(np.asarray(recon) - ref_recon)))
    err_m = float(np.max(np.abs(np.asarray(mag) - ref_mag)))
    dphi = np.abs(np.asarray(phase) - ref_phase)
    dphi = np.minimum(dphi, 2.0 * np.pi - dphi)              # wrap-aware phase difference
    err_p = float(np.max(dphi * (ref_mag > 0.1)))            # only where phase is well-conditioned
    assert err_r < 1e-2, f"recon max abs error too large: {err_r}"
    assert err_m < 1e-2, f"magnitude max abs error too large: {err_m}"
    assert err_p < 1e-2, f"phase max abs error too large: {err_p}"

    print("KERNEL_OK")
</pallas_src>

<mosaic_0001>
module attributes {stable_mosaic.version = 11 : i64} {
  func.func @fused_stft_kernel(%arg0: i32, %arg1: i32, %arg2: memref<1x16x128xf32, #tpu.memory_space<vmem>>, %arg3: memref<1x1x16x128xf32, #tpu.memory_space<vmem>>, %arg4: memref<4x2x40x16xf32, #tpu.memory_space<vmem>>, %arg5: memref<4x64x16xf32, #tpu.memory_space<vmem>>, %arg6: memref<1x40x128xf32, #tpu.memory_space<vmem>>, %arg7: memref<1x40x128xf32, #tpu.memory_space<vmem>>, %arg8: memref<1x16x128xf32, #tpu.memory_space<vmem>>, %arg9: memref<1x1x16x128xf32, #tpu.memory_space<vmem>>) attributes {dimension_semantics = [#tpu.dimension_semantics<parallel>, #tpu.dimension_semantics<parallel>], iteration_bounds = array<i64: 2, 2>, scalar_prefetch = 0 : i64, scratch_operands = 0 : i64, tpu.core_type = #tpu.core_type<tc>, window_params = [{transform_indices = @transform_0, window_bounds = array<i64: 1, 16, 128>}, {transform_indices = @transform_1, window_bounds = array<i64: 1, 1, 16, 128>}, {pipeline_mode = #tpu.pipeline_mode<synchronous>, transform_indices = @transform_2, window_bounds = array<i64: 4, 2, 40, 16>}, {pipeline_mode = #tpu.pipeline_mode<synchronous>, transform_indices = @transform_3, window_bounds = array<i64: 4, 64, 16>}, {transform_indices = @transform_4, window_bounds = array<i64: 1, 40, 128>}, {transform_indices = @transform_5, window_bounds = array<i64: 1, 40, 128>}, {transform_indices = @transform_6, window_bounds = array<i64: 1, 16, 128>}, {transform_indices = @transform_7, window_bounds = array<i64: 1, 1, 16, 128>}]} {
    %c0 = arith.constant 0 : index
    %c0_0 = arith.constant 0 : index
    %c0_1 = arith.constant 0 : index
    %0 = vector.load %arg2[%c0, %c0_0, %c0_1] : memref<1x16x128xf32, #tpu.memory_space<vmem>>, vector<1x16x128xf32>
    %1 = vector.shape_cast %0 : vector<1x16x128xf32> to vector<16x128xf32>
    %c0_2 = arith.constant 0 : index
    %c0_3 = arith.constant 0 : index
    %c0_4 = arith.constant 0 : index
    %c0_5 = arith.constant 0 : index
    %2 = vector.load %arg3[%c0_2, %c0_3, %c0_4, %c0_5] : memref<1x1x16x128xf32, #tpu.memory_space<vmem>>, vector<1x1x16x128xf32>
    %3 = vector.shape_cast %2 : vector<1x1x16x128xf32> to vector<16x128xf32>
    %4 = tpu.iota {dimensions = array<i32: 1>} : vector<16x128xi32>
    %c128_i32 = arith.constant 128 : i32
    %5 = arith.muli %arg1, %c128_i32 : i32
    %6 = vector.broadcast %5 : i32 to vector<16x128xi32>
    %7 = arith.addi %4, %6 : vector<16x128xi32>
    %c161_i32 = arith.constant 161 : i32
    %8 = vector.broadcast %c161_i32 : i32 to vector<16x128xi32>
    %9 = arith.cmpi slt, %7, %8 : vector<16x128xi32>
    %cst = arith.constant 0.000000e+00 : f32
    %10 = vector.broadcast %cst : f32 to vector<40x128xf32>
    %cst_6 = arith.constant 0.000000e+00 : f32
    %11 = vector.broadcast %cst_6 : f32 to vector<40x128xf32>
    %cst_7 = arith.constant 0.000000e+00 : f32
    %12 = vector.broadcast %cst_7 : f32 to vector<64x128xf32>
    %cst_8 = arith.constant 0.000000e+00 : f32
    %13 = vector.broadcast %cst_8 : f32 to vector<16x128xf32>
    %14 = arith.select %9, %1, %13 : vector<16x128xi1>, vector<16x128xf32>
    %c0_9 = arith.constant 0 : index
    %c0_10 = arith.constant 0 : index
    %c0_11 = arith.constant 0 : index
    %c0_12 = arith.constant 0 : index
    %15 = vector.load %arg4[%c0_9, %c0_10, %c0_11, %c0_12] : memref<4x2x40x16xf32, #tpu.memory_space<vmem>>, vector<1x1x40x16xf32>
    %16 = vector.shape_cast %15 : vector<1x1x40x16xf32> to vector<40x16xf32>
    %cst_13 = arith.constant dense<0.000000e+00> : vector<40x128xf32>
    %17 = tpu.matmul %16, %14, %cst_13 {dimension_numbers = #tpu.dot_dimension_numbers<[1], [0], [0], [1], [0, 0, 1, 1], [], []>} : vector<40x16xf32>, vector<16x128xf32>, vector<40x128xf32> -> vector<40x128xf32>
    %18 = arith.addf %10, %17 : vector<40x128xf32>
    %c0_14 = arith.constant 0 : index
    %c1 = arith.constant 1 : index
    %c0_15 = arith.constant 0 : index
    %c0_16 = arith.constant 0 : index
    %19 = vector.load %arg4[%c0_14, %c1, %c0_15, %c0_16] : memref<4x2x40x16xf32, #tpu.memory_space<vmem>>, vector<1x1x40x16xf32>
    %20 = vector.shape_cast %19 : vector<1x1x40x16xf32> to vector<40x16xf32>
    %cst_17 = arith.constant dense<0.000000e+00> : vector<40x128xf32>
    %21 = tpu.matmul %20, %14, %cst_17 {dimension_numbers = #tpu.dot_dimension_numbers<[1], [0], [0], [1], [0, 0, 1, 1], [], []>} : vector<40x16xf32>, vector<16x128xf32>, vector<40x128xf32> -> vector<40x128xf32>
    %22 = arith.addf %11, %21 : vector<40x128xf32>
    %c0_18 = arith.constant 0 : index
    %c0_19 = arith.constant 0 : index
    %c0_20 = arith.constant 0 : index
    %23 = vector.load %arg5[%c0_18, %c0_19, %c0_20] : memref<4x64x16xf32, #tpu.memory_space<vmem>>, vector<1x64x16xf32>
    %24 = vector.shape_cast %23 : vector<1x64x16xf32> to vector<64x16xf32>
    %cst_21 = arith.constant dense<0.000000e+00> : vector<64x128xf32>
    %25 = tpu.matmul %24, %14, %cst_21 {dimension_numbers = #tpu.dot_dimension_numbers<[1], [0], [0], [1], [0, 0, 1, 1], [], []>} : vector<64x16xf32>, vector<16x128xf32>, vector<64x128xf32> -> vector<64x128xf32>
    %26 = arith.addf %12, %25 : vector<64x128xf32>
    %c1_i32 = arith.constant 1 : i32
    %27 = vector.broadcast %c1_i32 : i32 to vector<16x128xi32>
    %28 = arith.cmpi slt, %4, %27 : vector<16x128xi32>
    %29 = arith.select %28, %3, %1 : vector<16x128xi1>, vector<16x128xf32>
    %c127_i32 = arith.constant 127 : i32
    %30 = tpu.dynamic_rotate %29 by %c127_i32 dim 1 : vector<16x128xf32>, i32 -> vector<16x128xf32>
    %cst_22 = arith.constant 0.000000e+00 : f32
    %31 = vector.broadcast %cst_22 : f32 to vector<16x128xf32>
    %32 = arith.select %9, %30, %31 : vector<16x128xi1>, vector<16x128xf32>
    %c1_23 = arith.constant 1 : index
    %c0_24 = arith.constant 0 : index
    %c0_25 = arith.constant 0 : index
    %c0_26 = arith.constant 0 : index
    %33 = vector.load %arg4[%c1_23, %c0_24, %c0_25, %c0_26] : memref<4x2x40x16xf32, #tpu.memory_space<vmem>>, vector<1x1x40x16xf32>
    %34 = vector.shape_cast %33 : vector<1x1x40x16xf32> to vector<40x16xf32>
    %cst_27 = arith.constant dense<0.000000e+00> : vector<40x128xf32>
    %35 = tpu.matmul %34, %32, %cst_27 {dimension_numbers = #tpu.dot_dimension_numbers<[1], [0], [0], [1], [0, 0, 1, 1], [], []>} : vector<40x16xf32>, vector<16x128xf32>, vector<40x128xf32> -> vector<40x128xf32>
    %36 = arith.addf %18, %35 : vector<40x128xf32>
    %c1_28 = arith.constant 1 : index
    %c1_29 = arith.constant 1 : index
    %c0_30 = arith.constant 0 : index
    %c0_31 = arith.constant 0 : index
    %37 = vector.load %arg4[%c1_28, %c1_29, %c0_30, %c0_31] : memref<4x2x40x16xf32, #tpu.memory_space<vmem>>, vector<1x1x40x16xf32>
    %38 = vector.shape_cast %37 : vector<1x1x40x16xf32> to vector<40x16xf32>
    %cst_32 = arith.constant dense<0.000000e+00> : vector<40x128xf32>
    %39 = tpu.matmul %38, %32, %cst_32 {dimension_numbers = #tpu.dot_dimension_numbers<[1], [0], [0], [1], [0, 0, 1, 1], [], []>} : vector<40x16xf32>, vector<16x128xf32>, vector<40x128xf32> -> vector<40x128xf32>
    %40 = arith.addf %22, %39 : vector<40x128xf32>
    %c1_33 = arith.constant 1 : index
    %c0_34 = arith.constant 0 : index
    %c0_35 = arith.constant 0 : index
    %41 = vector.load %arg5[%c1_33, %c0_34, %c0_35] : memref<4x64x16xf32, #tpu.memory_space<vmem>>, vector<1x64x16xf32>
    %42 = vector.shape_cast %41 : vector<1x64x16xf32> to vector<64x16xf32>
    %cst_36 = arith.constant dense<0.000000e+00> : vector<64x128xf32>
    %43 = tpu.matmul %42, %32, %cst_36 {dimension_numbers = #tpu.dot_dimension_numbers<[1], [0], [0], [1], [0, 0, 1, 1], [], []>} : vector<64x16xf32>, vector<16x128xf32>, vector<64x128xf32> -> vector<64x128xf32>
    %44 = arith.addf %26, %43 : vector<64x128xf32>
    %c2_i32 = arith.constant 2 : i32
    %45 = vector.broadcast %c2_i32 : i32 to vector<16x128xi32>
    %46 = arith.cmpi slt, %4, %45 : vector<16x128xi32>
    %47 = arith.select %46, %3, %1 : vector<16x128xi1>, vector<16x128xf32>
    %c126_i32 = arith.constant 126 : i32
    %48 = tpu.dynamic_rotate %47 by %c126_i32 dim 1 : vector<16x128xf32>, i32 -> vector<16x128xf32>
    %cst_37 = arith.constant 0.000000e+00 : f32
    %49 = vector.broadcast %cst_37 : f32 to vector<16x128xf32>
    %50 = arith.select %9, %48, %49 : vector<16x128xi1>, vector<16x128xf32>
    %c2 = arith.constant 2 : index
    %c0_38 = arith.constant 0 : index
    %c0_39 = arith.constant 0 : index
    %c0_40 = arith.constant 0 : index
    %51 = vector.load %arg4[%c2, %c0_38, %c0_39, %c0_40] : memref<4x2x40x16xf32, #tpu.memory_space<vmem>>, vector<1x1x40x16xf32>
    %52 = vector.shape_cast %51 : vector<1x1x40x16xf32> to vector<40x16xf32>
    %cst_41 = arith.constant dense<0.000000e+00> : vector<40x128xf32>
    %53 = tpu.matmul %52, %50, %cst_41 {dimension_numbers = #tpu.dot_dimension_numbers<[1], [0], [0], [1], [0, 0, 1, 1], [], []>} : vector<40x16xf32>, vector<16x128xf32>, vector<40x128xf32> -> vector<40x128xf32>
    %54 = arith.addf %36, %53 : vector<40x128xf32>
    %c2_42 = arith.constant 2 : index
    %c1_43 = arith.constant 1 : index
    %c0_44 = arith.constant 0 : index
    %c0_45 = arith.constant 0 : index
    %55 = vector.load %arg4[%c2_42, %c1_43, %c0_44, %c0_45] : memref<4x2x40x16xf32, #tpu.memory_space<vmem>>, vector<1x1x40x16xf32>
    %56 = vector.shape_cast %55 : vector<1x1x40x16xf32> to vector<40x16xf32>
    %cst_46 = arith.constant dense<0.000000e+00> : vector<40x128xf32>
    %57 = tpu.matmul %56, %50, %cst_46 {dimension_numbers = #tpu.dot_dimension_numbers<[1], [0], [0], [1], [0, 0, 1, 1], [], []>} : vector<40x16xf32>, vector<16x128xf32>, vector<40x128xf32> -> vector<40x128xf32>
    %58 = arith.addf %40, %57 : vector<40x128xf32>
    %c2_47 = arith.constant 2 : index
    %c0_48 = arith.constant 0 : index
    %c0_49 = arith.constant 0 : index
    %59 = vector.load %arg5[%c2_47, %c0_48, %c0_49] : memref<4x64x16xf32, #tpu.memory_space<vmem>>, vector<1x64x16xf32>
    %60 = vector.shape_cast %59 : vector<1x64x16xf32> to vector<64x16xf32>
    %cst_50 = arith.constant dense<0.000000e+00> : vector<64x128xf32>
    %61 = tpu.matmul %60, %50, %cst_50 {dimension_numbers = #tpu.dot_dimension_numbers<[1], [0], [0], [1], [0, 0, 1, 1], [], []>} : vector<64x16xf32>, vector<16x128xf32>, vector<64x128xf32> -> vector<64x128xf32>
    %62 = arith.addf %44, %61 : vector<64x128xf32>
    %c3_i32 = arith.constant 3 : i32
    %63 = vector.broadcast %c3_i32 : i32 to vector<16x128xi32>
    %64 = arith.cmpi slt, %4, %63 : vector<16x128xi32>
    %65 = arith.select %64, %3, %1 : vector<16x128xi1>, vector<16x128xf32>
    %c125_i32 = arith.constant 125 : i32
    %66 = tpu.dynamic_rotate %65 by %c125_i32 dim 1 : vector<16x128xf32>, i32 -> vector<16x128xf32>
    %cst_51 = arith.constant 0.000000e+00 : f32
    %67 = vector.broadcast %cst_51 : f32 to vector<16x128xf32>
    %68 = arith.select %9, %66, %67 : vector<16x128xi1>, vector<16x128xf32>
    %c3 = arith.constant 3 : index
    %c0_52 = arith.constant 0 : index
    %c0_53 = arith.constant 0 : index
    %c0_54 = arith.constant 0 : index
    %69 = vector.load %arg4[%c3, %c0_52, %c0_53, %c0_54] : memref<4x2x40x16xf32, #tpu.memory_space<vmem>>, vector<1x1x40x16xf32>
    %70 = vector.shape_cast %69 : vector<1x1x40x16xf32> to vector<40x16xf32>
    %cst_55 = arith.constant dense<0.000000e+00> : vector<40x128xf32>
    %71 = tpu.matmul %70, %68, %cst_55 {dimension_numbers = #tpu.dot_dimension_numbers<[1], [0], [0], [1], [0, 0, 1, 1], [], []>} : vector<40x16xf32>, vector<16x128xf32>, vector<40x128xf32> -> vector<40x128xf32>
    %72 = arith.addf %54, %71 : vector<40x128xf32>
    %c3_56 = arith.constant 3 : index
    %c1_57 = arith.constant 1 : index
    %c0_58 = arith.constant 0 : index
    %c0_59 = arith.constant 0 : index
    %73 = vector.load %arg4[%c3_56, %c1_57, %c0_58, %c0_59] : memref<4x2x40x16xf32, #tpu.memory_space<vmem>>, vector<1x1x40x16xf32>
    %74 = vector.shape_cast %73 : vector<1x1x40x16xf32> to vector<40x16xf32>
    %cst_60 = arith.constant dense<0.000000e+00> : vector<40x128xf32>
    %75 = tpu.matmul %74, %68, %cst_60 {dimension_numbers = #tpu.dot_dimension_numbers<[1], [0], [0], [1], [0, 0, 1, 1], [], []>} : vector<40x16xf32>, vector<16x128xf32>, vector<40x128xf32> -> vector<40x128xf32>
    %76 = arith.addf %58, %75 : vector<40x128xf32>
    %c3_61 = arith.constant 3 : index
    %c0_62 = arith.constant 0 : index
    %c0_63 = arith.constant 0 : index
    %77 = vector.load %arg5[%c3_61, %c0_62, %c0_63] : memref<4x64x16xf32, #tpu.memory_space<vmem>>, vector<1x64x16xf32>
    %78 = vector.shape_cast %77 : vector<1x64x16xf32> to vector<64x16xf32>
    %cst_64 = arith.constant dense<0.000000e+00> : vector<64x128xf32>
    %79 = tpu.matmul %78, %68, %cst_64 {dimension_numbers = #tpu.dot_dimension_numbers<[1], [0], [0], [1], [0, 0, 1, 1], [], []>} : vector<64x16xf32>, vector<16x128xf32>, vector<64x128xf32> -> vector<64x128xf32>
    %80 = arith.addf %62, %79 : vector<64x128xf32>
    %81 = arith.mulf %72, %72 : vector<40x128xf32>
    %82 = arith.mulf %76, %76 : vector<40x128xf32>
    %83 = arith.addf %81, %82 : vector<40x128xf32>
    %84 = math.sqrt %83 : vector<40x128xf32>
    %c0_65 = arith.constant 0 : index
    %c0_66 = arith.constant 0 : index
    %c0_67 = arith.constant 0 : index
    %85 = vector.load %arg6[%c0_65, %c0_66, %c0_67] : memref<1x40x128xf32, #tpu.memory_space<vmem>>, vector<1x40x128xf32>
    %86 = vector.shape_cast %85 : vector<1x40x128xf32> to vector<40x128xf32>
    %87 = vector.shape_cast %84 : vector<40x128xf32> to vector<1x40x128xf32>
    tpu.vector_store %arg6[%c0_65, %c0_66, %c0_67], %87 {strides = array<i32>} : memref<1x40x128xf32, #tpu.memory_space<vmem>>, vector<1x40x128xf32>,
    %88 = math.absf %72 : vector<40x128xf32>
    %89 = math.absf %76 : vector<40x128xf32>
    %90 = arith.minimumf %88, %89 : vector<40x128xf32>
    %91 = arith.maximumf %88, %89 : vector<40x128xf32>
    %cst_68 = arith.constant 0.000000e+00 : f32
    %92 = vector.broadcast %cst_68 : f32 to vector<40x128xf32>
    %93 = arith.cmpf ogt, %91, %92 : vector<40x128xf32>
    %cst_69 = arith.constant 1.000000e+00 : f32
    %94 = vector.broadcast %cst_69 : f32 to vector<40x128xf32>
    %95 = arith.select %93, %91, %94 : vector<40x128xi1>, vector<40x128xf32>
    %96 = arith.divf %90, %95 : vector<40x128xf32>
    %97 = arith.mulf %96, %96 : vector<40x128xf32>
    %cst_70 = arith.constant 1.000000e+00 : f32
    %98 = vector.broadcast %cst_70 : f32 to vector<40x128xf32>
    %99 = arith.addf %98, %97 : vector<40x128xf32>
    %100 = math.sqrt %99 : vector<40x128xf32>
    %cst_71 = arith.constant 1.000000e+00 : f32
    %101 = vector.broadcast %cst_71 : f32 to vector<40x128xf32>
    %102 = arith.addf %101, %100 : vector<40x128xf32>
    %103 = arith.divf %96, %102 : vector<40x128xf32>
    %104 = arith.mulf %103, %103 : vector<40x128xf32>
    %cst_72 = arith.constant 1.000000e+00 : f32
    %105 = vector.broadcast %cst_72 : f32 to vector<40x128xf32>
    %106 = arith.addf %105, %104 : vector<40x128xf32>
    %107 = math.sqrt %106 : vector<40x128xf32>
    %cst_73 = arith.constant 1.000000e+00 : f32
    %108 = vector.broadcast %cst_73 : f32 to vector<40x128xf32>
    %109 = arith.addf %108, %107 : vector<40x128xf32>
    %110 = arith.divf %103, %109 : vector<40x128xf32>
    %111 = arith.mulf %110, %110 : vector<40x128xf32>
    %cst_74 = arith.constant 4.000000e+00 : f32
    %112 = vector.broadcast %cst_74 : f32 to vector<40x128xf32>
    %113 = arith.mulf %112, %110 : vector<40x128xf32>
    %cst_75 = arith.constant 0.111111112 : f32
    %114 = vector.broadcast %cst_75 : f32 to vector<40x128xf32>
    %115 = arith.mulf %111, %114 : vector<40x128xf32>
    %cst_76 = arith.constant -0.142857149 : f32
    %116 = vector.broadcast %cst_76 : f32 to vector<40x128xf32>
    %117 = arith.addf %116, %115 : vector<40x128xf32>
    %118 = arith.mulf %111, %117 : vector<40x128xf32>
    %cst_77 = arith.constant 2.000000e-01 : f32
    %119 = vector.broadcast %cst_77 : f32 to vector<40x128xf32>
    %120 = arith.addf %119, %118 : vector<40x128xf32>
    %121 = arith.mulf %111, %120 : vector<40x128xf32>
    %cst_78 = arith.constant -0.333333343 : f32
    %122 = vector.broadcast %cst_78 : f32 to vector<40x128xf32>
    %123 = arith.addf %122, %121 : vector<40x128xf32>
    %124 = arith.mulf %111, %123 : vector<40x128xf32>
    %cst_79 = arith.constant 1.000000e+00 : f32
    %125 = vector.broadcast %cst_79 : f32 to vector<40x128xf32>
    %126 = arith.addf %125, %124 : vector<40x128xf32>
    %127 = arith.mulf %113, %126 : vector<40x128xf32>
    %128 = arith.cmpf ogt, %89, %88 : vector<40x128xf32>
    %cst_80 = arith.constant 1.57079637 : f32
    %129 = vector.broadcast %cst_80 : f32 to vector<40x128xf32>
    %130 = arith.subf %129, %127 : vector<40x128xf32>
    %131 = arith.select %128, %130, %127 : vector<40x128xi1>, vector<40x128xf32>
    %cst_81 = arith.constant 0.000000e+00 : f32
    %132 = vector.broadcast %cst_81 : f32 to vector<40x128xf32>
    %133 = arith.cmpf olt, %72, %132 : vector<40x128xf32>
    %cst_82 = arith.constant 3.14159274 : f32
    %134 = vector.broadcast %cst_82 : f32 to vector<40x128xf32>
    %135 = arith.subf %134, %131 : vector<40x128xf32>
    %136 = arith.select %133, %135, %131 : vector<40x128xi1>, vector<40x128xf32>
    %cst_83 = arith.constant 0.000000e+00 : f32
    %137 = vector.broadcast %cst_83 : f32 to vector<40x128xf32>
    %138 = arith.cmpf olt, %76, %137 : vector<40x128xf32>
    %cst_84 = arith.constant 0.000000e+00 : f32
    %139 = vector.broadcast %cst_84 : f32 to vector<40x128xf32>
    %140 = arith.subf %139, %136 : vector<40x128xf32>
    %141 = arith.select %138, %140, %136 : vector<40x128xi1>, vector<40x128xf32>
    %c0_85 = arith.constant 0 : index
    %c0_86 = arith.constant 0 : index
    %c0_87 = arith.constant 0 : index
    %142 = vector.load %arg7[%c0_85, %c0_86, %c0_87] : memref<1x40x128xf32, #tpu.memory_space<vmem>>, vector<1x40x128xf32>
    %143 = vector.shape_cast %142 : vector<1x40x128xf32> to vector<40x128xf32>
    %144 = vector.shape_cast %141 : vector<40x128xf32> to vector<1x40x128xf32>
    tpu.vector_store %arg7[%c0_85, %c0_86, %c0_87], %144 {strides = array<i32>} : memref<1x40x128xf32, #tpu.memory_space<vmem>>, vector<1x40x128xf32>,
    %145 = vector.extract_strided_slice %80 {offsets = [0, 0], sizes = [16, 128], strides = [1, 1]} : vector<64x128xf32> to vector<16x128xf32>
    %cst_88 = arith.constant 0.000000e+00 : f32
    %146 = vector.broadcast %cst_88 : f32 to vector<16x128xf32>
    %147 = tpu.concatenate %145, %146 in 1 : vector<16x128xf32>, vector<16x128xf32> -> vector<16x256xf32>
    %148 = vector.extract_strided_slice %80 {offsets = [16, 0], sizes = [16, 128], strides = [1, 1]} : vector<64x128xf32> to vector<16x128xf32>
    %cst_89 = arith.constant 0.000000e+00 : f32
    %149 = vector.broadcast %cst_89 : f32 to vector<16x128xf32>
    %150 = tpu.concatenate %148, %149 in 1 : vector<16x128xf32>, vector<16x128xf32> -> vector<16x256xf32>
    %c1_i32_90 = arith.constant 1 : i32
    %151 = tpu.dynamic_rotate %150 by %c1_i32_90 dim 1 : vector<16x256xf32>, i32 -> vector<16x256xf32>
    %152 = arith.addf %147, %151 : vector<16x256xf32>
    %153 = vector.extract_strided_slice %80 {offsets = [32, 0], sizes = [16, 128], strides = [1, 1]} : vector<64x128xf32> to vector<16x128xf32>
    %cst_91 = arith.constant 0.000000e+00 : f32
    %154 = vector.broadcast %cst_91 : f32 to vector<16x128xf32>
    %155 = tpu.concatenate %153, %154 in 1 : vector<16x128xf32>, vector<16x128xf32> -> vector<16x256xf32>
    %c2_i32_92 = arith.constant 2 : i32
    %156 = tpu.dynamic_rotate %155 by %c2_i32_92 dim 1 : vector<16x256xf32>, i32 -> vector<16x256xf32>
    %157 = arith.addf %152, %156 : vector<16x256xf32>
    %158 = vector.extract_strided_slice %80 {offsets = [48, 0], sizes = [16, 128], strides = [1, 1]} : vector<64x128xf32> to vector<16x128xf32>
    %cst_93 = arith.constant 0.000000e+00 : f32
    %159 = vector.broadcast %cst_93 : f32 to vector<16x128xf32>
    %160 = tpu.concatenate %158, %159 in 1 : vector<16x128xf32>, vector<16x128xf32> -> vector<16x256xf32>
    %c3_i32_94 = arith.constant 3 : i32
    %161 = tpu.dynamic_rotate %160 by %c3_i32_94 dim 1 : vector<16x256xf32>, i32 -> vector<16x256xf32>
    %162 = arith.addf %157, %161 : vector<16x256xf32>
    %163 = vector.extract_strided_slice %162 {offsets = [0, 0], sizes = [16, 128], strides = [1, 1]} : vector<16x256xf32> to vector<16x128xf32>
    %c0_95 = arith.constant 0 : index
    %c0_96 = arith.constant 0 : index
    %c0_97 = arith.constant 0 : index
    %164 = vector.load %arg8[%c0_95, %c0_96, %c0_97] : memref<1x16x128xf32, #tpu.memory_space<vmem>>, vector<1x16x128xf32>
    %165 = vector.shape_cast %164 : vector<1x16x128xf32> to vector<16x128xf32>
    %166 = vector.shape_cast %163 : vector<16x128xf32> to vector<1x16x128xf32>
    tpu.vector_store %arg8[%c0_95, %c0_96, %c0_97], %166 {strides = array<i32>} : memref<1x16x128xf32, #tpu.memory_space<vmem>>, vector<1x16x128xf32>,
    %167 = vector.extract_strided_slice %162 {offsets = [0, 128], sizes = [16, 128], strides = [1, 1]} : vector<16x256xf32> to vector<16x128xf32>
    %c0_98 = arith.constant 0 : index
    %c0_99 = arith.constant 0 : index
    %c0_100 = arith.constant 0 : index
    %c0_101 = arith.constant 0 : index
    %168 = vector.load %arg9[%c0_98, %c0_99, %c0_100, %c0_101] : memref<1x1x16x128xf32, #tpu.memory_space<vmem>>, vector<1x1x16x128xf32>
    %169 = vector.shape_cast %168 : vector<1x1x16x128xf32> to vector<16x128xf32>
    %170 = vector.shape_cast %167 : vector<16x128xf32> to vector<1x1x16x128xf32>
    tpu.vector_store %arg9[%c0_98, %c0_99, %c0_100, %c0_101], %170 {strides = array<i32>} : memref<1x1x16x128xf32, #tpu.memory_space<vmem>>, vector<1x1x16x128xf32>,
    return
  }
  func.func @transform_0(%arg0: i32, %arg1: i32) -> (i32, i32, i32) {
    %c0_i32 = arith.constant 0 : i32
    %c0_i32_0 = arith.constant 0 : i32
    return %arg0, %c0_i32, %arg1 : i32, i32, i32
  }
  func.func @transform_1(%arg0: i32, %arg1: i32) -> (i32, i32, i32, i32) {
    %c0_i32 = arith.constant 0 : i32
    %c0_i32_0 = arith.constant 0 : i32
    %c0_i32_1 = arith.constant 0 : i32
    return %arg0, %arg1, %c0_i32, %c0_i32_0 : i32, i32, i32, i32
  }
  func.func @transform_2(%arg0: i32, %arg1: i32) -> (i32, i32, i32, i32) {
    %c0_i32 = arith.constant 0 : i32
    %c0_i32_0 = arith.constant 0 : i32
    %c0_i32_1 = arith.constant 0 : i32
    %c0_i32_2 = arith.constant 0 : i32
    %c0_i32_3 = arith.constant 0 : i32
    return %c0_i32, %c0_i32_0, %c0_i32_1, %c0_i32_2 : i32, i32, i32, i32
  }
  func.func @transform_3(%arg0: i32, %arg1: i32) -> (i32, i32, i32) {
    %c0_i32 = arith.constant 0 : i32
    %c0_i32_0 = arith.constant 0 : i32
    %c0_i32_1 = arith.constant 0 : i32
    %c0_i32_2 = arith.constant 0 : i32
    return %c0_i32, %c0_i32_0, %c0_i32_1 : i32, i32, i32
  }
  func.func @transform_4(%arg0: i32, %arg1: i32) -> (i32, i32, i32) {
    %c0_i32 = arith.constant 0 : i32
    %c0_i32_0 = arith.constant 0 : i32
    return %arg0, %c0_i32, %arg1 : i32, i32, i32
  }
  func.func @transform_5(%arg0: i32, %arg1: i32) -> (i32, i32, i32) {
    %c0_i32 = arith.constant 0 : i32
    %c0_i32_0 = arith.constant 0 : i32
    return %arg0, %c0_i32, %arg1 : i32, i32, i32
  }
  func.func @transform_6(%arg0: i32, %arg1: i32) -> (i32, i32, i32) {
    %c0_i32 = arith.constant 0 : i32
    %c0_i32_0 = arith.constant 0 : i32
    return %arg0, %c0_i32, %arg1 : i32, i32, i32
  }
  func.func @transform_7(%arg0: i32, %arg1: i32) -> (i32, i32, i32, i32) {
    %c0_i32 = arith.constant 0 : i32
    %c0_i32_0 = arith.constant 0 : i32
    %c0_i32_1 = arith.constant 0 : i32
    return %arg0, %arg1, %c0_i32, %c0_i32_0 : i32, i32, i32, i32
  }
}

module attributes {stable_mosaic.version = 11 : i64} {
  func.func @fused_stft_kernel(%arg0: i32, %arg1: i32, %arg2: memref<1x16x128xf32, #tpu.memory_space<vmem>>, %arg3: memref<1x1x16x128xf32, #tpu.memory_space<vmem>>, %arg4: memref<4x2x40x16xf32, #tpu.memory_space<vmem>>, %arg5: memref<4x64x16xf32, #tpu.memory_space<vmem>>, %arg6: memref<1x40x128xf32, #tpu.memory_space<vmem>>, %arg7: memref<1x40x128xf32, #tpu.memory_space<vmem>>, %arg8: memref<1x16x128xf32, #tpu.memory_space<vmem>>, %arg9: memref<1x1x16x128xf32, #tpu.memory_space<vmem>>) attributes {dimension_semantics = [#tpu.dimension_semantics<parallel>, #tpu.dimension_semantics<parallel>], iteration_bounds = array<i64: 2, 2>, scalar_prefetch = 0 : i64, scratch_operands = 0 : i64, tpu.core_type = #tpu.core_type<tc>, window_params = [{transform_indices = @transform_0, window_bounds = array<i64: 1, 16, 128>}, {transform_indices = @transform_1, window_bounds = array<i64: 1, 1, 16, 128>}, {pipeline_mode = #tpu.pipeline_mode<synchronous>, transform_indices = @transform_2, window_bounds = array<i64: 4, 2, 40, 16>}, {pipeline_mode = #tpu.pipeline_mode<synchronous>, transform_indices = @transform_3, window_bounds = array<i64: 4, 64, 16>}, {transform_indices = @transform_4, window_bounds = array<i64: 1, 40, 128>}, {transform_indices = @transform_5, window_bounds = array<i64: 1, 40, 128>}, {transform_indices = @transform_6, window_bounds = array<i64: 1, 16, 128>}, {transform_indices = @transform_7, window_bounds = array<i64: 1, 1, 16, 128>}]} {
    %c0 = arith.constant 0 : index
    %c0_0 = arith.constant 0 : index
    %c0_1 = arith.constant 0 : index
    %0 = vector.load %arg2[%c0, %c0_0, %c0_1] : memref<1x16x128xf32, #tpu.memory_space<vmem>>, vector<1x16x128xf32>
    %1 = vector.shape_cast %0 : vector<1x16x128xf32> to vector<16x128xf32>
    %c0_2 = arith.constant 0 : index
    %c0_3 = arith.constant 0 : index
    %c0_4 = arith.constant 0 : index
    %c0_5 = arith.constant 0 : index
    %2 = vector.load %arg3[%c0_2, %c0_3, %c0_4, %c0_5] : memref<1x1x16x128xf32, #tpu.memory_space<vmem>>, vector<1x1x16x128xf32>
    %3 = vector.shape_cast %2 : vector<1x1x16x128xf32> to vector<16x128xf32>
    %4 = tpu.iota {dimensions = array<i32: 1>} : vector<16x128xi32>
    %c128_i32 = arith.constant 128 : i32
    %5 = arith.muli %arg1, %c128_i32 : i32
    %6 = vector.broadcast %5 : i32 to vector<16x128xi32>
    %7 = arith.addi %4, %6 : vector<16x128xi32>
    %c161_i32 = arith.constant 161 : i32
    %8 = vector.broadcast %c161_i32 : i32 to vector<16x128xi32>
    %9 = arith.cmpi slt, %7, %8 : vector<16x128xi32>
    %cst = arith.constant 0.000000e+00 : f32
    %10 = vector.broadcast %cst : f32 to vector<40x128xf32>
    %cst_6 = arith.constant 0.000000e+00 : f32
    %11 = vector.broadcast %cst_6 : f32 to vector<40x128xf32>
    %cst_7 = arith.constant 0.000000e+00 : f32
    %12 = vector.broadcast %cst_7 : f32 to vector<64x128xf32>
    %cst_8 = arith.constant 0.000000e+00 : f32
    %13 = vector.broadcast %cst_8 : f32 to vector<16x128xf32>
    %14 = arith.select %9, %1, %13 : vector<16x128xi1>, vector<16x128xf32>
    %c0_9 = arith.constant 0 : index
    %c0_10 = arith.constant 0 : index
    %c0_11 = arith.constant 0 : index
    %c0_12 = arith.constant 0 : index
    %15 = vector.load %arg4[%c0_9, %c0_10, %c0_11, %c0_12] : memref<4x2x40x16xf32, #tpu.memory_space<vmem>>, vector<1x1x40x16xf32>
    %16 = vector.shape_cast %15 : vector<1x1x40x16xf32> to vector<40x16xf32>
    %cst_13 = arith.constant dense<0.000000e+00> : vector<40x128xf32>
    %17 = tpu.matmul %16, %14, %cst_13 {dimension_numbers = #tpu.dot_dimension_numbers<[1], [0], [0], [1], [0, 0, 1, 1], [], []>} : vector<40x16xf32>, vector<16x128xf32>, vector<40x128xf32> -> vector<40x128xf32>
    %18 = arith.addf %10, %17 : vector<40x128xf32>
    %c0_14 = arith.constant 0 : index
    %c1 = arith.constant 1 : index
    %c0_15 = arith.constant 0 : index
    %c0_16 = arith.constant 0 : index
    %19 = vector.load %arg4[%c0_14, %c1, %c0_15, %c0_16] : memref<4x2x40x16xf32, #tpu.memory_space<vmem>>, vector<1x1x40x16xf32>
    %20 = vector.shape_cast %19 : vector<1x1x40x16xf32> to vector<40x16xf32>
    %cst_17 = arith.constant dense<0.000000e+00> : vector<40x128xf32>
    %21 = tpu.matmul %20, %14, %cst_17 {dimension_numbers = #tpu.dot_dimension_numbers<[1], [0], [0], [1], [0, 0, 1, 1], [], []>} : vector<40x16xf32>, vector<16x128xf32>, vector<40x128xf32> -> vector<40x128xf32>
    %22 = arith.addf %11, %21 : vector<40x128xf32>
    %c0_18 = arith.constant 0 : index
    %c0_19 = arith.constant 0 : index
    %c0_20 = arith.constant 0 : index
    %23 = vector.load %arg5[%c0_18, %c0_19, %c0_20] : memref<4x64x16xf32, #tpu.memory_space<vmem>>, vector<1x64x16xf32>
    %24 = vector.shape_cast %23 : vector<1x64x16xf32> to vector<64x16xf32>
    %cst_21 = arith.constant dense<0.000000e+00> : vector<64x128xf32>
    %25 = tpu.matmul %24, %14, %cst_21 {dimension_numbers = #tpu.dot_dimension_numbers<[1], [0], [0], [1], [0, 0, 1, 1], [], []>} : vector<64x16xf32>, vector<16x128xf32>, vector<64x128xf32> -> vector<64x128xf32>
    %26 = arith.addf %12, %25 : vector<64x128xf32>
    %c1_i32 = arith.constant 1 : i32
    %27 = vector.broadcast %c1_i32 : i32 to vector<16x128xi32>
    %28 = arith.cmpi slt, %4, %27 : vector<16x128xi32>
    %29 = arith.select %28, %3, %1 : vector<16x128xi1>, vector<16x128xf32>
    %c127_i32 = arith.constant 127 : i32
    %30 = tpu.dynamic_rotate %29 by %c127_i32 dim 1 : vector<16x128xf32>, i32 -> vector<16x128xf32>
    %cst_22 = arith.constant 0.000000e+00 : f32
    %31 = vector.broadcast %cst_22 : f32 to vector<16x128xf32>
    %32 = arith.select %9, %30, %31 : vector<16x128xi1>, vector<16x128xf32>
    %c1_23 = arith.constant 1 : index
    %c0_24 = arith.constant 0 : index
    %c0_25 = arith.constant 0 : index
    %c0_26 = arith.constant 0 : index
    %33 = vector.load %arg4[%c1_23, %c0_24, %c0_25, %c0_26] : memref<4x2x40x16xf32, #tpu.memory_space<vmem>>, vector<1x1x40x16xf32>
    %34 = vector.shape_cast %33 : vector<1x1x40x16xf32> to vector<40x16xf32>
    %cst_27 = arith.constant dense<0.000000e+00> : vector<40x128xf32>
    %35 = tpu.matmul %34, %32, %cst_27 {dimension_numbers = #tpu.dot_dimension_numbers<[1], [0], [0], [1], [0, 0, 1, 1], [], []>} : vector<40x16xf32>, vector<16x128xf32>, vector<40x128xf32> -> vector<40x128xf32>
    %36 = arith.addf %18, %35 : vector<40x128xf32>
    %c1_28 = arith.constant 1 : index
    %c1_29 = arith.constant 1 : index
    %c0_30 = arith.constant 0 : index
    %c0_31 = arith.constant 0 : index
    %37 = vector.load %arg4[%c1_28, %c1_29, %c0_30, %c0_31] : memref<4x2x40x16xf32, #tpu.memory_space<vmem>>, vector<1x1x40x16xf32>
    %38 = vector.shape_cast %37 : vector<1x1x40x16xf32> to vector<40x16xf32>
    %cst_32 = arith.constant dense<0.000000e+00> : vector<40x128xf32>
    %39 = tpu.matmul %38, %32, %cst_32 {dimension_numbers = #tpu.dot_dimension_numbers<[1], [0], [0], [1], [0, 0, 1, 1], [], []>} : vector<40x16xf32>, vector<16x128xf32>, vector<40x128xf32> -> vector<40x128xf32>
    %40 = arith.addf %22, %39 : vector<40x128xf32>
    %c1_33 = arith.constant 1 : index
    %c0_34 = arith.constant 0 : index
    %c0_35 = arith.constant 0 : index
    %41 = vector.load %arg5[%c1_33, %c0_34, %c0_35] : memref<4x64x16xf32, #tpu.memory_space<vmem>>, vector<1x64x16xf32>
    %42 = vector.shape_cast %41 : vector<1x64x16xf32> to vector<64x16xf32>
    %cst_36 = arith.constant dense<0.000000e+00> : vector<64x128xf32>
    %43 = tpu.matmul %42, %32, %cst_36 {dimension_numbers = #tpu.dot_dimension_numbers<[1], [0], [0], [1], [0, 0, 1, 1], [], []>} : vector<64x16xf32>, vector<16x128xf32>, vector<64x128xf32> -> vector<64x128xf32>
    %44 = arith.addf %26, %43 : vector<64x128xf32>
    %c2_i32 = arith.constant 2 : i32
    %45 = vector.broadcast %c2_i32 : i32 to vector<16x128xi32>
    %46 = arith.cmpi slt, %4, %45 : vector<16x128xi32>
    %47 = arith.select %46, %3, %1 : vector<16x128xi1>, vector<16x128xf32>
    %c126_i32 = arith.constant 126 : i32
    %48 = tpu.dynamic_rotate %47 by %c126_i32 dim 1 : vector<16x128xf32>, i32 -> vector<16x128xf32>
    %cst_37 = arith.constant 0.000000e+00 : f32
    %49 = vector.broadcast %cst_37 : f32 to vector<16x128xf32>
    %50 = arith.select %9, %48, %49 : vector<16x128xi1>, vector<16x128xf32>
    %c2 = arith.constant 2 : index
    %c0_38 = arith.constant 0 : index
    %c0_39 = arith.constant 0 : index
    %c0_40 = arith.constant 0 : index
    %51 = vector.load %arg4[%c2, %c0_38, %c0_39, %c0_40] : memref<4x2x40x16xf32, #tpu.memory_space<vmem>>, vector<1x1x40x16xf32>
    %52 = vector.shape_cast %51 : vector<1x1x40x16xf32> to vector<40x16xf32>
    %cst_41 = arith.constant dense<0.000000e+00> : vector<40x128xf32>
    %53 = tpu.matmul %52, %50, %cst_41 {dimension_numbers = #tpu.dot_dimension_numbers<[1], [0], [0], [1], [0, 0, 1, 1], [], []>} : vector<40x16xf32>, vector<16x128xf32>, vector<40x128xf32> -> vector<40x128xf32>
    %54 = arith.addf %36, %53 : vector<40x128xf32>
    %c2_42 = arith.constant 2 : index
    %c1_43 = arith.constant 1 : index
    %c0_44 = arith.constant 0 : index
    %c0_45 = arith.constant 0 : index
    %55 = vector.load %arg4[%c2_42, %c1_43, %c0_44, %c0_45] : memref<4x2x40x16xf32, #tpu.memory_space<vmem>>, vector<1x1x40x16xf32>
    %56 = vector.shape_cast %55 : vector<1x1x40x16xf32> to vector<40x16xf32>
    %cst_46 = arith.constant dense<0.000000e+00> : vector<40x128xf32>
    %57 = tpu.matmul %56, %50, %cst_46 {dimension_numbers = #tpu.dot_dimension_numbers<[1], [0], [0], [1], [0, 0, 1, 1], [], []>} : vector<40x16xf32>, vector<16x128xf32>, vector<40x128xf32> -> vector<40x128xf32>
    %58 = arith.addf %40, %57 : vector<40x128xf32>
    %c2_47 = arith.constant 2 : index
    %c0_48 = arith.constant 0 : index
    %c0_49 = arith.constant 0 : index
    %59 = vector.load %arg5[%c2_47, %c0_48, %c0_49] : memref<4x64x16xf32, #tpu.memory_space<vmem>>, vector<1x64x16xf32>
    %60 = vector.shape_cast %59 : vector<1x64x16xf32> to vector<64x16xf32>
    %cst_50 = arith.constant dense<0.000000e+00> : vector<64x128xf32>
    %61 = tpu.matmul %60, %50, %cst_50 {dimension_numbers = #tpu.dot_dimension_numbers<[1], [0], [0], [1], [0, 0, 1, 1], [], []>} : vector<64x16xf32>, vector<16x128xf32>, vector<64x128xf32> -> vector<64x128xf32>
    %62 = arith.addf %44, %61 : vector<64x128xf32>
    %c3_i32 = arith.constant 3 : i32
    %63 = vector.broadcast %c3_i32 : i32 to vector<16x128xi32>
    %64 = arith.cmpi slt, %4, %63 : vector<16x128xi32>
    %65 = arith.select %64, %3, %1 : vector<16x128xi1>, vector<16x128xf32>
    %c125_i32 = arith.constant 125 : i32
    %66 = tpu.dynamic_rotate %65 by %c125_i32 dim 1 : vector<16x128xf32>, i32 -> vector<16x128xf32>
    %cst_51 = arith.constant 0.000000e+00 : f32
    %67 = vector.broadcast %cst_51 : f32 to vector<16x128xf32>
    %68 = arith.select %9, %66, %67 : vector<16x128xi1>, vector<16x128xf32>
    %c3 = arith.constant 3 : index
    %c0_52 = arith.constant 0 : index
    %c0_53 = arith.constant 0 : index
    %c0_54 = arith.constant 0 : index
    %69 = vector.load %arg4[%c3, %c0_52, %c0_53, %c0_54] : memref<4x2x40x16xf32, #tpu.memory_space<vmem>>, vector<1x1x40x16xf32>
    %70 = vector.shape_cast %69 : vector<1x1x40x16xf32> to vector<40x16xf32>
    %cst_55 = arith.constant dense<0.000000e+00> : vector<40x128xf32>
    %71 = tpu.matmul %70, %68, %cst_55 {dimension_numbers = #tpu.dot_dimension_numbers<[1], [0], [0], [1], [0, 0, 1, 1], [], []>} : vector<40x16xf32>, vector<16x128xf32>, vector<40x128xf32> -> vector<40x128xf32>
    %72 = arith.addf %54, %71 : vector<40x128xf32>
    %c3_56 = arith.constant 3 : index
    %c1_57 = arith.constant 1 : index
    %c0_58 = arith.constant 0 : index
    %c0_59 = arith.constant 0 : index
    %73 = vector.load %arg4[%c3_56, %c1_57, %c0_58, %c0_59] : memref<4x2x40x16xf32, #tpu.memory_space<vmem>>, vector<1x1x40x16xf32>
    %74 = vector.shape_cast %73 : vector<1x1x40x16xf32> to vector<40x16xf32>
    %cst_60 = arith.constant dense<0.000000e+00> : vector<40x128xf32>
    %75 = tpu.matmul %74, %68, %cst_60 {dimension_numbers = #tpu.dot_dimension_numbers<[1], [0], [0], [1], [0, 0, 1, 1], [], []>} : vector<40x16xf32>, vector<16x128xf32>, vector<40x128xf32> -> vector<40x128xf32>
    %76 = arith.addf %58, %75 : vector<40x128xf32>
    %c3_61 = arith.constant 3 : index
    %c0_62 = arith.constant 0 : index
    %c0_63 = arith.constant 0 : index
    %77 = vector.load %arg5[%c3_61, %c0_62, %c0_63] : memref<4x64x16xf32, #tpu.memory_space<vmem>>, vector<1x64x16xf32>
    %78 = vector.shape_cast %77 : vector<1x64x16xf32> to vector<64x16xf32>
    %cst_64 = arith.constant dense<0.000000e+00> : vector<64x128xf32>
    %79 = tpu.matmul %78, %68, %cst_64 {dimension_numbers = #tpu.dot_dimension_numbers<[1], [0], [0], [1], [0, 0, 1, 1], [], []>} : vector<64x16xf32>, vector<16x128xf32>, vector<64x128xf32> -> vector<64x128xf32>
    %80 = arith.addf %62, %79 : vector<64x128xf32>
    %81 = arith.mulf %72, %72 : vector<40x128xf32>
    %82 = arith.mulf %76, %76 : vector<40x128xf32>
    %83 = arith.addf %81, %82 : vector<40x128xf32>
    %84 = math.sqrt %83 : vector<40x128xf32>
    %c0_65 = arith.constant 0 : index
    %c0_66 = arith.constant 0 : index
    %c0_67 = arith.constant 0 : index
    %85 = vector.load %arg6[%c0_65, %c0_66, %c0_67] : memref<1x40x128xf32, #tpu.memory_space<vmem>>, vector<1x40x128xf32>
    %86 = vector.shape_cast %85 : vector<1x40x128xf32> to vector<40x128xf32>
    %87 = vector.shape_cast %84 : vector<40x128xf32> to vector<1x40x128xf32>
    tpu.vector_store %arg6[%c0_65, %c0_66, %c0_67], %87 {strides = array<i32>} : memref<1x40x128xf32, #tpu.memory_space<vmem>>, vector<1x40x128xf32>,
    %88 = math.absf %72 : vector<40x128xf32>
    %89 = math.absf %76 : vector<40x128xf32>
    %90 = arith.minimumf %88, %89 : vector<40x128xf32>
    %91 = arith.maximumf %88, %89 : vector<40x128xf32>
    %cst_68 = arith.constant 0.000000e+00 : f32
    %92 = vector.broadcast %cst_68 : f32 to vector<40x128xf32>
    %93 = arith.cmpf ogt, %91, %92 : vector<40x128xf32>
    %cst_69 = arith.constant 1.000000e+00 : f32
    %94 = vector.broadcast %cst_69 : f32 to vector<40x128xf32>
    %95 = arith.select %93, %91, %94 : vector<40x128xi1>, vector<40x128xf32>
    %96 = arith.divf %90, %95 : vector<40x128xf32>
    %97 = arith.mulf %96, %96 : vector<40x128xf32>
    %cst_70 = arith.constant 1.000000e+00 : f32
    %98 = vector.broadcast %cst_70 : f32 to vector<40x128xf32>
    %99 = arith.addf %98, %97 : vector<40x128xf32>
    %100 = math.sqrt %99 : vector<40x128xf32>
    %cst_71 = arith.constant 1.000000e+00 : f32
    %101 = vector.broadcast %cst_71 : f32 to vector<40x128xf32>
    %102 = arith.addf %101, %100 : vector<40x128xf32>
    %103 = arith.divf %96, %102 : vector<40x128xf32>
    %104 = arith.mulf %103, %103 : vector<40x128xf32>
    %cst_72 = arith.constant 1.000000e+00 : f32
    %105 = vector.broadcast %cst_72 : f32 to vector<40x128xf32>
    %106 = arith.addf %105, %104 : vector<40x128xf32>
    %107 = math.sqrt %106 : vector<40x128xf32>
    %cst_73 = arith.constant 1.000000e+00 : f32
    %108 = vector.broadcast %cst_73 : f32 to vector<40x128xf32>
    %109 = arith.addf %108, %107 : vector<40x128xf32>
    %110 = arith.divf %103, %109 : vector<40x128xf32>
    %111 = arith.mulf %110, %110 : vector<40x128xf32>
    %cst_74 = arith.constant 4.000000e+00 : f32
    %112 = vector.broadcast %cst_74 : f32 to vector<40x128xf32>
    %113 = arith.mulf %112, %110 : vector<40x128xf32>
    %cst_75 = arith.constant 0.111111112 : f32
    %114 = vector.broadcast %cst_75 : f32 to vector<40x128xf32>
    %115 = arith.mulf %111, %114 : vector<40x128xf32>
    %cst_76 = arith.constant -0.142857149 : f32
    %116 = vector.broadcast %cst_76 : f32 to vector<40x128xf32>
    %117 = arith.addf %116, %115 : vector<40x128xf32>
    %118 = arith.mulf %111, %117 : vector<40x128xf32>
    %cst_77 = arith.constant 2.000000e-01 : f32
    %119 = vector.broadcast %cst_77 : f32 to vector<40x128xf32>
    %120 = arith.addf %119, %118 : vector<40x128xf32>
    %121 = arith.mulf %111, %120 : vector<40x128xf32>
    %cst_78 = arith.constant -0.333333343 : f32
    %122 = vector.broadcast %cst_78 : f32 to vector<40x128xf32>
    %123 = arith.addf %122, %121 : vector<40x128xf32>
    %124 = arith.mulf %111, %123 : vector<40x128xf32>
    %cst_79 = arith.constant 1.000000e+00 : f32
    %125 = vector.broadcast %cst_79 : f32 to vector<40x128xf32>
    %126 = arith.addf %125, %124 : vector<40x128xf32>
    %127 = arith.mulf %113, %126 : vector<40x128xf32>
    %128 = arith.cmpf ogt, %89, %88 : vector<40x128xf32>
    %cst_80 = arith.constant 1.57079637 : f32
    %129 = vector.broadcast %cst_80 : f32 to vector<40x128xf32>
    %130 = arith.subf %129, %127 : vector<40x128xf32>
    %131 = arith.select %128, %130, %127 : vector<40x128xi1>, vector<40x128xf32>
    %cst_81 = arith.constant 0.000000e+00 : f32
    %132 = vector.broadcast %cst_81 : f32 to vector<40x128xf32>
    %133 = arith.cmpf olt, %72, %132 : vector<40x128xf32>
    %cst_82 = arith.constant 3.14159274 : f32
    %134 = vector.broadcast %cst_82 : f32 to vector<40x128xf32>
    %135 = arith.subf %134, %131 : vector<40x128xf32>
    %136 = arith.select %133, %135, %131 : vector<40x128xi1>, vector<40x128xf32>
    %cst_83 = arith.constant 0.000000e+00 : f32
    %137 = vector.broadcast %cst_83 : f32 to vector<40x128xf32>
    %138 = arith.cmpf olt, %76, %137 : vector<40x128xf32>
    %cst_84 = arith.constant 0.000000e+00 : f32
    %139 = vector.broadcast %cst_84 : f32 to vector<40x128xf32>
    %140 = arith.subf %139, %136 : vector<40x128xf32>
    %141 = arith.select %138, %140, %136 : vector<40x128xi1>, vector<40x128xf32>
    %c0_85 = arith.constant 0 : index
    %c0_86 = arith.constant 0 : index
    %c0_87 = arith.constant 0 : index
    %142 = vector.load %arg7[%c0_85, %c0_86, %c0_87] : memref<1x40x128xf32, #tpu.memory_space<vmem>>, vector<1x40x128xf32>
    %143 = vector.shape_cast %142 : vector<1x40x128xf32> to vector<40x128xf32>
    %144 = vector.shape_cast %141 : vector<40x128xf32> to vector<1x40x128xf32>
    tpu.vector_store %arg7[%c0_85, %c0_86, %c0_87], %144 {strides = array<i32>} : memref<1x40x128xf32, #tpu.memory_space<vmem>>, vector<1x40x128xf32>,
    %145 = vector.extract_strided_slice %80 {offsets = [0, 0], sizes = [16, 128], strides = [1, 1]} : vector<64x128xf32> to vector<16x128xf32>
    %cst_88 = arith.constant 0.000000e+00 : f32
    %146 = vector.broadcast %cst_88 : f32 to vector<16x128xf32>
    %147 = tpu.concatenate %145, %146 in 1 : vector<16x128xf32>, vector<16x128xf32> -> vector<16x256xf32>
    %148 = vector.extract_strided_slice %80 {offsets = [16, 0], sizes = [16, 128], strides = [1, 1]} : vector<64x128xf32> to vector<16x128xf32>
    %cst_89 = arith.constant 0.000000e+00 : f32
    %149 = vector.broadcast %cst_89 : f32 to vector<16x128xf32>
    %150 = tpu.concatenate %148, %149 in 1 : vector<16x128xf32>, vector<16x128xf32> -> vector<16x256xf32>
    %c1_i32_90 = arith.constant 1 : i32
    %151 = tpu.dynamic_rotate %150 by %c1_i32_90 dim 1 : vector<16x256xf32>, i32 -> vector<16x256xf32>
    %152 = arith.addf %147, %151 : vector<16x256xf32>
    %153 = vector.extract_strided_slice %80 {offsets = [32, 0], sizes = [16, 128], strides = [1, 1]} : vector<64x128xf32> to vector<16x128xf32>
    %cst_91 = arith.constant 0.000000e+00 : f32
    %154 = vector.broadcast %cst_91 : f32 to vector<16x128xf32>
    %155 = tpu.concatenate %153, %154 in 1 : vector<16x128xf32>, vector<16x128xf32> -> vector<16x256xf32>
    %c2_i32_92 = arith.constant 2 : i32
    %156 = tpu.dynamic_rotate %155 by %c2_i32_92 dim 1 : vector<16x256xf32>, i32 -> vector<16x256xf32>
    %157 = arith.addf %152, %156 : vector<16x256xf32>
    %158 = vector.extract_strided_slice %80 {offsets = [48, 0], sizes = [16, 128], strides = [1, 1]} : vector<64x128xf32> to vector<16x128xf32>
    %cst_93 = arith.constant 0.000000e+00 : f32
    %159 = vector.broadcast %cst_93 : f32 to vector<16x128xf32>
    %160 = tpu.concatenate %158, %159 in 1 : vector<16x128xf32>, vector<16x128xf32> -> vector<16x256xf32>
    %c3_i32_94 = arith.constant 3 : i32
    %161 = tpu.dynamic_rotate %160 by %c3_i32_94 dim 1 : vector<16x256xf32>, i32 -> vector<16x256xf32>
    %162 = arith.addf %157, %161 : vector<16x256xf32>
    %163 = vector.extract_strided_slice %162 {offsets = [0, 0], sizes = [16, 128], strides = [1, 1]} : vector<16x256xf32> to vector<16x128xf32>
    %c0_95 = arith.constant 0 : index
    %c0_96 = arith.constant 0 : index
    %c0_97 = arith.constant 0 : index
    %164 = vector.load %arg8[%c0_95, %c0_96, %c0_97] : memref<1x16x128xf32, #tpu.memory_space<vmem>>, vector<1x16x128xf32>
    %165 = vector.shape_cast %164 : vector<1x16x128xf32> to vector<16x128xf32>
    %166 = vector.shape_cast %163 : vector<16x128xf32> to vector<1x16x128xf32>
    tpu.vector_store %arg8[%c0_95, %c0_96, %c0_97], %166 {strides = array<i32>} : memref<1x16x128xf32, #tpu.memory_space<vmem>>, vector<1x16x128xf32>,
    %167 = vector.extract_strided_slice %162 {offsets = [0, 128], sizes = [16, 128], strides = [1, 1]} : vector<16x256xf32> to vector<16x128xf32>
    %c0_98 = arith.constant 0 : index
    %c0_99 = arith.constant 0 : index
    %c0_100 = arith.constant 0 : index
    %c0_101 = arith.constant 0 : index
    %168 = vector.load %arg9[%c0_98, %c0_99, %c0_100, %c0_101] : memref<1x1x16x128xf32, #tpu.memory_space<vmem>>, vector<1x1x16x128xf32>
    %169 = vector.shape_cast %168 : vector<1x1x16x128xf32> to vector<16x128xf32>
    %170 = vector.shape_cast %167 : vector<16x128xf32> to vector<1x1x16x128xf32>
    tpu.vector_store %arg9[%c0_98, %c0_99, %c0_100, %c0_101], %170 {strides = array<i32>} : memref<1x1x16x128xf32, #tpu.memory_space<vmem>>, vector<1x1x16x128xf32>,
    return
  }
  func.func @transform_0(%arg0: i32, %arg1: i32) -> (i32, i32, i32) {
    %c0_i32 = arith.constant 0 : i32
    %c0_i32_0 = arith.constant 0 : i32
    return %arg0, %c0_i32, %arg1 : i32, i32, i32
  }
  func.func @transform_1(%arg0: i32, %arg1: i32) -> (i32, i32, i32, i32) {
    %c0_i32 = arith.constant 0 : i32
    %c0_i32_0 = arith.constant 0 : i32
    %c0_i32_1 = arith.constant 0 : i32
    return %arg0, %arg1, %c0_i32, %c0_i32_0 : i32, i32, i32, i32
  }
  func.func @transform_2(%arg0: i32, %arg1: i32) -> (i32, i32, i32, i32) {
    %c0_i32 = arith.constant 0 : i32
    %c0_i32_0 = arith.constant 0 : i32
    %c0_i32_1 = arith.constant 0 : i32
    %c0_i32_2 = arith.constant 0 : i32
    %c0_i32_3 = arith.constant 0 : i32
    return %c0_i32, %c0_i32_0, %c0_i32_1, %c0_i32_2 : i32, i32, i32, i32
  }
  func.func @transform_3(%arg0: i32, %arg1: i32) -> (i32, i32, i32) {
    %c0_i32 = arith.constant 0 : i32
    %c0_i32_0 = arith.constant 0 : i32
    %c0_i32_1 = arith.constant 0 : i32
    %c0_i32_2 = arith.constant 0 : i32
    return %c0_i32, %c0_i32_0, %c0_i32_1 : i32, i32, i32
  }
  func.func @transform_4(%arg0: i32, %arg1: i32) -> (i32, i32, i32) {
    %c0_i32 = arith.constant 0 : i32
    %c0_i32_0 = arith.constant 0 : i32
    return %arg0, %c0_i32, %arg1 : i32, i32, i32
  }
  func.func @transform_5(%arg0: i32, %arg1: i32) -> (i32, i32, i32) {
    %c0_i32 = arith.constant 0 : i32
    %c0_i32_0 = arith.constant 0 : i32
    return %arg0, %c0_i32, %arg1 : i32, i32, i32
  }
  func.func @transform_6(%arg0: i32, %arg1: i32) -> (i32, i32, i32) {
    %c0_i32 = arith.constant 0 : i32
    %c0_i32_0 = arith.constant 0 : i32
    return %arg0, %c0_i32, %arg1 : i32, i32, i32
  }
  func.func @transform_7(%arg0: i32, %arg1: i32) -> (i32, i32, i32, i32) {
    %c0_i32 = arith.constant 0 : i32
    %c0_i32_0 = arith.constant 0 : i32
    %c0_i32_1 = arith.constant 0 : i32
    return %arg0, %arg1, %c0_i32, %c0_i32_0 : i32, i32, i32, i32
  }
}

</mosaic_0001>

<bundles_post_ra>
// kernel: tpu_custom_call.1
= control target key start
LH: loop header
LB: loop body
LE: loop exit
PB: predicated region body
PF: predicated region fallthrough
CT: control target
= control target key end

     0   :  { %s4723_s0 = inlined_call_operand.vmem [shape: f32[2,16,256], index: 0, kind: input, shape index: {}]   ;;  %s4724_s1 = inlined_call_operand.vmem [shape: f32[2,2,16,128], index: 1, kind: input, shape index: {}]   ;;  %s4725_s2 = inlined_call_operand.vmem [shape: f32[4,2,40,16], index: 2, kind: input, shape index: {}]   ;;  %s4726_s3 = inlined_call_operand.vmem [shape: f32[4,64,16], index: 3, kind: input, shape index: {}]   ;;  %s4727_s4 = inlined_call_operand.hbm [shape: f32[2,40,256], index: 4, kind: output, shape index: {0}]   ;;  %s4728_s5 = inlined_call_operand.hbm [shape: f32[2,40,256], index: 5, kind: output, shape index: {1}]   ;;  %s4729_s6 = inlined_call_operand.hbm [shape: f32[2,16,256], index: 6, kind: output, shape index: {2}]   ;;  %s4730_s7 = inlined_call_operand.hbm [shape: f32[2,2,16,128], index: 7, kind: output, shape index: {3}]  }
   0x1   :  { %4742 = sst [smem:[#allocation14_spill]] %s4723_s0 }
   0x2   :  { %4743 = sst [smem:[#allocation15_spill]] %s4724_s1 }
   0x3   :  { %4744 = sst [smem:[#allocation16_spill]] %s4725_s2 }
   0x4   :  { %4745 = sst [smem:[#allocation17_spill]] %s4726_s3 }
   0x5   :  { %4746 = sst [smem:[#allocation18_spill]] %s4727_s4 }
   0x6   :  { %13 = vsyncpa [#allocation4], 0 }
   0x7   :  { %15 = vsyncpa [#allocation4 + $0x1], 0 }
   0x8   :  { %16 = vsyncpa [#allocation6], 0 }
   0x9   :  { %18 = vsyncpa [#allocation6 + $0x1], 0 }
   0xa   :  { %19 = vsyncpa [#allocation9], 0 }
   0xb   :  { %21 = vsyncpa [#allocation9 + $0x1], 0  ;;  %s3617_s24 = smov 0   ;;  %s3619_s25 = smov 0  }
   0xc   :  { %s3621_s26 = smov 0   ;;  %s3623_s27 = smov 0  }
   0xd   :  { %s3625_s28 = smov 0   ;;  %s3627_s29 = smov 0  }
   0xe   :  { %s3629_s30 = smov 0   ;;  %s3631_s8 = smov 0  }
   0xf LB: > { %s4732_s9 = sadd.s32 4294967295, %s3559_s8   ;;  %s4731_s10 = sadd.s32 4294967294, %s3559_s8   ;;  %s3559_s8 = sphi %s3631_s8, %s27_s8   ;;  %s3555_s30 = sphi %s3629_s30, %s4775_s30   ;;  %s3551_s29 = sphi %s3627_s29, %s4774_s29   ;;  %s3547_s28 = sphi %s3625_s28, %s4773_s28   ;;  %s3543_s27 = sphi %s3623_s27, %s4772_s27   ;;  %s3539_s26 = sphi %s3621_s26, %s4771_s26   ;;  %s3535_s25 = sphi %s3619_s25, %s4770_s25   ;;  %s3531_s24 = sphi %s3617_s24, %s4769_s24  }
  0x10   : > { %s36_s11 = sadd.s32 1, %s3551_s29  ;;  %s39_s12 = sadd.s32 1, %s3555_s30 }
  0x11   : > { %p37_p0 = scmp.ge.s32.totalorder %s36_s11, 2  ;;  %p55_p1 = scmp.ne.s32.totalorder %s3539_s26, %s3535_s25 }
  0x12   : > { %p56_p2 = scmp.eq.s32.totalorder %s3559_s8, 0  ;;  %p157_p5 = scmp.eq.s32.totalorder %s4732_s9, 3 }
  0x13   : > { %s4777_s11 = smov (%p37_p0, %s36_s11), 0  ;;  %s4779_s12 = smov (!%p37_p0, %s39_s12), %s3555_s30 }
  0x14   : > { %s44_s13 = ssub.s32 %s3551_s29, %s4777_s11  ;;  %p3669_p3 = por %p56_p2, %p55_p1 }
  0x15   : > { %p41_p4 = scmp.ge.s32.totalorder %s4779_s12, 2  ;;  %p162_p6 = scmp.ne.s32.totalorder %s3535_s25, %s3531_s24 }
  0x16   : > { %p163_p7 = scmp.eq.s32.totalorder %s4731_s10, 3  ;;  %p3681_p8 = por %p157_p5, %p55_p1 }
  0x17   : > { %s4781_s12 = smov (%p41_p4, %s4779_s12), 0  ;;  %s48_s19 = sadd.s32 1, %s3539_s26 }
  0x18   : > { %4748 = sst [smem:[#allocation13_spill]] %s4781_s12  ;;  %p3685_p9 = por %p163_p7, %p162_p6 }
  0x19   : > { %s43_s17 = ssub.s32 %s3555_s30, %s4781_s12  ;;  %p2570_p11 = scmp.ge.s32.totalorder %s3559_s8, 4 }
  0x1a   : > { %s45_s18 = sor.u32 %s44_s13, %s43_s17 }
  0x1b   : > { %p46_p10 = scmp.eq.s32.totalorder %s45_s18, 0  ;;  %269 = sbr.rel (%p2570_p11) target bundleno = 45 (0x2d), region = 24 }
  0x1d   : > { %s3693_s20 = scalar_select %p46_p10, %s3539_s26, %s48_s19  }
  0x22   : > { %272 = sbr.rel (!%p3669_p3) target bundleno = 45 (0x2d), region = 28  ;;  %s274_s21 = sand.u32 (%p3669_p3), 1, %s3539_s26  }
  0x23   : > { %s2572_s22 = sshll.u32 (%p3669_p3), %s3555_s30, 2  ;;  %s2571_s23 = sshll.u32 (%p3669_p3), %s274_s21, 4 }
  0x24   : > { %s278_s10 = sadd.s32 (%p3669_p3), %s3551_s29, %s2572_s22  ;;  %s4751_s0 = sld [smem:[#allocation14_spill]] (%p3669_p3) }
  0x25   : > { %s2573_s9 = sshll.u32 (%p3669_p3), %s278_s10, 3  ;;  %s276_s18 = scalar_lea.vmem (%p3669_p3), [#allocation2], %s2571_s23 }
  0x2a   : > { %s280_s17 = scalar_lea.vmem %s4751_s0, %s2573_s9 }
  0x2b   : > { %v310_v0 = vld [vmem:[%s280_s17] sm:$0xff]  ;;  %v312_v1 = vld [vmem:[%s280_s17 + $0x10] sm:$0xff] }
  0x2c   : > { %311 = vst [vmem:[%s276_s18] sm:$0xff] %v310_v0  ;;  %313 = vst [vmem:[%s276_s18 + $0x8] sm:$0xff] %v312_v1 }
  0x2d PF: > { %p2574_p12 = scmp.ge.s32.totalorder %s3559_s8, 1  ;;  %p330_p13 = scmp.lt.s32.totalorder %s3559_s8, 5 }
  0x2f   : > { %p331_p0 = pnand %p2574_p12, %p330_p13 }
  0x30   : > { %s3707_s10 = sand.u32 (!%p331_p0), 1, %s3535_s25   ;;  %p392_p1 = scmp.lt.s32.totalorder (!%p331_p0), %s3547_s28, 1  ;;  %v405_v2 = vlaneseq (!%p331_p0)  ;;  %v3561_v3 = vmov (!%p331_p0), 0.0|0.0   ;;  %vm3562_vm0 = vmmov (!%p331_p0), 0   ;;  %v3563_v4 = vmov (!%p331_p0), 0.0  }
  0x31   : > { %334 = sbr.rel (%p331_p0) target bundleno = 698 (0x2ba), region = 70  ;;  %s3711_s9 = sshll.u32 (!%p331_p0), %s3707_s10, 4  ;;  %3064 = vmatprep.subr.bf16.mxu0 (!%p331_p0), %v3561_v3  ;;  %2867 = vmatprep.mubr.msk.f32.mxu0 (!%p331_p0), %vm3562_vm0, %v3563_v4  ;;  %vm447_vm5 = vcmask (!%p331_p0), 130048  }
  0x32   : > { %p394_p2 = scmp.lt.s32.totalorder (!%p331_p0), %s3543_s27, 1  ;;  %v3717_v5 = vand.u32 (!%p331_p0), 127, %v405_v2  ;;  %s2581_s12 = sshll.u32 (!%p331_p0), %s3543_s27, 7  ;;  %3060 = vmatprep.subr.bf16.mxu1 (!%p331_p0), %v3561_v3  ;;  %2848 = vmatprep.mubr.msk.f32.mxu1 (!%p331_p0), %vm3562_vm0, %v3563_v4 }
  0x33   : > { %s339_s19 = scalar_lea.vmem (!%p331_p0), [#allocation2], %s3711_s9  ;;  %v408_v8 = vstv (!%p331_p0), %s2581_s12  ;;  %s4754_s2 = sld [smem:[#allocation16_spill]] (!%p331_p0) }
  0x34   : > { %v401_v6 = vld [vmem:[%s339_s19] sm:$0xff] (!%p331_p0)  ;;  %v402_v7 = vld [vmem:[%s339_s19 + $0x8] sm:$0xff] (!%p331_p0)  ;;  %v409_v9 = vadd.s32 (!%p331_p0), %v408_v8, %v3717_v5  ;;  %vm432_vm3 = vcmp.lt.s32.totalorder (!%p331_p0), %v3717_v5, 1  ;;  %vm1141_vm4 = vcmp.lt.s32.totalorder (!%p331_p0), %v3717_v5, 2  ;;  %s4755_s1 = sld [smem:[#allocation15_spill]] (!%p331_p0)  ;;  %vm1528_vm6 = vcmp.lt.s32.totalorder (!%p331_p0), %v3717_v5, 3 }
  0x35   : > { %v3729_v10 = vpack.c.bf16 (!%p331_p0), %v402_v7, %v401_v6  ;;  %s4756_s3 = sld [smem:[#allocation17_spill]] (!%p331_p0)  ;;  %s3564_s18 = smov (!%p331_p0), 127  }
  0x36   : > { %vm410_vm1 = vcmp.lt.s32.totalorder (!%p331_p0), %v409_v9, 161  ;;  %s3565_s12 = smov (!%p331_p0), 125   ;;  %s4757_s4 = sld [smem:[#allocation18_spill]] (!%p331_p0) }
  0x37   : > { %vm3731_vm2 = vmpackc.low (!%p331_p0), %vm410_vm1, %vm410_vm1 }
  0x38   : > { %s393_s14 = scalar_select %p392_p1, %s3547_s28, 1  ;;  %3067 = vmatpush3.bf16.msk.msra.mxu0 %vm3731_vm2, %v3729_v10 }
  0x39   : > { %s395_s21 = scalar_select %p394_p2, %s3543_s27, 1  ;;  %v413_v12 = vld [vmem:[%s4754_s2] sm:$0xff]  ;;  %v414_v22 = vld [vmem:[%s4754_s2 + $0x8] sm:$0xff]  ;;  %v2587_v30 = vld [vmem:[%s4754_s2 + $0x50] sm:$0xff] }
  0x3a   : > { %s2579_s22 = sshll.u32 %s393_s14, 2  ;;  %s3566_s14 = smov 126   ;;  %v2588_v33 = vld [vmem:[%s4754_s2 + $0x58] sm:$0xff]  ;;  %v2589_v36 = vld [vmem:[%s4754_s2 + $0x60] sm:$0xff]  ;;  %v2590_v40 = vld [vmem:[%s4754_s2 + $0x68] sm:$0xff] }
  0x3b   : > { %s2578_s23 = sshll.u32 %s395_s21, 1  ;;  %2868 = vmatmul.mubr.msk.f32.vlgmr.msra.gmra.mrb[0].mxu0 %vm447_vm5, %v413_v12  ;;  %v2625_v24 = vld [vmem:[%s4756_s3 + $0x40] sm:$0xff]  ;;  %v2626_v31 = vld [vmem:[%s4756_s3 + $0x48] sm:$0xff]  ;;  %v2627_v32 = vld [vmem:[%s4756_s3 + $0x50] sm:$0xff] }
  0x3c   : > { %s398_s13 = sadd.s32 %s2579_s22, %s2578_s23  ;;  %2870 = vmatprep.mubr.msk.f32.mxu0 %vm3562_vm0, %v3563_v4  ;;  %v2628_v34 = vld [vmem:[%s4756_s3 + $0x58] sm:$0xff]  ;;  %v2629_v35 = vld [vmem:[%s4756_s3 + $0x60] sm:$0xff]  ;;  %v2630_v37 = vld [vmem:[%s4756_s3 + $0x68] sm:$0xff]  ;;  %s3567_s23 = smov 2  }
  0x3d   : > { %s2580_s17 = sshll.u32 %s398_s13, 3  ;;  %v2631_v38 = vld [vmem:[%s4756_s3 + $0x70] sm:$0xff]  ;;  %v2632_v41 = vld [vmem:[%s4756_s3 + $0x78] sm:$0xff]  ;;  %v424_v44 = vld [vmem:[%s4756_s3] sm:$0xff]  ;;  %s3568_s13 = smov 1  }
  0x3e   : > { %s400_s21 = scalar_lea.vmem %s4755_s1, %s2580_s17  ;;  %v2591_v45 = vld [vmem:[%s4754_s2 + $0x70] sm:$0xff]  ;;  %v425_v47 = vld [vmem:[%s4756_s3 + $0x8] sm:$0xff]  ;;  %v427_v50 = vld [vmem:[%s4756_s3 + $0x18] sm:$0xff]  ;;  %s3569_s17 = smov 3  }
  0x3f   : > { %v403_v13 = vld [vmem:[%s400_s21] sm:$0xff]  ;;  %v404_v14 = vld [vmem:[%s400_s21 + $0x8] sm:$0xff]  ;;  %2871 = vmatmul.mubr.msk.f32.gmra.mrb[2].mxu0 %vm447_vm5, %v414_v22  ;;  %v426_v48 = vld [vmem:[%s4756_s3 + $0x10] sm:$0xff] }
  0x40   : > { %v433_v15 = vsel %vm432_vm3, %v403_v13, %v401_v6  ;;  %v434_v16 = vsel %vm432_vm3, %v404_v14, %v402_v7  ;;  %v1142_v17 = vsel %vm1141_vm4, %v403_v13, %v401_v6  ;;  %v1143_v18 = vsel %vm1141_vm4, %v404_v14, %v402_v7  ;;  %2924 = vmatprep.mubr.msk.f32.mxu0 %vm447_vm5, %v2625_v24  ;;  %v415_v49 = vld [vmem:[%s4754_s2 + $0x10] sm:$0xff]  ;;  %v428_v51 = vld [vmem:[%s4756_s3 + $0x20] sm:$0xff]  ;;  %v416_v52 = vld [vmem:[%s4754_s2 + $0x18] sm:$0xff] }
  0x41   : > { %v3298_v19 = vpack.i.bf16 %v434_v16, %v433_v15  ;;  %v1529_v20 = vsel %vm1528_vm6, %v403_v13, %v401_v6  ;;  %v1530_v21 = vsel %vm1528_vm6, %v404_v14, %v402_v7  ;;  %v3303_v25 = vpack.i.bf16 %v1143_v18, %v1142_v17  ;;  %v429_v53 = vld [vmem:[%s4756_s3 + $0x28] sm:$0xff]  ;;  %v430_v54 = vld [vmem:[%s4756_s3 + $0x30] sm:$0xff]  ;;  %v417_v55 = vld [vmem:[%s4754_s2 + $0x20] sm:$0xff] }
  0x42   : > { %v3308_v23 = vpack.i.bf16 %v1530_v21, %v1529_v20  ;;  %v431_v56 = vld [vmem:[%s4756_s3 + $0x38] sm:$0xff]  ;;  %v2653_v58 = vld [vmem:[%s4754_s2 + $0xa0] sm:$0xff]  ;;  %v2654_v60 = vld [vmem:[%s4754_s2 + $0xa8] sm:$0xff] }
  0x43   : > { %3299 = vrot.lane.b32.xlu0 %v3298_v19, %s3564_s18  ;;  %v2606_v57 = vld [vmem:[%s4754_s2 + $0x78] sm:$0xff]  ;;  %v2607_v59 = vld [vmem:[%s4754_s2 + $0x80] sm:$0xff]  ;;  %v2608_v61 = vld [vmem:[%s4754_s2 + $0x88] sm:$0xff]  ;;  %s4735_s18 = smul.u32 40, %s3707_s10 }
  0x44   : > { %3309 = vrot.lane.b32.xlu1 %v3308_v23, %s3565_s12  ;;  %v2655_v62 = vld [vmem:[%s4754_s2 + $0xb0] sm:$0xff]  ;;  %v2656_v0 = vld [vmem:[%s4754_s2 + $0xb8] sm:$0xff]  ;;  %v2657_v6 = vld [vmem:[%s4754_s2 + $0xc0] sm:$0xff] }
  0x45   : > { %v2609_v63 = vld [vmem:[%s4754_s2 + $0x90] sm:$0xff]  ;;  %v2610_v2 = vld [vmem:[%s4754_s2 + $0x98] sm:$0xff]  ;;  %v2677_v9 = vld [vmem:[%s4756_s3 + $0x80] sm:$0xff]  ;;  %s4303_s12 = scalar_lea.vmem [#allocation3], %s4735_s18 }
  0x46   : > { %v2678_v12 = vld [vmem:[%s4756_s3 + $0x88] sm:$0xff]  ;;  %v2679_v14 = vld [vmem:[%s4756_s3 + $0x90] sm:$0xff]  ;;  %v2680_v16 = vld [vmem:[%s4756_s3 + $0x98] sm:$0xff]  ;;  %s2311_s21 = sshll.u32 %s4303_s12, 4  ;;  %s4369_s21 = int_to_ptr.vmem [resolvable:$true] %s2311_s21 }
  0x47   : > { %3304 = vrot.lane.b32.xlu0 %v3303_v25, %s3566_s14  ;;  %v2583_v15 = vld [vmem:[%s4754_s2 + $0x30] sm:$0xff]  ;;  %v2681_v17 = vld [vmem:[%s4756_s3 + $0xa0] sm:$0xff]  ;;  %v2584_v18 = vld [vmem:[%s4754_s2 + $0x38] sm:$0xff]  ;;  %s3198_s14 = smul.u32 10, %s3547_s28 }
  0x48   : > { %v2683_v19 = vld [vmem:[%s4756_s3 + $0xb0] sm:$0xff]  ;;  %v2585_v20 = vld [vmem:[%s4754_s2 + $0x40] sm:$0xff]  ;;  %v2684_v21 = vld [vmem:[%s4756_s3 + $0xb8] sm:$0xff]  ;;  %2239 = vrot.lane.b32.xlu1 %v3563_v4, %s3568_s13 }
  0x49   : > { %v2586_v22 = vld [vmem:[%s4754_s2 + $0x48] sm:$0xff]  ;;  %v2695_v23 = vld [vmem:[%s4754_s2 + $0xf0] sm:$0xff]  ;;  %v2696_v25 = vld [vmem:[%s4754_s2 + $0xf8] sm:$0xff]  ;;  %s4354_s19 = sadd.s32 %s3543_s27, %s3198_s14 }
  0x4a   : > { %v2665_v24 = vld [vmem:[%s4754_s2 + $0xc8] sm:$0xff]  ;;  %v2667_v11 = vld [vmem:[%s4754_s2 + $0xd8] sm:$0xff]  ;;  %s4734_s22 = sshll.u32 %s4354_s19, 7 }
  0x4b   : > { %2253 = vrot.lane.b32.xlu0 %v3563_v4, %s3567_s23 }
  0xb5   : > { %v3300_v26 = vpop.permute.xlu0 %3299 }
  0xb6   : > { %v3302_v27 = vunpack.i.h.bf16 %v3300_v26  ;;  %v3301_v28 = vunpack.i.l.bf16 %v3300_v26  ;;  %v3310_v1 = vpop.permute.xlu1 %3309  ;;  %v2666_v26 = vld [vmem:[%s4754_s2 + $0xd0] sm:$0xff] }
  0xb7   : > { %v3312_v7 = vunpack.i.h.bf16 %v3310_v1  ;;  %v3311_v8 = vunpack.i.l.bf16 %v3310_v1 }
  0xb8   : > { %v3061_v29 = vpack.c.bf16 %v3302_v27, %v3301_v28  ;;  %v2697_v27 = vld [vmem:[%s4754_s2 + $0x100] sm:$0xff]  ;;  %v2698_v28 = vld [vmem:[%s4754_s2 + $0x108] sm:$0xff] }
  0xb9   : > { %v3305_v39 = vpop.permute.xlu0 %3304  ;;  %v3103_v13 = vpack.c.bf16 %v3312_v7, %v3311_v8 }
  0xba   : > { %3063 = vmatpush3.bf16.msk.msra.mxu1 %vm3731_vm2, %v3061_v29  ;;  %3078 = vmatprep.subr.msk.bf16.mxu0 %vm3731_vm2, %v3061_v29  ;;  %v3307_v42 = vunpack.i.h.bf16 %v3305_v39  ;;  %v3306_v43 = vunpack.i.l.bf16 %v3305_v39  ;;  %v2724_v39 = vld [vmem:[%s4756_s3 + $0xe8] sm:$0xff] }
  0xbb   : > { %3081 = vmatpush3.bf16.msk.msra.mxu0 %vm3731_vm2, %v3061_v29  ;;  %3116 = vmatprep.subr.bf16.mxu1 %v3561_v3 }
  0xbc   : > { %3084 = vmatprep.subr.msk.bf16.mxu0 %vm3731_vm2, %v3729_v10  ;;  %v3846_v46 = vpack.c.bf16 %v3307_v42, %v3306_v43  ;;  %v2726_v42 = vld [vmem:[%s4756_s3 + $0xf8] sm:$0xff]  ;;  %v2710_v43 = vld [vmem:[%s4754_s2 + $0x130] sm:$0xff] }
  0xbd   : > { %2849 = vmatmul.mubr.msk.f32.vlgmr.msra.gmra.mrb[0].mxu1 %vm447_vm5, %v2587_v30  ;;  %v2699_v30 = vld [vmem:[%s4754_s2 + $0x110] sm:$0xff] }
  0xbe   : > { %2925 = vmatmul.mubr.msk.f32.vlgmr.msra.gmra.mrb[4].mxu0 %vm447_vm5, %v2626_v31  ;;  %2851 = vmatprep.mubr.msk.f32.mxu1 %vm3562_vm0, %v3563_v4  ;;  %v2719_v31 = vld [vmem:[%s4756_s3 + $0xc0] sm:$0xff] }
  0xbf   : > { %3117 = vmatpush3.bf16.msk.msra.mxu1 %vm3731_vm2, %v3729_v10  ;;  %2927 = vmatprep.mubr.msk.f32.mxu0 %vm447_vm5, %v2627_v32  ;;  %v2669_v32 = vld [vmem:[%s4754_s2 + $0xe8] sm:$0xff] }
  0xc0   : > { %3087 = vmatpush3.bf16.msk.msra.mxu0 %vm3731_vm2, %v3729_v10  ;;  %3068 = vmatprep.subr.bf16.mxu1 %v3561_v3 }
  0xc1   : > { %2852 = vmatmul.mubr.msk.f32.gmra.mrb[2].mxu1 %vm447_vm5, %v2588_v33  ;;  %3088 = vmatprep.subr.bf16.mxu0 %v3561_v3  ;;  %v2720_v33 = vld [vmem:[%s4756_s3 + $0xc8] sm:$0xff] }
  0xc2   : > { %2928 = vmatmul.mubr.msk.f32.gmra.mrb[6].mxu0 %vm447_vm5, %v2628_v34  ;;  %2854 = vmatprep.mubr.msk.f32.mxu1 %vm3562_vm0, %v3563_v4  ;;  %v2721_v34 = vld [vmem:[%s4756_s3 + $0xd0] sm:$0xff] }
  0xc3   : > { %2930 = vmatprep.mubr.msk.f32.mxu0 %vm447_vm5, %v2629_v35  ;;  %v2707_v35 = vld [vmem:[%s4754_s2 + $0x118] sm:$0xff] }
  0xc5   : > { %2855 = vmatmul.mubr.msk.f32.gmra.mrb[4].mxu1 %vm447_vm5, %v2589_v36  ;;  %v2722_v36 = vld [vmem:[%s4756_s3 + $0xd8] sm:$0xff] }
  0xc6   : > { %2931 = vmatmul.mubr.msk.f32.gmra.mrb[8].mxu0 %vm447_vm5, %v2630_v37  ;;  %2857 = vmatprep.mubr.msk.f32.mxu1 %vm3562_vm0, %v3563_v4  ;;  %v2723_v37 = vld [vmem:[%s4756_s3 + $0xe0] sm:$0xff] }
  0xc7   : > { %2933 = vmatprep.mubr.msk.f32.mxu0 %vm447_vm5, %v2631_v38  ;;  %v2708_v38 = vld [vmem:[%s4754_s2 + $0x120] sm:$0xff] }
  0xc9   : > { %2858 = vmatmul.mubr.msk.f32.gmra.mrb[6].mxu1 %vm447_vm5, %v2590_v40  ;;  %v2725_v40 = vld [vmem:[%s4756_s3 + $0xf0] sm:$0xff] }
  0xca   : > { %2934 = vmatmul.mubr.msk.f32.gmra.mrb[10].mxu0 %vm447_vm5, %v2632_v41  ;;  %2860 = vmatprep.mubr.msk.f32.mxu1 %vm3562_vm0, %v3563_v4  ;;  %v2709_v41 = vld [vmem:[%s4754_s2 + $0x128] sm:$0xff] }
  0xcb   : > { %2940 = vmatprep.mubr.msk.f32.mxu0 %vm447_vm5, %v424_v44  ;;  %v2711_v44 = vld [vmem:[%s4754_s2 + $0x138] sm:$0xff] }
  0xcd   : > { %2861 = vmatmul.mubr.msk.f32.gmra.mrb[8].mxu1 %vm447_vm5, %v2591_v45 }
  0xce   : > { %2941 = vmatmul.mubr.msk.f32.vlgmr.msra.gmra.mrb[4].mxu0 %vm447_vm5, %v425_v47  ;;  %2873 = vmatprep.mubr.msk.f32.mxu1 %vm3562_vm0, %v3563_v4 }
  0xcf   : > { %2943 = vmatprep.mubr.msk.f32.mxu0 %vm447_vm5, %v426_v48  ;;  %3091 = vmatpush3.bf16.msk.msra.mxu0 %vm3731_vm2, %v3846_v46 }
  0xd0   : > { %3098 = vmatprep.subr.msk.bf16.mxu0 %vm3731_vm2, %v3846_v46 }
  0xd1   : > { %2874 = vmatmul.mubr.msk.f32.vlgmr.msra.gmra.mrb[4].mxu1 %vm447_vm5, %v415_v49 }
  0xd2   : > { %3071 = vmatpush3.bf16.msk.msra.mxu1 %vm3731_vm2, %v3061_v29  ;;  %2944 = vmatmul.mubr.msk.f32.gmra.mrb[6].mxu0 %vm447_vm5, %v427_v50  ;;  %v2668_v29 = vld [vmem:[%s4754_s2 + $0xe0] sm:$0xff] }
  0xd3   : > { %2876 = vmatprep.mubr.msk.f32.mxu1 %vm3562_vm0, %v3563_v4  ;;  %2946 = vmatprep.mubr.msk.f32.mxu0 %vm447_vm5, %v428_v51 }
  0xd4   : > { %3072 = vmatprep.subr.bf16.mxu1 %v3561_v3 }
  0xd5   : > { %2877 = vmatmul.mubr.msk.f32.gmra.mrb[6].mxu1 %vm447_vm5, %v416_v52 }
  0xd6   : > { %2947 = vmatmul.mubr.msk.f32.gmra.mrb[8].mxu0 %vm447_vm5, %v429_v53  ;;  %2879 = vmatprep.mubr.msk.f32.mxu1 %vm3562_vm0, %v3563_v4 }
  0xd7   : > { %2949 = vmatprep.mubr.msk.f32.mxu0 %vm447_vm5, %v430_v54 }
  0xd9   : > { %2880 = vmatmul.mubr.msk.f32.gmra.mrb[8].mxu1 %vm447_vm5, %v417_v55 }
  0xda   : > { %2950 = vmatmul.mubr.msk.f32.gmra.mrb[10].mxu0 %vm447_vm5, %v431_v56  ;;  %2886 = vmatprep.mubr.msk.f32.mxu1 %vm3562_vm0, %v3563_v4 }
  0xdb   : > { %2956 = vmatprep.mubr.msk.f32.mxu0 %vm3562_vm0, %v3563_v4 }
  0xdd   : > { %2887 = vmatmul.mubr.msk.f32.vlgmr.msra.gmra.mrb[10].mxu1 %vm447_vm5, %v2606_v57 }
  0xde   : > { %2957 = vmatmul.mubr.msk.f32.vlgmr.msra.gmra.mrb[0].mxu0 %vm447_vm5, %v2653_v58  ;;  %2889 = vmatprep.mubr.msk.f32.mxu1 %vm3562_vm0, %v3563_v4 }
  0xdf   : > { %3101 = vmatpush3.bf16.msk.msra.mxu0 %vm3731_vm2, %v3846_v46  ;;  %3075 = vmatpush3.bf16.msk.msra.mxu1 %vm3731_vm2, %v3729_v10  ;;  %v2582_v10 = vld [vmem:[%s4754_s2 + $0x28] sm:$0xff] }
  0xe0   : > { %2959 = vmatprep.mubr.msk.f32.mxu0 %vm3562_vm0, %v3563_v4  ;;  %3092 = vmatprep.subr.bf16.mxu1 %v3561_v3 }
  0xe1   : > { %2890 = vmatmul.mubr.msk.f32.gmra.mrb[12].mxu1 %vm447_vm5, %v2607_v59  ;;  %3102 = vmatprep.subr.bf16.mxu0 %v3561_v3 }
  0xe2   : > { %2960 = vmatmul.mubr.msk.f32.gmra.mrb[2].mxu0 %vm447_vm5, %v2654_v60  ;;  %2892 = vmatprep.mubr.msk.f32.mxu1 %vm3562_vm0, %v3563_v4 }
  0xe3   : > { %2962 = vmatprep.mubr.msk.f32.mxu0 %vm3562_vm0, %v3563_v4 }
  0xe5   : > { %2893 = vmatmul.mubr.msk.f32.gmra.mrb[14].mxu1 %vm447_vm5, %v2608_v61 }
  0xe6   : > { %2963 = vmatmul.mubr.msk.f32.gmra.mrb[12].mxu0 %vm447_vm5, %v2655_v62  ;;  %2895 = vmatprep.mubr.msk.f32.mxu1 %vm3562_vm0, %v3563_v4 }
  0xe7   : > { %2965 = vmatprep.mubr.msk.f32.mxu0 %vm3562_vm0, %v3563_v4 }
  0xe9   : > { %2896 = vmatmul.mubr.msk.f32.gmra.mrb[16].mxu1 %vm447_vm5, %v2609_v63 }
  0xea   : > { %2966 = vmatmul.mubr.msk.f32.gmra.mrb[14].mxu0 %vm447_vm5, %v2656_v0  ;;  %2898 = vmatprep.mubr.msk.f32.mxu1 %vm3562_vm0, %v3563_v4 }
  0xeb   : > { %2968 = vmatprep.mubr.msk.f32.mxu0 %vm3562_vm0, %v3563_v4 }
  0xed   : > { %2899 = vmatmul.mubr.msk.f32.gmra.mrb[18].mxu1 %vm447_vm5, %v2610_v2 }
  0xee   : > { %2969 = vmatmul.mubr.msk.f32.gmra.mrb[16].mxu0 %vm447_vm5, %v2657_v6  ;;  %2905 = vmatprep.mubr.msk.f32.mxu1 %vm3562_vm0, %v3563_v4 }
  0xef   : > { %2994 = vmatprep.mubr.msk.f32.mxu0 %vm447_vm5, %v2677_v9 }
  0xf1   : > { %2906 = vmatmul.mubr.msk.f32.vlgmr.msra.gmra.mrb[10].mxu1 %vm447_vm5, %v2582_v10 }
  0xf2   : > { %3095 = vmatpush3.bf16.msk.msra.mxu1 %vm3731_vm2, %v3846_v46  ;;  %2995 = vmatmul.mubr.msk.f32.vlgmr.msra.gmra.mrb[4].mxu0 %vm447_vm5, %v2678_v12 }
  0xf3   : > { %2908 = vmatprep.mubr.msk.f32.mxu1 %vm3562_vm0, %v3563_v4  ;;  %2997 = vmatprep.mubr.msk.f32.mxu0 %vm447_vm5, %v2679_v14 }
  0xf4   : > { %3105 = vmatpush3.bf16.msk.msra.mxu0 %vm3731_vm2, %v3103_v13  ;;  %3106 = vmatprep.subr.bf16.mxu1 %v3561_v3  ;;  %v2682_v3 = vld [vmem:[%s4756_s3 + $0xa8] sm:$0xff] }
  0xf5   : > { %2909 = vmatmul.mubr.msk.f32.gmra.mrb[12].mxu1 %vm447_vm5, %v2583_v15  ;;  %3112 = vmatprep.subr.msk.bf16.mxu0 %vm3731_vm2, %v3103_v13 }
  0xf6   : > { %2998 = vmatmul.mubr.msk.f32.gmra.mrb[6].mxu0 %vm447_vm5, %v2680_v16  ;;  %2911 = vmatprep.mubr.msk.f32.mxu1 %vm3562_vm0, %v3563_v4 }
  0xf7   : > { %3000 = vmatprep.mubr.msk.f32.mxu0 %vm447_vm5, %v2681_v17 }
  0xf9   : > { %2912 = vmatmul.mubr.msk.f32.gmra.mrb[14].mxu1 %vm447_vm5, %v2584_v18 }
  0xfa   : > { %3001 = vmatmul.mubr.msk.f32.gmra.mrb[8].mxu0 %vm447_vm5, %v2682_v3  ;;  %2914 = vmatprep.mubr.msk.f32.mxu1 %vm3562_vm0, %v3563_v4 }
  0xfb   : > { %3003 = vmatprep.mubr.msk.f32.mxu0 %vm447_vm5, %v2683_v19 }
  0xfd   : > { %2915 = vmatmul.mubr.msk.f32.gmra.mrb[16].mxu1 %vm447_vm5, %v2585_v20 }
  0xfe   : > { %3004 = vmatmul.mubr.msk.f32.gmra.mrb[10].mxu0 %vm447_vm5, %v2684_v21  ;;  %2917 = vmatprep.mubr.msk.f32.mxu1 %vm3562_vm0, %v3563_v4 }
  0xff   : > { %3010 = vmatprep.mubr.msk.f32.mxu0 %vm3562_vm0, %v3563_v4 }
 0x101   : > { %2918 = vmatmul.mubr.msk.f32.gmra.mrb[18].mxu1 %vm447_vm5, %v2586_v22 }
 0x102   : > { %3011 = vmatmul.mubr.msk.f32.vlgmr.msra.gmra.mrb[0].mxu0 %vm447_vm5, %v2695_v23  ;;  %2975 = vmatprep.mubr.msk.f32.mxu1 %vm3562_vm0, %v3563_v4 }
 0x103   : > { %3115 = vmatpush3.bf16.msk.msra.mxu0 %vm3731_vm2, %v3103_v13  ;;  %3013 = vmatprep.mubr.msk.f32.mxu0 %vm3562_vm0, %v3563_v4 }
 0x105   : > { %2976 = vmatmul.mubr.msk.f32.vlgmr.msra.gmra.mrb[10].mxu1 %vm447_vm5, %v2665_v24 }
 0x106   : > { %3109 = vmatpush3.bf16.msk.msra.mxu1 %vm3731_vm2, %v3103_v13  ;;  %3014 = vmatmul.mubr.msk.f32.gmra.mrb[2].mxu0 %vm447_vm5, %v2696_v25 }
 0x107   : > { %2978 = vmatprep.mubr.msk.f32.mxu1 %vm3562_vm0, %v3563_v4  ;;  %3016 = vmatprep.mubr.msk.f32.mxu0 %vm3562_vm0, %v3563_v4 }
 0x109   : > { %2979 = vmatmul.mubr.msk.f32.gmra.mrb[12].mxu1 %vm447_vm5, %v2666_v26 }
 0x10a   : > { %3017 = vmatmul.mubr.msk.f32.gmra.mrb[12].mxu0 %vm447_vm5, %v2697_v27  ;;  %2981 = vmatprep.mubr.msk.f32.mxu1 %vm3562_vm0, %v3563_v4 }
 0x10b   : > { %3019 = vmatprep.mubr.msk.f32.mxu0 %vm3562_vm0, %v3563_v4 }
 0x10d   : > { %2982 = vmatmul.mubr.msk.f32.gmra.mrb[14].mxu1 %vm447_vm5, %v2667_v11 }
 0x10e   : > { %3020 = vmatmul.mubr.msk.f32.gmra.mrb[14].mxu0 %vm447_vm5, %v2698_v28  ;;  %2984 = vmatprep.mubr.msk.f32.mxu1 %vm3562_vm0, %v3563_v4 }
 0x10f   : > { %3022 = vmatprep.mubr.msk.f32.mxu0 %vm3562_vm0, %v3563_v4 }
 0x111   : > { %2985 = vmatmul.mubr.msk.f32.gmra.mrb[16].mxu1 %vm447_vm5, %v2668_v29 }
 0x112   : > { %3023 = vmatmul.mubr.msk.f32.gmra.mrb[16].mxu0 %vm447_vm5, %v2699_v30  ;;  %2987 = vmatprep.mubr.msk.f32.mxu1 %vm3562_vm0, %v3563_v4 }
 0x113   : > { %3048 = vmatprep.mubr.msk.f32.mxu0 %vm447_vm5, %v2719_v31 }
 0x115   : > { %2988 = vmatmul.mubr.msk.f32.gmra.mrb[18].mxu1 %vm447_vm5, %v2669_v32 }
 0x116   : > { %3049 = vmatmul.mubr.msk.f32.vlgmr.msra.gmra.mrb[4].mxu0 %vm447_vm5, %v2720_v33  ;;  %3029 = vmatprep.mubr.msk.f32.mxu1 %vm3562_vm0, %v3563_v4 }
 0x117   : > { %3051 = vmatprep.mubr.msk.f32.mxu0 %vm447_vm5, %v2721_v34 }
 0x119   : > { %3030 = vmatmul.mubr.msk.f32.vlgmr.msra.gmra.mrb[10].mxu1 %vm447_vm5, %v2707_v35 }
 0x11a   : > { %3052 = vmatmul.mubr.msk.f32.gmra.mrb[6].mxu0 %vm447_vm5, %v2722_v36  ;;  %3032 = vmatprep.mubr.msk.f32.mxu1 %vm3562_vm0, %v3563_v4 }
 0x11b   : > { %3054 = vmatprep.mubr.msk.f32.mxu0 %vm447_vm5, %v2723_v37 }
 0x11d   : > { %3033 = vmatmul.mubr.msk.f32.gmra.mrb[12].mxu1 %vm447_vm5, %v2708_v38 }
 0x11e   : > { %3055 = vmatmul.mubr.msk.f32.gmra.mrb[8].mxu0 %vm447_vm5, %v2724_v39  ;;  %3035 = vmatprep.mubr.msk.f32.mxu1 %vm3562_vm0, %v3563_v4 }
 0x11f   : > { %3057 = vmatprep.mubr.msk.f32.mxu0 %vm447_vm5, %v2725_v40 }
 0x121   : > { %3036 = vmatmul.mubr.msk.f32.gmra.mrb[14].mxu1 %vm447_vm5, %v2709_v41 }
 0x122   : > { %3058 = vmatmul.mubr.msk.f32.gmra.mrb[10].mxu0 %vm447_vm5, %v2726_v42  ;;  %3038 = vmatprep.mubr.msk.f32.mxu1 %vm3562_vm0, %v3563_v4 }
 0x125   : > { %3039 = vmatmul.mubr.msk.f32.gmra.mrb[16].mxu1 %vm447_vm5, %v2710_v43 }
 0x126   : > { %3041 = vmatprep.mubr.msk.f32.mxu1 %vm3562_vm0, %v3563_v4 }
 0x129   : > { %3042 = vmatmul.mubr.msk.f32.gmra.mrb[18].mxu1 %vm447_vm5, %v2711_v44 }
 0x190   : > { %v529_v45 = vpop.f32.mrb[0].mxu1 }
 0x191   : > { %v2850_v46 = vpop.f32.mrb[1].mxu1 }
 0x194   : > { %v534_v47 = vpop.f32.mrb[2].mxu1 }
 0x195   : > { %v2853_v48 = vpop.f32.mrb[3].mxu1 }
 0x1a4   : > { %v644_v49 = vpop.f32.mrb[4].mxu1 }
 0x1a5   : > { %v2875_v50 = vpop.f32.mrb[5].mxu1 }
 0x1a8   : > { %v649_v51 = vpop.f32.mrb[6].mxu1 }
 0x1a9   : > { %v2878_v52 = vpop.f32.mrb[7].mxu1 }
 0x1ac   : > { %v654_v53 = vpop.f32.mrb[8].mxu1 }
 0x1ad   : > { %v2881_v54 = vpop.f32.mrb[9].mxu1 }
 0x1d5   : > { %v1624_v55 = vpop.f32.mrb[0].mxu0 }
 0x1d6   : > { %v4173_v56 = vadd.f32 %v1624_v55, %v529_v45  ;;  %v3012_v57 = vpop.f32.mrb[1].mxu0 }
 0x1d8   : > { %v1915_v13 = vmul.f32 %v4173_v56, %v4173_v56  ;;  %v4192_v14 = vand.u32 2147483647, %v4173_v56 }
 0x1d9   : > { %v1629_v58 = vpop.f32.mrb[2].mxu0 }
 0x1da   : > { %v4175_v59 = vadd.f32 %v1629_v58, %v534_v47  ;;  %v3015_v60 = vpop.f32.mrb[3].mxu0 }
 0x1dc   : > { %v1916_v23 = vmul.f32 %v4175_v59, %v4175_v59  ;;  %v4215_v26 = vand.u32 2147483647, %v4175_v59 }
 0x1dd   : > { %v1634_v61 = vpop.f32.mrb[12].mxu0 }
 0x1de   : > { %v4177_v62 = vadd.f32 %v1634_v61, %v644_v49  ;;  %v3018_v63 = vpop.f32.mrb[13].mxu0 }
 0x1e0   : > { %v1917_v29 = vmul.f32 %v4177_v62, %v4177_v62  ;;  %v4235_v35 = vand.u32 2147483647, %v4177_v62 }
 0x1e1   : > { %v1639_v0 = vpop.f32.mrb[14].mxu0 }
 0x1e2   : > { %v4179_v1 = vadd.f32 %v1639_v0, %v649_v51  ;;  %v3021_v2 = vpop.f32.mrb[15].mxu0 }
 0x1e4   : > { %v1918_v46 = vmul.f32 %v4179_v1, %v4179_v1  ;;  %v4258_v47 = vand.u32 2147483647, %v4179_v1 }
 0x1e5   : > { %v1644_v6 = vpop.f32.mrb[16].mxu0 }
 0x1e6   : > { %v4181_v7 = vadd.f32 %v1644_v6, %v654_v53  ;;  %v3024_v8 = vpop.f32.mrb[17].mxu0 }
 0x1e8   : > { %v1919_v52 = vmul.f32 %v4181_v7, %v4181_v7  ;;  %v4289_v6 = vand.u32 2147483647, %v4181_v7 }
 0x1e9   : > { %v4183_v9 = vpop.f32.mrb[4].mxu0 }
 0x1ea   : > { %v4185_v10 = vpop.f32.mrb[5].mxu0 }
 0x1ec   : > { %v4187_v12 = vpop.f32.mrb[10].mxu1 }
 0x1ed   : > { %v1920_v15 = vmul.f32 %v4187_v12, %v4187_v12  ;;  %v4197_v16 = vand.u32 2147483647, %v4187_v12  ;;  %v3031_v17 = vpop.f32.mrb[11].mxu1  ;;  %v3053_v18 = vpop.f32.mrb[6].mxu0 }
 0x1ee   : > { %2237 = vrot.lane.b32.xlu0 %v3053_v18, %s3568_s13  ;;  %v1878_v3 = vpop.f32.mrb[7].mxu0 }
 0x1ef   : > { %v4200_v19 = vadd.f32 %v1920_v15, %v1915_v13  ;;  %v1980_v20 = vmin.f32 %v4192_v14, %v4197_v16  ;;  %v1985_v21 = vmax.f32 %v4192_v14, %v4197_v16  ;;  %vm2185_vm7 = vcmp.gt.f32.partialorder %v4197_v16, %v4192_v14  ;;  %2235 = vrot.lane.b32.xlu1 %v1878_v3, %s3568_s13  ;;  %s3570_s13 = smov [#allocation3]  }
 0x1f0   : > { %v4209_v22 = vpop.f32.mrb[12].mxu1 }
 0x1f1   : > { %3313 = vrsqrt.f32 %v4200_v19  ;;  %v3034_v24 = vpop.f32.mrb[13].mxu1  ;;  %v3056_v25 = vpop.f32.mrb[8].mxu0  ;;  %vm1990_vm8 = vcmp.gt.f32.partialorder %v1985_v21, 0.0  ;;  %v1921_v27 = vmul.f32 %v4209_v22, %v4209_v22  ;;  %v4220_v11 = vand.u32 2147483647, %v4209_v22 }
 0x1f2   : > { %v1888_v28 = vpop.f32.mrb[9].mxu0  ;;  %v1995_v30 = vsel %vm1990_vm8, %v1985_v21, 1.0  ;;  %vm1932_vm13 = vcmp.eq.f32.partialorder %v4200_v19, inf  ;;  %v1935_v53 = vand.u32 2147483648, %v4200_v19  ;;  %vm1934_vm15 = vcmp.eq.f32.partialorder %v4200_v19, 0.0 }
 0x1f3   : > { %2251 = vrot.lane.b32.xlu1 %v3056_v25, %s3567_s23  ;;  %2249 = vrot.lane.b32.xlu0 %v1888_v28, %s3567_s23  ;;  %3315 = vrcp.f32 %v1995_v30  ;;  %v4226_v31 = vadd.f32 %v1921_v27, %v1916_v23  ;;  %v1981_v32 = vmin.f32 %v4215_v26, %v4220_v11  ;;  %v1986_v33 = vmax.f32 %v4215_v26, %v4220_v11  ;;  %s3373_s23 = scalar_lea.vmem %s4369_s21, 640 }
 0x1f4   : > { %v4232_v34 = vpop.f32.mrb[14].mxu1  ;;  %vm2186_vm9 = vcmp.gt.f32.partialorder %v4220_v11, %v4215_v26  ;;  %p3374_p3 = scmp.ne.s32.totalorder %s4369_s21, %s3373_s23 }
 0x1f5   : > { %v1922_v36 = vmul.f32 %v4232_v34, %v4232_v34  ;;  %v4242_v37 = vand.u32 2147483647, %v4232_v34  ;;  %v3037_v38 = vpop.f32.mrb[15].mxu1  ;;  %v3059_v39 = vpop.f32.mrb[10].mxu0  ;;  %3317 = vrsqrt.f32 %v4226_v31  ;;  %vm1991_vm10 = vcmp.gt.f32.partialorder %v1986_v33, 0.0 }
 0x1f6   : > { %v1898_v40 = vpop.f32.mrb[11].mxu0  ;;  %v1996_v44 = vsel %vm1991_vm10, %v1986_v33, 1.0  ;;  %vm1939_vm2 = vcmp.eq.f32.partialorder %v4226_v31, inf  ;;  %v1942_v24 = vand.u32 2147483648, %v4226_v31  ;;  %vm1941_vm5 = vcmp.eq.f32.partialorder %v4226_v31, 0.0  ;;  %p3375_p4 = pnand %p3374_p3, %p3681_p8 }
 0x1f7   : > { %v4245_v41 = vadd.f32 %v1922_v36, %v1917_v29  ;;  %v1982_v42 = vmin.f32 %v4235_v35, %v4242_v37  ;;  %v1987_v43 = vmax.f32 %v4235_v35, %v4242_v37  ;;  %2265 = vrot.lane.b32.xlu0 %v3059_v39, %s3569_s17  ;;  %2263 = vrot.lane.b32.xlu1 %v1898_v40, %s3569_s17  ;;  %3319 = vrcp.f32 %v1996_v44 }
 0x1f8   : > { %vm2187_vm11 = vcmp.gt.f32.partialorder %v4242_v37, %v4235_v35  ;;  %v4253_v45 = vpop.f32.mrb[16].mxu1  ;;  %p3376_p5 = pneg %p3375_p4 }
 0x1f9   : > { %v3040_v48 = vpop.f32.mrb[17].mxu1  ;;  %3321 = vrsqrt.f32 %v4245_v41  ;;  %vm1992_vm12 = vcmp.gt.f32.partialorder %v1987_v43, 0.0  ;;  %v1923_v49 = vmul.f32 %v4253_v45, %v4253_v45  ;;  %v4265_v50 = vand.u32 2147483647, %v4253_v45 }
 0x1fa   : > { %v1997_v54 = vsel %vm1992_vm12, %v1987_v43, 1.0  ;;  %vm1946_vm10 = vcmp.eq.f32.partialorder %v4245_v41, inf  ;;  %vm1948_vm12 = vcmp.eq.f32.partialorder %v4245_v41, 0.0 }
 0x1fb   : > { %v3314_v51 = vpop.eup %3313  ;;  %2267 = vrot.lane.b32.xlu1 %v3563_v4, %s3569_s17  ;;  %3323 = vrcp.f32 %v1997_v54  ;;  %v4273_v57 = vadd.f32 %v1923_v49, %v1918_v46  ;;  %v1983_v58 = vmin.f32 %v4258_v47, %v4265_v50  ;;  %v1988_v61 = vmax.f32 %v4258_v47, %v4265_v50  ;;  %s4386_s17 = scalar_lea.hbm %s4757_s4, %s4734_s22  ;;  %s3377_s22 = sshll.u32 %s3570_s13, 4  ;;  %s3378_s22 = int_to_ptr.vmem [resolvable:$false] %s3377_s22 }
 0x1fc   : > { %v1931_v55 = vmul.f32 %v3314_v51, %v4200_v19  ;;  %v4277_v60 = vpop.f32.mrb[18].mxu1  ;;  %vm2188_vm14 = vcmp.gt.f32.partialorder %v4265_v50, %v4258_v47  ;;  %s3379_s18 = scalar_lea.vmem %s3378_s22, 1280  ;;  %p3380_p6 = scmp.lt.s32.totalorder %s4369_s21, %s3378_s22 }
 0x1fd   : > { %v1924_v4 = vmul.f32 %v4277_v60, %v4277_v60  ;;  %v4286_v63 = vand.u32 2147483647, %v4277_v60  ;;  %v3043_v0 = vpop.f32.mrb[19].mxu1  ;;  %v3316_v2 = vpop.eup %3315  ;;  %3325 = vrsqrt.f32 %v4273_v57  ;;  %vm1993_vm0 = vcmp.gt.f32.partialorder %v1988_v61, 0.0  ;;  %p3381_p7 = scmp.lt.s32.totalorder %s3379_s18, %s3373_s23 }
 0x1fe   : > { %v1933_v8 = vsel %vm1932_vm13, %v4200_v19, %v1931_v55  ;;  %v4299_v15 = vmul.f32 %v3316_v2, %v1980_v20  ;;  %v1998_v18 = vsel %vm1993_vm0, %v1988_v61, 1.0  ;;  %vm1953_vm13 = vcmp.eq.f32.partialorder %v4273_v57, inf }
 0x1ff   : > { %v1936_v13 = vsel %vm1934_vm15, %v1935_v53, %v1933_v8  ;;  %v3318_v17 = vpop.eup %3317  ;;  %v4306_v3 = vadd.f32 %v1924_v4, %v1919_v52  ;;  %v1984_v19 = vmin.f32 %v4289_v6, %v4286_v63  ;;  %v1989_v21 = vmax.f32 %v4289_v6, %v4286_v63  ;;  %p3382_p10 = por %p3381_p7, %p3380_p6 }
 0x200   : > { %1965 = vst [vmem:[%s4303_s12] sm:$0xff] %v1936_v13  ;;  %v2010_v20 = vmul.f32 %v4299_v15, %v4299_v15  ;;  %v1938_v23 = vmul.f32 %v3318_v17, %v4226_v31  ;;  %3327 = vrcp.f32 %v1998_v18  ;;  %vm2189_vm1 = vcmp.gt.f32.partialorder %v4286_v63, %v4289_v6 }
 0x201   : > { %3329 = vrsqrt.f32 %v4306_v3  ;;  %v3320_v25 = vpop.eup %3319  ;;  %vm1994_vm8 = vcmp.gt.f32.partialorder %v1989_v21, 0.0  ;;  %vm1955_vm15 = vcmp.eq.f32.partialorder %v4273_v57, 0.0  ;;  %vm1960_vm0 = vcmp.eq.f32.partialorder %v4306_v3, inf  ;;  %p3383_p11 = pnand %p3382_p10, %p3376_p5 }
 0x202   : > { %v4320_v27 = vadd.f32 1.0, %v2010_v20  ;;  %v1940_v28 = vsel %vm1939_vm2, %v4226_v31, %v1938_v23  ;;  %v4327_v33 = vmul.f32 %v3320_v25, %v1981_v32  ;;  %v1999_v36 = vsel %vm1994_vm8, %v1989_v21, 1.0 }
 0x203   : > { %v3322_v29 = vpop.eup %3321  ;;  %v1943_v30 = vsel %vm1941_vm5, %v1942_v24, %v1940_v28  ;;  %v1949_v31 = vand.u32 2147483648, %v4245_v41  ;;  %v1963_v2 = vand.u32 2147483648, %v4306_v3  ;;  %vm1962_vm2 = vcmp.eq.f32.partialorder %v4306_v3, 0.0 }
 0x204   : > { %3331 = vrsqrt.f32 %v4320_v27  ;;  %1966 = vst [vmem:[%s4303_s12 + $0x8] sm:$0xff] %v1943_v30  ;;  %v2011_v39 = vmul.f32 %v4327_v33, %v4327_v33  ;;  %v1945_v40 = vmul.f32 %v3322_v29, %v4245_v41  ;;  %vm2022_vm5 = vcmp.eq.f32.partialorder %v4320_v27, inf }
 0x205   : > { %v3324_v38 = vpop.eup %3323  ;;  %3333 = vrcp.f32 %v1999_v36  ;;  %v2025_v18 = vand.u32 2147483648, %v4320_v27  ;;  %vm2024_vm8 = vcmp.eq.f32.partialorder %v4320_v27, 0.0 }
 0x206   : > { %v4340_v32 = vmul.f32 %v3324_v38, %v1982_v42  ;;  %v4342_v44 = vadd.f32 1.0, %v2011_v39  ;;  %v1947_v46 = vsel %vm1946_vm10, %v4245_v41, %v1945_v40  ;;  %v1956_v42 = vand.u32 2147483648, %v4273_v57 }
 0x207   : > { %v3326_v43 = vpop.eup %3325  ;;  %v1950_v48 = vsel %vm1948_vm12, %v1949_v31, %v1947_v46 }
 0x208   : > { %v2012_v49 = vmul.f32 %v4340_v32, %v4340_v32  ;;  %v1952_v51 = vmul.f32 %v3326_v43, %v4273_v57  ;;  %3335 = vrsqrt.f32 %v4342_v44  ;;  %1967 = vst [vmem:[%s4303_s12 + $0x10] sm:$0xff] %v1950_v48 }
 0x20a   : > { %v3328_v52 = vpop.eup %3327  ;;  %v4357_v41 = vadd.f32 1.0, %v2012_v49  ;;  %v1954_v53 = vsel %vm1953_vm13, %v4273_v57, %v1952_v51 }
 0x20b   : > { %v3330_v54 = vpop.eup %3329  ;;  %v1957_v55 = vsel %vm1955_vm15, %v1956_v42, %v1954_v53  ;;  %v4364_v61 = vmul.f32 %v3328_v52, %v1983_v58 }
 0x20c   : > { %3337 = vrsqrt.f32 %v4357_v41  ;;  %1968 = vst [vmem:[%s4303_s12 + $0x18] sm:$0xff] %v1957_v55  ;;  %v1959_v0 = vmul.f32 %v3330_v54, %v4306_v3 }
 0x20d   : > { %v2013_v4 = vmul.f32 %v4364_v61, %v4364_v61 }
 0x20e   : > { %v3332_v57 = vpop.eup %3331  ;;  %v1961_v17 = vsel %vm1960_vm0, %v4306_v3, %v1959_v0 }
 0x20f   : > { %v3334_v8 = vpop.eup %3333  ;;  %v2021_v58 = vmul.f32 %v3332_v57, %v4320_v27  ;;  %v4377_v13 = vadd.f32 1.0, %v2013_v4  ;;  %v1964_v21 = vsel %vm1962_vm2, %v1963_v2, %v1961_v17 }
 0x210   : > { %v4393_v20 = vmul.f32 %v3334_v8, %v1984_v19  ;;  %1969 = vst [vmem:[%s4303_s12 + $0x20] sm:$0xff] %v1964_v21 }
 0x211   : > { %v2023_v23 = vsel %vm2022_vm5, %v4320_v27, %v2021_v58  ;;  %3339 = vrsqrt.f32 %v4377_v13 }
 0x212   : > { %v2026_v3 = vsel %vm2024_vm8, %v2025_v18, %v2023_v23  ;;  %v2014_v24 = vmul.f32 %v4393_v20, %v4393_v20 }
 0x213   : > { %3386 = shalt.err (!%p3383_p11)
}
 0x214   : > { %s3387_s12 = scalar_lea.hbm %s4386_s17, 640  ;;  %s3391_s13 = scalar_lea.hbm %s4757_s4, 2560 }
 0x215   : > { %p3388_p12 = scmp.ne.s32.totalorder %s4386_s17, %s3387_s12  ;;  %p3392_p1 = scmp.lt.u32.totalorder %s4386_s17, %s4757_s4 }
 0x216   : > { %p3393_p2 = scmp.lt.u32.totalorder %s3391_s13, %s3387_s12  ;;  %p3395_p4 = scmp.lt.u32.totalorder %s3387_s12, %s4386_s17 }
 0x217   : > { %p3389_p13 = pnand %p3388_p12, %p3681_p8 }
 0x218   : > { %p3394_p3 = por %p3393_p2, %p3392_p1 }
 0x219   : > { %p3390_p0 = pneg %p3389_p13 }
 0x21a   : > { %p3396_p5 = por %p3395_p4, %p3394_p3 }
 0x21c   : > { %p3397_p6 = pnand %p3396_p5, %p3390_p0 }
 0x21e   : > { %3400 = shalt.err (!%p3397_p6)
}
 0x21f   : > { %s4738_s18 = smov 128   ;;  %s4736_s23 = smov 256   ;;  %v3336_v19 = vpop.eup %3335  ;;  %v2055_v25 = vadd.f32 1.0, %v2026_v3  ;;  %v2019_v28 = vadd.f32 1.0, %v2014_v24  ;;  %vm2029_vm10 = vcmp.eq.f32.partialorder %v4342_v44, inf  ;;  %v2032_v29 = vand.u32 2147483648, %v4342_v44 }
 0x220   : > { %s4740_s2 = smov 8   ;;  %s4758_s0 = scalar_lea.sflag [#allocation4], %s3707_s10  ;;  %v2028_v27 = vmul.f32 %v3336_v19, %v4342_v44  ;;  %v3338_v30 = vpop.eup %3337  ;;  %vm2031_vm12 = vcmp.eq.f32.partialorder %v4342_v44, 0.0  ;;  %vm2036_vm13 = vcmp.eq.f32.partialorder %v4357_v41, inf  ;;  %v2039_v31 = vand.u32 2147483648, %v4357_v41 }
 0x221   : > { %3200 = dma.vmem_to_hbm [thread:$0]  (%p3681_p8), %s4369_s21, 640, %s4386_s17, %s4758_s0, %s4738_s18, %s4736_s23, %s4740_s2   ;;  %3341 = vrcp.f32 %v2055_v25  ;;  %v2035_v39 = vmul.f32 %v3338_v30, %v4357_v41  ;;  %vm2038_vm15 = vcmp.eq.f32.partialorder %v4357_v41, 0.0  ;;  %v3340_v48 = vpop.eup %3339  ;;  %vm2043_vm0 = vcmp.eq.f32.partialorder %v4377_v13, inf }
 0x222   : > { %v2030_v36 = vsel %vm2029_vm10, %v4342_v44, %v2028_v27  ;;  %3343 = vrsqrt.f32 %v2019_v28  ;;  %v2042_v51 = vmul.f32 %v3340_v48, %v4377_v13  ;;  %v2046_v44 = vand.u32 2147483648, %v4377_v13  ;;  %s4759_s1 = smul.u32 40, %s3707_s10  ;;  %s2741_s17 = sshll.u32 %s3547_s28, 2 }
 0x223   : > { %v2033_v38 = vsel %vm2031_vm12, %v2032_v29, %v2030_v36  ;;  %v2037_v43 = vsel %vm2036_vm13, %v4357_v41, %v2035_v39  ;;  %vm2045_vm2 = vcmp.eq.f32.partialorder %v4377_v13, 0.0  ;;  %vm2050_vm5 = vcmp.eq.f32.partialorder %v2019_v28, inf  ;;  %s2743_s14 = sshll.u32 %s3543_s27, 1  ;;  %s4542_s22 = scalar_lea.vmem [#allocation8], %s3711_s9 }
 0x224   : > { %v2056_v40 = vadd.f32 1.0, %v2033_v38  ;;  %v2040_v46 = vsel %vm2038_vm15, %v2039_v31, %v2037_v43  ;;  %v2044_v42 = vsel %vm2043_vm0, %v4377_v13, %v2042_v51  ;;  %v2053_v57 = vand.u32 2147483648, %v2019_v28  ;;  %s4492_s21 = scalar_lea.vmem [#allocation5], %s4759_s1  ;;  %s4522_s13 = sadd.s32 %s2743_s14, %s2741_s17 }
 0x225   : > { %v2057_v49 = vadd.f32 1.0, %v2040_v46  ;;  %v2047_v53 = vsel %vm2045_vm2, %v2046_v44, %v2044_v42  ;;  %vm2052_vm8 = vcmp.eq.f32.partialorder %v2019_v28, 0.0  ;;  %s2328_s12 = sshll.u32 %s4492_s21, 4  ;;  %s2363_s0 = sshll.u32 %s4542_s22, 4  ;;  %s4545_s12 = int_to_ptr.vmem [resolvable:$true] %s2328_s12  ;;  %s4560_s0 = int_to_ptr.vmem [resolvable:$true] %s2363_s0 }
 0x226   : > { %3345 = vrcp.f32 %v2056_v40  ;;  %v2058_v55 = vadd.f32 1.0, %v2047_v53  ;;  %s2745_s1 = sshll.u32 %s4522_s13, 7  ;;  %s4558_s14 = sadd.s32 %s3543_s27, %s2741_s17 }
 0x227   : > { %3347 = vrcp.f32 %v2057_v49  ;;  %s4760_s13 = sadd.s32 4294967295, %s3559_s8   ;;  %s4578_s17 = scalar_lea.hbm %s4730_s7, %s2745_s1 }
 0x228   : > { %3349 = vrcp.f32 %v2058_v55  ;;  %s4568_s23 = sand.u32 1, %s4760_s13   ;;  %s4583_s13 = scalar_lea.vmem [#allocation7], %s3711_s9 }
 0x229   : > { %s4761_s1 = sshll.u32 %s4354_s19, 7  ;;  %s2297_s9 = scalar_lea.sflag [#allocation9], %s3707_s10 }
 0x22a   : > { %s4594_s3 = scalar_lea.hbm %s4728_s5, %s4761_s1  ;;  %s3401_s4 = scalar_lea.vmem %s4560_s0, 256 }
 0x22b   : > { %v3342_v52 = vpop.eup %3341  ;;  %p3402_p7 = scmp.ne.s32.totalorder %s4560_s0, %s3401_s4  ;;  %s3574_s2 = smov [#allocation8]  }
 0x22c   : > { %v3344_v54 = vpop.eup %3343  ;;  %v4444_v41 = vmul.f32 %v3342_v52, %v4299_v15  ;;  %s3405_s18 = sshll.u32 %s3574_s2, 4  ;;  %s3406_s18 = int_to_ptr.vmem [resolvable:$false] %s3405_s18 }
 0x22d   : > { %v2049_v4 = vmul.f32 %v3344_v54, %v2019_v28  ;;  %p3403_p10 = pnand %p3402_p7, %p3681_p8  ;;  %p3408_p12 = scmp.lt.s32.totalorder %s4560_s0, %s3406_s18 }
 0x22e   : > { %v2070_v0 = vmul.f32 %v4444_v41, %v4444_v41 }
 0x22f   : > { %v2051_v2 = vsel %vm2050_vm5, %v2019_v28, %v2049_v4  ;;  %p3404_p11 = pneg %p3403_p10 }
 0x230   : > { %v3346_v8 = vpop.eup %3345  ;;  %v2075_v58 = vadd.f32 1.0, %v2070_v0  ;;  %v2054_v17 = vsel %vm2052_vm8, %v2053_v57, %v2051_v2 }
 0x231   : > { %v4449_v13 = vmul.f32 %v3346_v8, %v4327_v33  ;;  %v2059_v18 = vadd.f32 1.0, %v2054_v17  ;;  %v3348_v15 = vpop.eup %3347 }
 0x232   : > { %3351 = vrsqrt.f32 %v2075_v58  ;;  %v4454_v23 = vmul.f32 %v3348_v15, %v4340_v32  ;;  %v3350_v19 = vpop.eup %3349  ;;  %vm2082_vm10 = vcmp.eq.f32.partialorder %v2075_v58, inf  ;;  %v2085_v32 = vand.u32 2147483648, %v2075_v58 }
 0x233   : > { %v2071_v21 = vmul.f32 %v4449_v13, %v4449_v13  ;;  %3353 = vrcp.f32 %v2059_v18  ;;  %v4459_v33 = vmul.f32 %v3350_v19, %v4364_v61  ;;  %vm2084_vm12 = vcmp.eq.f32.partialorder %v2075_v58, 0.0 }
 0x234   : > { %v2072_v24 = vmul.f32 %v4454_v23, %v4454_v23 }
 0x235   : > { %v2076_v3 = vadd.f32 1.0, %v2071_v21  ;;  %v2073_v27 = vmul.f32 %v4459_v33, %v4459_v33 }
 0x236   : > { %v2077_v25 = vadd.f32 1.0, %v2072_v24 }
 0x237   : > { %3355 = vrsqrt.f32 %v2076_v3  ;;  %v2078_v36 = vadd.f32 1.0, %v2073_v27  ;;  %vm2089_vm13 = vcmp.eq.f32.partialorder %v2076_v3, inf  ;;  %v2092_v49 = vand.u32 2147483648, %v2076_v3 }
 0x238   : > { %3357 = vrsqrt.f32 %v2077_v25  ;;  %vm2091_vm15 = vcmp.eq.f32.partialorder %v2076_v3, 0.0  ;;  %vm2096_vm0 = vcmp.eq.f32.partialorder %v2077_v25, inf  ;;  %v2099_v53 = vand.u32 2147483648, %v2077_v25 }
 0x239   : > { %3359 = vrsqrt.f32 %v2078_v36  ;;  %vm2098_vm2 = vcmp.eq.f32.partialorder %v2077_v25, 0.0  ;;  %vm2103_vm5 = vcmp.eq.f32.partialorder %v2078_v36, inf  ;;  %v2106_v2 = vand.u32 2147483648, %v2078_v36 }
 0x23a   : > { %vm2105_vm8 = vcmp.eq.f32.partialorder %v2078_v36, 0.0 }
 0x23c   : > { %v3352_v28 = vpop.eup %3351 }
 0x23d   : > { %v3354_v29 = vpop.eup %3353  ;;  %v2081_v30 = vmul.f32 %v3352_v28, %v2075_v58 }
 0x23e   : > { %v4464_v38 = vmul.f32 %v3354_v29, %v4393_v20 }
 0x23f   : > { %v2083_v39 = vsel %vm2082_vm10, %v2075_v58, %v2081_v30 }
 0x240   : > { %v2086_v40 = vsel %vm2084_vm12, %v2085_v32, %v2083_v39  ;;  %v2074_v61 = vmul.f32 %v4464_v38, %v4464_v38 }
 0x241   : > { %v3356_v31 = vpop.eup %3355  ;;  %v2115_v43 = vadd.f32 1.0, %v2086_v40 }
 0x242   : > { %v2088_v46 = vmul.f32 %v3356_v31, %v2076_v3  ;;  %v2079_v48 = vadd.f32 1.0, %v2074_v61  ;;  %v3358_v51 = vpop.eup %3357 }
 0x243   : > { %3361 = vrcp.f32 %v2115_v43  ;;  %v2095_v42 = vmul.f32 %v3358_v51, %v2077_v25  ;;  %v3360_v4 = vpop.eup %3359 }
 0x244   : > { %v2090_v44 = vsel %vm2089_vm13, %v2076_v3, %v2088_v46  ;;  %3363 = vrsqrt.f32 %v2079_v48  ;;  %v2102_v57 = vmul.f32 %v3360_v4, %v2078_v36  ;;  %vm2110_vm10 = vcmp.eq.f32.partialorder %v2079_v48, inf }
 0x245   : > { %v2093_v20 = vsel %vm2091_vm15, %v2092_v49, %v2090_v44  ;;  %v2097_v54 = vsel %vm2096_vm0, %v2077_v25, %v2095_v42  ;;  %v2113_v19 = vand.u32 2147483648, %v2079_v48  ;;  %vm2112_vm12 = vcmp.eq.f32.partialorder %v2079_v48, 0.0 }
 0x246   : > { %v2116_v52 = vadd.f32 1.0, %v2093_v20  ;;  %v2100_v55 = vsel %vm2098_vm2, %v2099_v53, %v2097_v54  ;;  %v2104_v8 = vsel %vm2103_vm5, %v2078_v36, %v2102_v57  ;;  %vm2200_vm13 = vcmp.lt.f32.partialorder %v4173_v56, 0.0 }
 0x247   : > { %v2117_v0 = vadd.f32 1.0, %v2100_v55  ;;  %v2107_v17 = vsel %vm2105_vm8, %v2106_v2, %v2104_v8  ;;  %vm2201_vm15 = vcmp.lt.f32.partialorder %v4175_v59, 0.0  ;;  %vm2216_vm0 = vcmp.lt.f32.partialorder %v4209_v22, 0.0 }
 0x248   : > { %3365 = vrcp.f32 %v2116_v52  ;;  %v2118_v21 = vadd.f32 1.0, %v2107_v17  ;;  %vm2203_vm2 = vcmp.lt.f32.partialorder %v4179_v1, 0.0  ;;  %vm2217_vm5 = vcmp.lt.f32.partialorder %v4232_v34, 0.0 }
 0x249   : > { %3367 = vrcp.f32 %v2117_v0 }
 0x24a   : > { %3369 = vrcp.f32 %v2118_v21 }
 0x24d   : > { %v3362_v58 = vpop.eup %3361 }
 0x24e   : > { %v3364_v18 = vpop.eup %3363  ;;  %v2121_v15 = vmul.f32 %v3362_v58, %v4444_v41 }
 0x24f   : > { %v2109_v3 = vmul.f32 %v3364_v18, %v2079_v48 }
 0x250   : > { %v2130_v24 = vmul.f32 %v2121_v15, %v2121_v15 }
 0x251   : > { %v2111_v25 = vsel %vm2110_vm10, %v2079_v48, %v2109_v3 }
 0x252   : > { %v3366_v27 = vpop.eup %3365  ;;  %v2140_v28 = vmul.f32 0.11111111, %v2130_v24  ;;  %v2114_v29 = vsel %vm2112_vm12, %v2113_v19, %v2111_v25 }
 0x253   : > { %v2123_v30 = vmul.f32 %v3366_v27, %v4449_v13  ;;  %v2119_v32 = vadd.f32 1.0, %v2114_v29  ;;  %v3368_v39 = vpop.eup %3367 }
 0x254   : > { %v2145_v36 = vadd.f32 -0.14285715, %v2140_v28  ;;  %v2125_v41 = vmul.f32 %v3368_v39, %v4454_v23  ;;  %v3370_v51 = vpop.eup %3369  ;;  %v2135_v23 = vmul.f32 4.0, %v2121_v15 }
 0x255   : > { %v2131_v40 = vmul.f32 %v2123_v30, %v2123_v30  ;;  %3371 = vrcp.f32 %v2119_v32  ;;  %v2127_v42 = vmul.f32 %v3370_v51, %v4459_v33  ;;  %v2136_v32 = vmul.f32 4.0, %v2123_v30 }
 0x256   : > { %v2150_v61 = vmul.f32 %v2145_v36, %v2130_v24  ;;  %v2132_v46 = vmul.f32 %v2125_v41, %v2125_v41 }
 0x257   : > { %v2141_v31 = vmul.f32 0.11111111, %v2131_v40  ;;  %v2133_v54 = vmul.f32 %v2127_v42, %v2127_v42 }
 0x258   : > { %v2155_v43 = vadd.f32 0.2, %v2150_v61  ;;  %v2142_v48 = vmul.f32 0.11111111, %v2132_v46 }
 0x259   : > { %v2146_v49 = vadd.f32 -0.14285715, %v2141_v31  ;;  %v2143_v2 = vmul.f32 0.11111111, %v2133_v54  ;;  %v4480_v31 = vpop.permute.xlu0 %2253 }
 0x25a   : > { %v2160_v44 = vmul.f32 %v2155_v43, %v2130_v24  ;;  %v2147_v13 = vadd.f32 -0.14285715, %v2142_v48  ;;  %v4482_v43 = vpop.permute.xlu1 %2239 }
 0x25b   : > { %v2151_v20 = vmul.f32 %v2146_v49, %v2131_v40  ;;  %v2148_v21 = vadd.f32 -0.14285715, %v2143_v2 }
 0x25c   : > { %v2165_v52 = vadd.f32 -0.33333334, %v2160_v44  ;;  %v2152_v4 = vmul.f32 %v2147_v13, %v2132_v46  ;;  %v2137_v44 = vmul.f32 4.0, %v2125_v41 }
 0x25d   : > { %v2156_v53 = vadd.f32 0.2, %v2151_v20  ;;  %v2153_v27 = vmul.f32 %v2148_v21, %v2133_v54 }
 0x25e   : > { %v2170_v55 = vmul.f32 %v2165_v52, %v2130_v24  ;;  %v2157_v58 = vadd.f32 0.2, %v2152_v4 }
 0x25f   : > { %v3372_v0 = vpop.eup %3371  ;;  %v2161_v57 = vmul.f32 %v2156_v53, %v2131_v40  ;;  %v2158_v15 = vadd.f32 0.2, %v2153_v27 }
 0x260   : > { %v2175_v8 = vadd.f32 1.0, %v2170_v55  ;;  %v4473_v17 = vmul.f32 %v3372_v0, %v4464_v38  ;;  %v2162_v19 = vmul.f32 %v2157_v58, %v2132_v46 }
 0x261   : > { %v2166_v18 = vadd.f32 -0.33333334, %v2161_v57  ;;  %v2238_v57 = vpop.permute.xlu0 %2237  ;;  %v2236_v2 = vpop.permute.xlu1 %2235 }
 0x262   : > { %v2180_v3 = vmul.f32 %v2175_v8, %v2135_v23  ;;  %v2134_v33 = vmul.f32 %v4473_v17, %v4473_v17  ;;  %v2167_v28 = vadd.f32 -0.33333334, %v2162_v19  ;;  %v2138_v23 = vmul.f32 4.0, %v2127_v42 }
 0x263   : > { %v2171_v25 = vmul.f32 %v2166_v18, %v2131_v40  ;;  %v2163_v40 = vmul.f32 %v2158_v15, %v2133_v54  ;;  %v2243_v27 = vsel %vm432_vm3, %v4482_v43, %v2236_v2  ;;  %v2242_v47 = vsel %vm432_vm3, %v2238_v57, %v4482_v43 }
 0x264   : > { %v2190_v24 = vsub.f32 1.5707964, %v2180_v3  ;;  %v2144_v29 = vmul.f32 0.11111111, %v2134_v33  ;;  %v2172_v39 = vmul.f32 %v2167_v28, %v2132_v46  ;;  %v2241_v1 = vsel %vm432_vm3, %v2236_v2, %v4482_v43 }
 0x265   : > { %v2176_v36 = vadd.f32 1.0, %v2171_v25  ;;  %v2168_v13 = vadd.f32 -0.33333334, %v2163_v40  ;;  %v2252_v21 = vpop.permute.xlu1 %2251  ;;  %v2250_v22 = vpop.permute.xlu0 %2249  ;;  %v2244_v25 = vsel %vm432_vm3, %v4482_v43, %v2238_v57  ;;  %vm2219_vm3 = vcmp.lt.f32.partialorder %v4277_v60, 0.0 }
 0x266   : > { %v2195_v38 = vsel %vm2185_vm7, %v2190_v24, %v2180_v3  ;;  %v2149_v61 = vadd.f32 -0.14285715, %v2144_v29  ;;  %v2177_v48 = vadd.f32 1.0, %v2172_v39  ;;  %vm2215_vm7 = vcmp.lt.f32.partialorder %v4187_v12, 0.0 }
 0x267   : > { %v2205_v49 = vsub.f32 3.1415927, %v2195_v38  ;;  %v2181_v51 = vmul.f32 %v2176_v36, %v2136_v32  ;;  %v2173_v55 = vmul.f32 %v2168_v13, %v2133_v54  ;;  %v2256_v34 = vsel %vm1141_vm4, %v2252_v21, %v4480_v31 }
 0x268   : > { %v2154_v30 = vmul.f32 %v2149_v61, %v2134_v33  ;;  %v2182_v16 = vmul.f32 %v2177_v48, %v2137_v44  ;;  %v2258_v50 = vsel %vm1141_vm4, %v4480_v31, %v2252_v21  ;;  %v2255_v32 = vsel %vm1141_vm4, %v2250_v22, %v4480_v31 }
 0x269   : > { %v2210_v20 = vsel %vm2200_vm13, %v2205_v49, %v2195_v38  ;;  %v2191_v52 = vsub.f32 1.5707964, %v2181_v51  ;;  %v2178_v12 = vadd.f32 1.0, %v2173_v55  ;;  %v2264_v29 = vpop.permute.xlu1 %2263  ;;  %v2257_v36 = vsel %vm1141_vm4, %v4480_v31, %v2250_v22  ;;  %v2266_v44 = vpop.permute.xlu0 %2265 }
 0x26a   : > { %v2220_v14 = vsub.f32 0.0, %v2210_v20  ;;  %v2159_v46 = vadd.f32 0.2, %v2154_v30  ;;  %v2192_v56 = vsub.f32 1.5707964, %v2182_v16  ;;  %v2247_v39 = vadd.f32 %v4183_v9, %v2244_v25 }
 0x26b   : > { %v2196_v53 = vsel %vm2186_vm9, %v2191_v52, %v2181_v51  ;;  %v2183_v18 = vmul.f32 %v2178_v12, %v2138_v23  ;;  %vm2202_vm9 = vcmp.lt.f32.partialorder %v4177_v62, 0.0  ;;  %v2139_v62 = vmul.f32 4.0, %v4473_v17 }
 0x26c   : > { %v2225_v4 = vsel %vm2215_vm7, %v2220_v14, %v2210_v20  ;;  %v2206_v0 = vsub.f32 3.1415927, %v2196_v53  ;;  %v2164_v41 = vmul.f32 %v2159_v46, %v2134_v33  ;;  %v2197_v11 = vsel %vm2187_vm11, %v2192_v56, %v2182_v16 }
 0x26d   : > { %2230 = vst [vmem:[%s4492_s21] sm:$0xff] %v2225_v4  ;;  %v2207_v58 = vsub.f32 3.1415927, %v2197_v11  ;;  %v2193_v19 = vsub.f32 1.5707964, %v2183_v18  ;;  %vm2204_vm11 = vcmp.lt.f32.partialorder %v4181_v7, 0.0  ;;  %v2245_v61 = vadd.f32 %v2243_v27, %v4185_v10  ;;  %v2268_v48 = vpop.permute.xlu1 %2267 }
 0x26e   : > { %v2211_v26 = vsel %vm2201_vm15, %v2206_v0, %v2196_v53  ;;  %v2169_v54 = vadd.f32 -0.33333334, %v2164_v41  ;;  %v2262_v9 = vadd.f32 %v2256_v34, %v2242_v47  ;;  %v2261_v31 = vadd.f32 %v2258_v50, %v2247_v39 }
 0x26f   : > { %v2221_v8 = vsub.f32 0.0, %v2211_v26  ;;  %v2212_v3 = vsel %vm2202_vm9, %v2207_v58, %v2197_v11  ;;  %v2259_v51 = vadd.f32 %v2257_v36, %v2245_v61  ;;  %v2260_v40 = vadd.f32 %v2255_v32, %v2241_v1 }
 0x270   : > { %v2174_v59 = vmul.f32 %v2169_v54, %v2134_v33  ;;  %v2222_v35 = vsub.f32 0.0, %v2212_v3  ;;  %v2198_v33 = vsel %vm2188_vm14, %v2193_v19, %v2183_v18  ;;  %vm2218_vm14 = vcmp.lt.f32.partialorder %v4253_v45, 0.0 }
 0x271   : > { %v2226_v42 = vsel %vm2216_vm0, %v2221_v8, %v2211_v26  ;;  %v2208_v17 = vsub.f32 3.1415927, %v2198_v33  ;;  %v2269_v43 = vsel %vm1528_vm6, %v2264_v29, %v2268_v48  ;;  %v2270_v63 = vsel %vm1528_vm6, %v2266_v44, %v2268_v48 }
 0x272   : > { %2231 = vst [vmem:[%s4492_s21 + $0x8] sm:$0xff] %v2226_v42  ;;  %v2179_v37 = vadd.f32 1.0, %v2174_v59  ;;  %v2227_v24 = vsel %vm2217_vm5, %v2222_v35, %v2212_v3  ;;  %v2271_v6 = vsel %vm1528_vm6, %v2268_v48, %v2264_v29  ;;  %v2272_v20 = vsel %vm1528_vm6, %v2268_v48, %v2266_v44 }
 0x273   : > { %2232 = vst [vmem:[%s4492_s21 + $0x10] sm:$0xff] %v2227_v24  ;;  %v2213_v15 = vsel %vm2203_vm2, %v2208_v17, %v2198_v33  ;;  %v2274_v52 = vadd.f32 %v2269_v43, %v2260_v40  ;;  %v2276_v13 = vadd.f32 %v2270_v63, %v2262_v9  ;;  %v2273_v5 = vadd.f32 %v2271_v6, %v2259_v51 }
 0x274   : > { %v2184_v28 = vmul.f32 %v2179_v37, %v2139_v62  ;;  %v2223_v49 = vsub.f32 0.0, %v2213_v15  ;;  %v2275_v16 = vadd.f32 %v2272_v20, %v2261_v31 }
 0x275   : > { %2279 = vst [vmem:[%s4542_s22] sm:$0xff] %v2274_v52  ;;  %2280 = vst [vmem:[%s4542_s22 + $0x8] sm:$0xff] %v2276_v13  ;;  %s3407_s22 = scalar_lea.vmem %s3406_s18, 512 }
 0x276   : > { %v2194_v38 = vsub.f32 1.5707964, %v2184_v28  ;;  %v2228_v45 = vsel %vm2218_vm14, %v2223_v49, %v2213_v15  ;;  %2277 = vst [vmem:[%s4583_s13] sm:$0xff] %v2273_v5  ;;  %2278 = vst [vmem:[%s4583_s13 + $0x8] sm:$0xff] %v2275_v16  ;;  %p3409_p13 = scmp.lt.s32.totalorder %s3407_s22, %s3401_s4 }
 0x277   : > { %2233 = vst [vmem:[%s4492_s21 + $0x18] sm:$0xff] %v2228_v45 }
 0x278   : > { %v2199_v10 = vsel %vm2189_vm1, %v2194_v38, %v2184_v28  ;;  %p3410_p0 = por %p3409_p13, %p3408_p12 }
 0x279   : > { %v2209_v30 = vsub.f32 3.1415927, %v2199_v10 }
 0x27a   : > { %p3411_p1 = pnand %p3410_p0, %p3404_p11 }
 0x27b   : > { %v2214_v14 = vsel %vm2204_vm11, %v2209_v30, %v2199_v10 }
 0x27c   : > { %v2224_v46 = vsub.f32 0.0, %v2214_v14 }
 0x27d   : > { %3414 = shalt.err (!%p3411_p1)
}
 0x27e   : > { %s3415_s19 = scalar_lea.hbm %s4578_s17, 256  ;;  %s3419_s2 = scalar_lea.hbm %s4730_s7, 1024 }
 0x27f   : > { %p3416_p2 = scmp.ne.s32.totalorder %s4578_s17, %s3415_s19  ;;  %p3420_p5 = scmp.lt.u32.totalorder %s4578_s17, %s4730_s7 }
 0x280   : > { %p3421_p6 = scmp.lt.u32.totalorder %s3419_s2, %s3415_s19  ;;  %p3423_p10 = scmp.lt.u32.totalorder %s3415_s19, %s4578_s17 }
 0x281   : > { %p3417_p3 = pnand %p3416_p2, %p3681_p8 }
 0x282   : > { %p3422_p7 = por %p3421_p6, %p3420_p5 }
 0x283   : > { %p3418_p4 = pneg %p3417_p3 }
 0x284   : > { %p3424_p11 = por %p3423_p10, %p3422_p7 }
 0x286   : > { %p3425_p12 = pnand %p3424_p11, %p3418_p4 }
 0x288   : > { %3428 = shalt.err (!%p3425_p12)
}
 0x289   : > { %s4762_s4 = smov 8   ;;  %s4763_s22 = smov 128   ;;  %v2229_v7 = vsel %vm2219_vm3, %v2224_v46, %v2214_v14 }
 0x28a   : > { %3203 = dma.vmem_to_hbm [thread:$0]  (%p3681_p8), %s4560_s0, 256, %s4578_s17, %s2297_s9, %s4763_s22, %s4763_s22, %s4762_s4  }
 0x28b   : > { %s4764_s19 = sshll.u32 %s4583_s13, 4  ;;  %s4765_s1 = sshll.u32 %s4558_s14, 7  ;;  %2234 = vst [vmem:[%s4492_s21 + $0x20] sm:$0xff] %v2229_v7  ;;  %s4630_s19 = int_to_ptr.vmem [resolvable:$true] %s4764_s19 }
 0x28c   : > { %s4637_s2 = scalar_lea.hbm %s4729_s6, %s4765_s1  ;;  %s2287_s28 = scalar_lea.sflag [#allocation6], %s4568_s23 }
 0x28d   : > { %s3429_s18 = scalar_lea.vmem %s4545_s12, 640  ;;  %s3575_s0 = smov [#allocation5]  }
 0x28e   : > { %p3430_p13 = scmp.ne.s32.totalorder %s4545_s12, %s3429_s18  ;;  %s3433_s17 = sshll.u32 %s3575_s0, 4  ;;  %s3434_s17 = int_to_ptr.vmem [resolvable:$false] %s3433_s17 }
 0x28f   : > { %s3435_s9 = scalar_lea.vmem %s3434_s17, 1280  ;;  %p3436_p2 = scmp.lt.s32.totalorder %s4545_s12, %s3434_s17 }
 0x290   : > { %p3431_p0 = pnand %p3430_p13, %p3681_p8  ;;  %p3437_p3 = scmp.lt.s32.totalorder %s3435_s9, %s3429_s18 }
 0x292   : > { %p3432_p1 = pneg %p3431_p0  ;;  %p3438_p4 = por %p3437_p3, %p3436_p2 }
 0x294   : > { %p3439_p5 = pnand %p3438_p4, %p3432_p1 }
 0x296   : > { %3442 = shalt.err (!%p3439_p5)
}
 0x297   : > { %s3443_s21 = scalar_lea.hbm %s4594_s3, 640  ;;  %s3447_s1 = scalar_lea.hbm %s4728_s5, 2560 }
 0x298   : > { %p3444_p6 = scmp.ne.s32.totalorder %s4594_s3, %s3443_s21  ;;  %p3448_p11 = scmp.lt.u32.totalorder %s4594_s3, %s4728_s5 }
 0x299   : > { %p3449_p12 = scmp.lt.u32.totalorder %s3447_s1, %s3443_s21  ;;  %p3451_p0 = scmp.lt.u32.totalorder %s3443_s21, %s4594_s3 }
 0x29a   : > { %p3445_p7 = pnand %p3444_p6, %p3681_p8 }
 0x29b   : > { %p3450_p13 = por %p3449_p12, %p3448_p11 }
 0x29c   : > { %p3446_p10 = pneg %p3445_p7 }
 0x29d   : > { %p3452_p1 = por %p3451_p0, %p3450_p13 }
 0x29f   : > { %p3453_p2 = pnand %p3452_p1, %p3446_p10 }
 0x2a1   : > { %3456 = shalt.err (!%p3453_p2)
}
 0x2a2   : > { %s4766_s18 = smov 256   ;;  %s3457_s0 = scalar_lea.vmem %s4630_s19, 256 }
 0x2a3   : > { %3201 = dma.vmem_to_hbm [thread:$0]  (%p3681_p8), %s4545_s12, 640, %s4594_s3, %s2287_s28, %s4763_s22, %s4766_s18, %s4762_s4  }
 0x2a4   : > { %p3458_p3 = scmp.ne.s32.totalorder %s4630_s19, %s3457_s0  ;;  %s3576_s17 = smov [#allocation7]  }
 0x2a5   : > { %s3461_s9 = sshll.u32 %s3576_s17, 4  ;;  %s3462_s9 = int_to_ptr.vmem [resolvable:$false] %s3461_s9 }
 0x2a6   : > { %p3459_p4 = pnand %p3458_p3, %p3681_p8  ;;  %s3463_s21 = scalar_lea.vmem %s3462_s9, 512 }
 0x2a7   : > { %p3464_p6 = scmp.lt.s32.totalorder %s4630_s19, %s3462_s9  ;;  %p3465_p7 = scmp.lt.s32.totalorder %s3463_s21, %s3457_s0 }
 0x2a8   : > { %p3460_p5 = pneg %p3459_p4 }
 0x2a9   : > { %p3466_p10 = por %p3465_p7, %p3464_p6 }
 0x2ab   : > { %p3467_p11 = pnand %p3466_p10, %p3460_p5 }
 0x2ad   : > { %3470 = shalt.err (!%p3467_p11)
}
 0x2ae   : > { %s3471_s3 = scalar_lea.hbm %s4637_s2, 256  ;;  %s3475_s13 = scalar_lea.hbm %s4729_s6, 1024 }
 0x2af   : > { %p3472_p12 = scmp.ne.s32.totalorder %s4637_s2, %s3471_s3  ;;  %p3476_p1 = scmp.lt.u32.totalorder %s4637_s2, %s4729_s6 }
 0x2b0   : > { %p3477_p2 = scmp.lt.u32.totalorder %s3475_s13, %s3471_s3  ;;  %p3479_p4 = scmp.lt.u32.totalorder %s3471_s3, %s4637_s2 }
 0x2b1   : > { %p3473_p13 = pnand %p3472_p12, %p3681_p8 }
 0x2b2   : > { %p3478_p3 = por %p3477_p2, %p3476_p1 }
 0x2b3   : > { %p3474_p0 = pneg %p3473_p13 }
 0x2b4   : > { %p3480_p5 = por %p3479_p4, %p3478_p3 }
 0x2b6   : > { %p3481_p6 = pnand %p3480_p5, %p3474_p0 }
 0x2b8   : > { %3484 = shalt.err (!%p3481_p6)
}
 0x2b9   : > { %3202 = dma.vmem_to_hbm [thread:$0]  (%p3681_p8), %s4630_s19, 256, %s4637_s2, %s2287_s28, %s4763_s22, %s4766_s18, %s4762_s4  }
 0x2ba PF: > { %p3221_p7 = scmp.ge.s32.totalorder %s3559_s8, 2  ;;  %s2378_s10 = sand.u32 1, %s3531_s24  }
 0x2bb   : > { %s2379_s0 = scalar_lea.sflag [#allocation4], %s2378_s10 }
 0x2bc   : > { %p3209_p10 = pnand %p3221_p7, %p3685_p9 }
 0x2be   : > { %3518 = dma.done.wait (!%p3209_p10), %s2379_s0, 640  }
 0x2bf   : > { %3520 = vsyncadd (!%p3209_p10), %s2379_s0, 4294966656  ;;  %s4767_s15 = sadd.s32 4294967294, %s3559_s8  }
 0x2c0   : > { %s2387_s17 = sand.u32 1, %s4767_s15  }
 0x2c1   : > { %s2388_s9 = scalar_lea.sflag [#allocation6], %s2387_s17 }
 0x2c2   : > { %3522 = dma.done.wait (!%p3209_p10), %s2388_s9, 896  }
 0x2c3   : > { %3524 = vsyncadd (!%p3209_p10), %s2388_s9, 4294966400  ;;  %s2406_s23 = scalar_lea.sflag [#allocation9], %s2378_s10 }
 0x2c4   : > { %3526 = dma.done.wait (!%p3209_p10), %s2406_s23, 256  }
 0x2c5   : > { %3528 = vsyncadd (!%p3209_p10), %s2406_s23, 4294967040  ;;  %s27_s8 = sadd.s32 1, %s3559_s8   ;;  %s4768_s16 = sld [smem:[#allocation13_spill]] }
 0x2c6   : > { %p24_p8 = scmp.ge.s32.totalorder %s27_s8, 6   ;;  %s4769_s24 = smov %s3535_s25 }
 0x2c7   : > { %s4770_s25 = smov %s3539_s26  ;;  %s4771_s26 = smov %s3693_s20 }
 0x2c8   : > { %s4772_s27 = smov %s3551_s29  ;;  %s4773_s28 = smov %s3555_s30 }
 0x2c9   : > { %s4774_s29 = smov %s4777_s11  ;;  %26 = sbr.rel (!%p24_p8) target bundleno = 15 (0xf), region = 176 }
 0x2cb   : > { %s4775_s30 = smov %s4768_s16 }
 0x2d0   :  { %2411 = vsyncpa [#allocation4], 1 }
 0x2d1   :  { %2413 = vsyncpa [#allocation4 + $0x1], 1 }
 0x2d2   :  { %2414 = vsyncpa [#allocation6], 1 }
 0x2d3   :  { %2416 = vsyncpa [#allocation6 + $0x1], 1 }
 0x2d4   :  { %2417 = vsyncpa [#allocation9], 1 }
 0x2d5   :  { %2419 = vsyncpa [#allocation9 + $0x1], 1 }

// kernel: tpu_custom_call.1
= control target key start
LH: loop header
LB: loop body
LE: loop exit
PB: predicated region body
PF: predicated region fallthrough
CT: control target
= control target key end

     0   :  { %s4723_s0 = inlined_call_operand.vmem [shape: f32[2,16,256], index: 0, kind: input, shape index: {}]   ;;  %s4724_s1 = inlined_call_operand.vmem [shape: f32[2,2,16,128], index: 1, kind: input, shape index: {}]   ;;  %s4725_s2 = inlined_call_operand.vmem [shape: f32[4,2,40,16], index: 2, kind: input, shape index: {}]   ;;  %s4726_s3 = inlined_call_operand.vmem [shape: f32[4,64,16], index: 3, kind: input, shape index: {}]   ;;  %s4727_s4 = inlined_call_operand.hbm [shape: f32[2,40,256], index: 4, kind: output, shape index: {0}]   ;;  %s4728_s5 = inlined_call_operand.hbm [shape: f32[2,40,256], index: 5, kind: output, shape index: {1}]   ;;  %s4729_s6 = inlined_call_operand.hbm [shape: f32[2,16,256], index: 6, kind: output, shape index: {2}]   ;;  %s4730_s7 = inlined_call_operand.hbm [shape: f32[2,2,16,128], index: 7, kind: output, shape index: {3}]  }
   0x1   :  { %4742 = sst [smem:[#allocation14_spill]] %s4723_s0 }
   0x2   :  { %4743 = sst [smem:[#allocation15_spill]] %s4724_s1 }
   0x3   :  { %4744 = sst [smem:[#allocation16_spill]] %s4725_s2 }
   0x4   :  { %4745 = sst [smem:[#allocation17_spill]] %s4726_s3 }
   0x5   :  { %4746 = sst [smem:[#allocation18_spill]] %s4727_s4 }
   0x6   :  { %13 = vsyncpa [#allocation4], 0 }
   0x7   :  { %15 = vsyncpa [#allocation4 + $0x1], 0 }
   0x8   :  { %16 = vsyncpa [#allocation6], 0 }
   0x9   :  { %18 = vsyncpa [#allocation6 + $0x1], 0 }
   0xa   :  { %19 = vsyncpa [#allocation9], 0 }
   0xb   :  { %21 = vsyncpa [#allocation9 + $0x1], 0  ;;  %s3617_s24 = smov 0   ;;  %s3619_s25 = smov 0  }
   0xc   :  { %s3621_s26 = smov 0   ;;  %s3623_s27 = smov 0  }
   0xd   :  { %s3625_s28 = smov 0   ;;  %s3627_s29 = smov 0  }
   0xe   :  { %s3629_s30 = smov 0   ;;  %s3631_s8 = smov 0  }
   0xf LB: > { %s4732_s9 = sadd.s32 4294967295, %s3559_s8   ;;  %s4731_s10 = sadd.s32 4294967294, %s3559_s8   ;;  %s3559_s8 = sphi %s3631_s8, %s27_s8   ;;  %s3555_s30 = sphi %s3629_s30, %s4775_s30   ;;  %s3551_s29 = sphi %s3627_s29, %s4774_s29   ;;  %s3547_s28 = sphi %s3625_s28, %s4773_s28   ;;  %s3543_s27 = sphi %s3623_s27, %s4772_s27   ;;  %s3539_s26 = sphi %s3621_s26, %s4771_s26   ;;  %s3535_s25 = sphi %s3619_s25, %s4770_s25   ;;  %s3531_s24 = sphi %s3617_s24, %s4769_s24  }
  0x10   : > { %s36_s11 = sadd.s32 1, %s3551_s29  ;;  %s39_s12 = sadd.s32 1, %s3555_s30 }
  0x11   : > { %p37_p0 = scmp.ge.s32.totalorder %s36_s11, 2  ;;  %p55_p1 = scmp.ne.s32.totalorder %s3539_s26, %s3535_s25 }
  0x12   : > { %p56_p2 = scmp.eq.s32.totalorder %s3559_s8, 0  ;;  %p157_p5 = scmp.eq.s32.totalorder %s4732_s9, 3 }
  0x13   : > { %s4777_s11 = smov (%p37_p0, %s36_s11), 0  ;;  %s4779_s12 = smov (!%p37_p0, %s39_s12), %s3555_s30 }
  0x14   : > { %s44_s13 = ssub.s32 %s3551_s29, %s4777_s11  ;;  %p3669_p3 = por %p56_p2, %p55_p1 }
  0x15   : > { %p41_p4 = scmp.ge.s32.totalorder %s4779_s12, 2  ;;  %p162_p6 = scmp.ne.s32.totalorder %s3535_s25, %s3531_s24 }
  0x16   : > { %p163_p7 = scmp.eq.s32.totalorder %s4731_s10, 3  ;;  %p3681_p8 = por %p157_p5, %p55_p1 }
  0x17   : > { %s4781_s12 = smov (%p41_p4, %s4779_s12), 0  ;;  %s48_s19 = sadd.s32 1, %s3539_s26 }
  0x18   : > { %4748 = sst [smem:[#allocation13_spill]] %s4781_s12  ;;  %p3685_p9 = por %p163_p7, %p162_p6 }
  0x19   : > { %s43_s17 = ssub.s32 %s3555_s30, %s4781_s12  ;;  %p2570_p11 = scmp.ge.s32.totalorder %s3559_s8, 4 }
  0x1a   : > { %s45_s18 = sor.u32 %s44_s13, %s43_s17 }
  0x1b   : > { %p46_p10 = scmp.eq.s32.totalorder %s45_s18, 0  ;;  %269 = sbr.rel (%p2570_p11) target bundleno = 45 (0x2d), region = 24 }
  0x1d   : > { %s3693_s20 = scalar_select %p46_p10, %s3539_s26, %s48_s19  }
  0x22   : > { %272 = sbr.rel (!%p3669_p3) target bundleno = 45 (0x2d), region = 28  ;;  %s274_s21 = sand.u32 (%p3669_p3), 1, %s3539_s26  }
  0x23   : > { %s2572_s22 = sshll.u32 (%p3669_p3), %s3555_s30, 2  ;;  %s2571_s23 = sshll.u32 (%p3669_p3), %s274_s21, 4 }
  0x24   : > { %s278_s10 = sadd.s32 (%p3669_p3), %s3551_s29, %s2572_s22  ;;  %s4751_s0 = sld [smem:[#allocation14_spill]] (%p3669_p3) }
  0x25   : > { %s2573_s9 = sshll.u32 (%p3669_p3), %s278_s10, 3  ;;  %s276_s18 = scalar_lea.vmem (%p3669_p3), [#allocation2], %s2571_s23 }
  0x2a   : > { %s280_s17 = scalar_lea.vmem %s4751_s0, %s2573_s9 }
  0x2b   : > { %v310_v0 = vld [vmem:[%s280_s17] sm:$0xff]  ;;  %v312_v1 = vld [vmem:[%s280_s17 + $0x10] sm:$0xff] }
  0x2c   : > { %311 = vst [vmem:[%s276_s18] sm:$0xff] %v310_v0  ;;  %313 = vst [vmem:[%s276_s18 + $0x8] sm:$0xff] %v312_v1 }
  0x2d PF: > { %p2574_p12 = scmp.ge.s32.totalorder %s3559_s8, 1  ;;  %p330_p13 = scmp.lt.s32.totalorder %s3559_s8, 5 }
  0x2f   : > { %p331_p0 = pnand %p2574_p12, %p330_p13 }
  0x30   : > { %s3707_s10 = sand.u32 (!%p331_p0), 1, %s3535_s25   ;;  %p392_p1 = scmp.lt.s32.totalorder (!%p331_p0), %s3547_s28, 1  ;;  %v405_v2 = vlaneseq (!%p331_p0)  ;;  %v3561_v3 = vmov (!%p331_p0), 0.0|0.0   ;;  %vm3562_vm0 = vmmov (!%p331_p0), 0   ;;  %v3563_v4 = vmov (!%p331_p0), 0.0  }
  0x31   : > { %334 = sbr.rel (%p331_p0) target bundleno = 698 (0x2ba), region = 70  ;;  %s3711_s9 = sshll.u32 (!%p331_p0), %s3707_s10, 4  ;;  %3064 = vmatprep.subr.bf16.mxu0 (!%p331_p0), %v3561_v3  ;;  %2867 = vmatprep.mubr.msk.f32.mxu0 (!%p331_p0), %vm3562_vm0, %v3563_v4  ;;  %vm447_vm5 = vcmask (!%p331_p0), 130048  }
  0x32   : > { %p394_p2 = scmp.lt.s32.totalorder (!%p331_p0), %s3543_s27, 1  ;;  %v3717_v5 = vand.u32 (!%p331_p0), 127, %v405_v2  ;;  %s2581_s12 = sshll.u32 (!%p331_p0), %s3543_s27, 7  ;;  %3060 = vmatprep.subr.bf16.mxu1 (!%p331_p0), %v3561_v3  ;;  %2848 = vmatprep.mubr.msk.f32.mxu1 (!%p331_p0), %vm3562_vm0, %v3563_v4 }
  0x33   : > { %s339_s19 = scalar_lea.vmem (!%p331_p0), [#allocation2], %s3711_s9  ;;  %v408_v8 = vstv (!%p331_p0), %s2581_s12  ;;  %s4754_s2 = sld [smem:[#allocation16_spill]] (!%p331_p0) }
  0x34   : > { %v401_v6 = vld [vmem:[%s339_s19] sm:$0xff] (!%p331_p0)  ;;  %v402_v7 = vld [vmem:[%s339_s19 + $0x8] sm:$0xff] (!%p331_p0)  ;;  %v409_v9 = vadd.s32 (!%p331_p0), %v408_v8, %v3717_v5  ;;  %vm432_vm3 = vcmp.lt.s32.totalorder (!%p331_p0), %v3717_v5, 1  ;;  %vm1141_vm4 = vcmp.lt.s32.totalorder (!%p331_p0), %v3717_v5, 2  ;;  %s4755_s1 = sld [smem:[#allocation15_spill]] (!%p331_p0)  ;;  %vm1528_vm6 = vcmp.lt.s32.totalorder (!%p331_p0), %v3717_v5, 3 }
  0x35   : > { %v3729_v10 = vpack.c.bf16 (!%p331_p0), %v402_v7, %v401_v6  ;;  %s4756_s3 = sld [smem:[#allocation17_spill]] (!%p331_p0)  ;;  %s3564_s18 = smov (!%p331_p0), 127  }
  0x36   : > { %vm410_vm1 = vcmp.lt.s32.totalorder (!%p331_p0), %v409_v9, 161  ;;  %s3565_s12 = smov (!%p331_p0), 125   ;;  %s4757_s4 = sld [smem:[#allocation18_spill]] (!%p331_p0) }
  0x37   : > { %vm3731_vm2 = vmpackc.low (!%p331_p0), %vm410_vm1, %vm410_vm1 }
  0x38   : > { %s393_s14 = scalar_select %p392_p1, %s3547_s28, 1  ;;  %3067 = vmatpush3.bf16.msk.msra.mxu0 %vm3731_vm2, %v3729_v10 }
  0x39   : > { %s395_s21 = scalar_select %p394_p2, %s3543_s27, 1  ;;  %v413_v12 = vld [vmem:[%s4754_s2] sm:$0xff]  ;;  %v414_v22 = vld [vmem:[%s4754_s2 + $0x8] sm:$0xff]  ;;  %v2587_v30 = vld [vmem:[%s4754_s2 + $0x50] sm:$0xff] }
  0x3a   : > { %s2579_s22 = sshll.u32 %s393_s14, 2  ;;  %s3566_s14 = smov 126   ;;  %v2588_v33 = vld [vmem:[%s4754_s2 + $0x58] sm:$0xff]  ;;  %v2589_v36 = vld [vmem:[%s4754_s2 + $0x60] sm:$0xff]  ;;  %v2590_v40 = vld [vmem:[%s4754_s2 + $0x68] sm:$0xff] }
  0x3b   : > { %s2578_s23 = sshll.u32 %s395_s21, 1  ;;  %2868 = vmatmul.mubr.msk.f32.vlgmr.msra.gmra.mrb[0].mxu0 %vm447_vm5, %v413_v12  ;;  %v2625_v24 = vld [vmem:[%s4756_s3 + $0x40] sm:$0xff]  ;;  %v2626_v31 = vld [vmem:[%s4756_s3 + $0x48] sm:$0xff]  ;;  %v2627_v32 = vld [vmem:[%s4756_s3 + $0x50] sm:$0xff] }
  0x3c   : > { %s398_s13 = sadd.s32 %s2579_s22, %s2578_s23  ;;  %2870 = vmatprep.mubr.msk.f32.mxu0 %vm3562_vm0, %v3563_v4  ;;  %v2628_v34 = vld [vmem:[%s4756_s3 + $0x58] sm:$0xff]  ;;  %v2629_v35 = vld [vmem:[%s4756_s3 + $0x60] sm:$0xff]  ;;  %v2630_v37 = vld [vmem:[%s4756_s3 + $0x68] sm:$0xff]  ;;  %s3567_s23 = smov 2  }
  0x3d   : > { %s2580_s17 = sshll.u32 %s398_s13, 3  ;;  %v2631_v38 = vld [vmem:[%s4756_s3 + $0x70] sm:$0xff]  ;;  %v2632_v41 = vld [vmem:[%s4756_s3 + $0x78] sm:$0xff]  ;;  %v424_v44 = vld [vmem:[%s4756_s3] sm:$0xff]  ;;  %s3568_s13 = smov 1  }
  0x3e   : > { %s400_s21 = scalar_lea.vmem %s4755_s1, %s2580_s17  ;;  %v2591_v45 = vld [vmem:[%s4754_s2 + $0x70] sm:$0xff]  ;;  %v425_v47 = vld [vmem:[%s4756_s3 + $0x8] sm:$0xff]  ;;  %v427_v50 = vld [vmem:[%s4756_s3 + $0x18] sm:$0xff]  ;;  %s3569_s17 = smov 3  }
  0x3f   : > { %v403_v13 = vld [vmem:[%s400_s21] sm:$0xff]  ;;  %v404_v14 = vld [vmem:[%s400_s21 + $0x8] sm:$0xff]  ;;  %2871 = vmatmul.mubr.msk.f32.gmra.mrb[2].mxu0 %vm447_vm5, %v414_v22  ;;  %v426_v48 = vld [vmem:[%s4756_s3 + $0x10] sm:$0xff] }
  0x40   : > { %v433_v15 = vsel %vm432_vm3, %v403_v13, %v401_v6  ;;  %v434_v16 = vsel %vm432_vm3, %v404_v14, %v402_v7  ;;  %v1142_v17 = vsel %vm1141_vm4, %v403_v13, %v401_v6  ;;  %v1143_v18 = vsel %vm1141_vm4, %v404_v14, %v402_v7  ;;  %2924 = vmatprep.mubr.msk.f32.mxu0 %vm447_vm5, %v2625_v24  ;;  %v415_v49 = vld [vmem:[%s4754_s2 + $0x10] sm:$0xff]  ;;  %v428_v51 = vld [vmem:[%s4756_s3 + $0x20] sm:$0xff]  ;;  %v416_v52 = vld [vmem:[%s4754_s2 + $0x18] sm:$0xff] }
  0x41   : > { %v3298_v19 = vpack.i.bf16 %v434_v16, %v433_v15  ;;  %v1529_v20 = vsel %vm1528_vm6, %v403_v13, %v401_v6  ;;  %v1530_v21 = vsel %vm1528_vm6, %v404_v14, %v402_v7  ;;  %v3303_v25 = vpack.i.bf16 %v1143_v18, %v1142_v17  ;;  %v429_v53 = vld [vmem:[%s4756_s3 + $0x28] sm:$0xff]  ;;  %v430_v54 = vld [vmem:[%s4756_s3 + $0x30] sm:$0xff]  ;;  %v417_v55 = vld [vmem:[%s4754_s2 + $0x20] sm:$0xff] }
  0x42   : > { %v3308_v23 = vpack.i.bf16 %v1530_v21, %v1529_v20  ;;  %v431_v56 = vld [vmem:[%s4756_s3 + $0x38] sm:$0xff]  ;;  %v2653_v58 = vld [vmem:[%s4754_s2 + $0xa0] sm:$0xff]  ;;  %v2654_v60 = vld [vmem:[%s4754_s2 + $0xa8] sm:$0xff] }
  0x43   : > { %3299 = vrot.lane.b32.xlu0 %v3298_v19, %s3564_s18  ;;  %v2606_v57 = vld [vmem:[%s4754_s2 + $0x78] sm:$0xff]  ;;  %v2607_v59 = vld [vmem:[%s4754_s2 + $0x80] sm:$0xff]  ;;  %v2608_v61 = vld [vmem:[%s4754_s2 + $0x88] sm:$0xff]  ;;  %s4735_s18 = smul.u32 40, %s3707_s10 }
  0x44   : > { %3309 = vrot.lane.b32.xlu1 %v3308_v23, %s3565_s12  ;;  %v2655_v62 = vld [vmem:[%s4754_s2 + $0xb0] sm:$0xff]  ;;  %v2656_v0 = vld [vmem:[%s4754_s2 + $0xb8] sm:$0xff]  ;;  %v2657_v6 = vld [vmem:[%s4754_s2 + $0xc0] sm:$0xff] }
  0x45   : > { %v2609_v63 = vld [vmem:[%s4754_s2 + $0x90] sm:$0xff]  ;;  %v2610_v2 = vld [vmem:[%s4754_s2 + $0x98] sm:$0xff]  ;;  %v2677_v9 = vld [vmem:[%s4756_s3 + $0x80] sm:$0xff]  ;;  %s4303_s12 = scalar_lea.vmem [#allocation3], %s4735_s18 }
  0x46   : > { %v2678_v12 = vld [vmem:[%s4756_s3 + $0x88] sm:$0xff]  ;;  %v2679_v14 = vld [vmem:[%s4756_s3 + $0x90] sm:$0xff]  ;;  %v2680_v16 = vld [vmem:[%s4756_s3 + $0x98] sm:$0xff]  ;;  %s2311_s21 = sshll.u32 %s4303_s12, 4  ;;  %s4369_s21 = int_to_ptr.vmem [resolvable:$true] %s2311_s21 }
  0x47   : > { %3304 = vrot.lane.b32.xlu0 %v3303_v25, %s3566_s14  ;;  %v2583_v15 = vld [vmem:[%s4754_s2 + $0x30] sm:$0xff]  ;;  %v2681_v17 = vld [vmem:[%s4756_s3 + $0xa0] sm:$0xff]  ;;  %v2584_v18 = vld [vmem:[%s4754_s2 + $0x38] sm:$0xff]  ;;  %s3198_s14 = smul.u32 10, %s3547_s28 }
  0x48   : > { %v2683_v19 = vld [vmem:[%s4756_s3 + $0xb0] sm:$0xff]  ;;  %v2585_v20 = vld [vmem:[%s4754_s2 + $0x40] sm:$0xff]  ;;  %v2684_v21 = vld [vmem:[%s4756_s3 + $0xb8] sm:$0xff]  ;;  %2239 = vrot.lane.b32.xlu1 %v3563_v4, %s3568_s13 }
  0x49   : > { %v2586_v22 = vld [vmem:[%s4754_s2 + $0x48] sm:$0xff]  ;;  %v2695_v23 = vld [vmem:[%s4754_s2 + $0xf0] sm:$0xff]  ;;  %v2696_v25 = vld [vmem:[%s4754_s2 + $0xf8] sm:$0xff]  ;;  %s4354_s19 = sadd.s32 %s3543_s27, %s3198_s14 }
  0x4a   : > { %v2665_v24 = vld [vmem:[%s4754_s2 + $0xc8] sm:$0xff]  ;;  %v2667_v11 = vld [vmem:[%s4754_s2 + $0xd8] sm:$0xff]  ;;  %s4734_s22 = sshll.u32 %s4354_s19, 7 }
  0x4b   : > { %2253 = vrot.lane.b32.xlu0 %v3563_v4, %s3567_s23 }
  0xb5   : > { %v3300_v26 = vpop.permute.xlu0 %3299 }
  0xb6   : > { %v3302_v27 = vunpack.i.h.bf16 %v3300_v26  ;;  %v3301_v28 = vunpack.i.l.bf16 %v3300_v26  ;;  %v3310_v1 = vpop.permute.xlu1 %3309  ;;  %v2666_v26 = vld [vmem:[%s4754_s2 + $0xd0] sm:$0xff] }
  0xb7   : > { %v3312_v7 = vunpack.i.h.bf16 %v3310_v1  ;;  %v3311_v8 = vunpack.i.l.bf16 %v3310_v1 }
  0xb8   : > { %v3061_v29 = vpack.c.bf16 %v3302_v27, %v3301_v28  ;;  %v2697_v27 = vld [vmem:[%s4754_s2 + $0x100] sm:$0xff]  ;;  %v2698_v28 = vld [vmem:[%s4754_s2 + $0x108] sm:$0xff] }
  0xb9   : > { %v3305_v39 = vpop.permute.xlu0 %3304  ;;  %v3103_v13 = vpack.c.bf16 %v3312_v7, %v3311_v8 }
  0xba   : > { %3063 = vmatpush3.bf16.msk.msra.mxu1 %vm3731_vm2, %v3061_v29  ;;  %3078 = vmatprep.subr.msk.bf16.mxu0 %vm3731_vm2, %v3061_v29  ;;  %v3307_v42 = vunpack.i.h.bf16 %v3305_v39  ;;  %v3306_v43 = vunpack.i.l.bf16 %v3305_v39  ;;  %v2724_v39 = vld [vmem:[%s4756_s3 + $0xe8] sm:$0xff] }
  0xbb   : > { %3081 = vmatpush3.bf16.msk.msra.mxu0 %vm3731_vm2, %v3061_v29  ;;  %3116 = vmatprep.subr.bf16.mxu1 %v3561_v3 }
  0xbc   : > { %3084 = vmatprep.subr.msk.bf16.mxu0 %vm3731_vm2, %v3729_v10  ;;  %v3846_v46 = vpack.c.bf16 %v3307_v42, %v3306_v43  ;;  %v2726_v42 = vld [vmem:[%s4756_s3 + $0xf8] sm:$0xff]  ;;  %v2710_v43 = vld [vmem:[%s4754_s2 + $0x130] sm:$0xff] }
  0xbd   : > { %2849 = vmatmul.mubr.msk.f32.vlgmr.msra.gmra.mrb[0].mxu1 %vm447_vm5, %v2587_v30  ;;  %v2699_v30 = vld [vmem:[%s4754_s2 + $0x110] sm:$0xff] }
  0xbe   : > { %2925 = vmatmul.mubr.msk.f32.vlgmr.msra.gmra.mrb[4].mxu0 %vm447_vm5, %v2626_v31  ;;  %2851 = vmatprep.mubr.msk.f32.mxu1 %vm3562_vm0, %v3563_v4  ;;  %v2719_v31 = vld [vmem:[%s4756_s3 + $0xc0] sm:$0xff] }
  0xbf   : > { %3117 = vmatpush3.bf16.msk.msra.mxu1 %vm3731_vm2, %v3729_v10  ;;  %2927 = vmatprep.mubr.msk.f32.mxu0 %vm447_vm5, %v2627_v32  ;;  %v2669_v32 = vld [vmem:[%s4754_s2 + $0xe8] sm:$0xff] }
  0xc0   : > { %3087 = vmatpush3.bf16.msk.msra.mxu0 %vm3731_vm2, %v3729_v10  ;;  %3068 = vmatprep.subr.bf16.mxu1 %v3561_v3 }
  0xc1   : > { %2852 = vmatmul.mubr.msk.f32.gmra.mrb[2].mxu1 %vm447_vm5, %v2588_v33  ;;  %3088 = vmatprep.subr.bf16.mxu0 %v3561_v3  ;;  %v2720_v33 = vld [vmem:[%s4756_s3 + $0xc8] sm:$0xff] }
  0xc2   : > { %2928 = vmatmul.mubr.msk.f32.gmra.mrb[6].mxu0 %vm447_vm5, %v2628_v34  ;;  %2854 = vmatprep.mubr.msk.f32.mxu1 %vm3562_vm0, %v3563_v4  ;;  %v2721_v34 = vld [vmem:[%s4756_s3 + $0xd0] sm:$0xff] }
  0xc3   : > { %2930 = vmatprep.mubr.msk.f32.mxu0 %vm447_vm5, %v2629_v35  ;;  %v2707_v35 = vld [vmem:[%s4754_s2 + $0x118] sm:$0xff] }
  0xc5   : > { %2855 = vmatmul.mubr.msk.f32.gmra.mrb[4].mxu1 %vm447_vm5, %v2589_v36  ;;  %v2722_v36 = vld [vmem:[%s4756_s3 + $0xd8] sm:$0xff] }
  0xc6   : > { %2931 = vmatmul.mubr.msk.f32.gmra.mrb[8].mxu0 %vm447_vm5, %v2630_v37  ;;  %2857 = vmatprep.mubr.msk.f32.mxu1 %vm3562_vm0, %v3563_v4  ;;  %v2723_v37 = vld [vmem:[%s4756_s3 + $0xe0] sm:$0xff] }
  0xc7   : > { %2933 = vmatprep.mubr.msk.f32.mxu0 %vm447_vm5, %v2631_v38  ;;  %v2708_v38 = vld [vmem:[%s4754_s2 + $0x120] sm:$0xff] }
  0xc9   : > { %2858 = vmatmul.mubr.msk.f32.gmra.mrb[6].mxu1 %vm447_vm5, %v2590_v40  ;;  %v2725_v40 = vld [vmem:[%s4756_s3 + $0xf0] sm:$0xff] }
  0xca   : > { %2934 = vmatmul.mubr.msk.f32.gmra.mrb[10].mxu0 %vm447_vm5, %v2632_v41  ;;  %2860 = vmatprep.mubr.msk.f32.mxu1 %vm3562_vm0, %v3563_v4  ;;  %v2709_v41 = vld [vmem:[%s4754_s2 + $0x128] sm:$0xff] }
  0xcb   : > { %2940 = vmatprep.mubr.msk.f32.mxu0 %vm447_vm5, %v424_v44  ;;  %v2711_v44 = vld [vmem:[%s4754_s2 + $0x138] sm:$0xff] }
  0xcd   : > { %2861 = vmatmul.mubr.msk.f32.gmra.mrb[8].mxu1 %vm447_vm5, %v2591_v45 }
  0xce   : > { %2941 = vmatmul.mubr.msk.f32.vlgmr.msra.gmra.mrb[4].mxu0 %vm447_vm5, %v425_v47  ;;  %2873 = vmatprep.mubr.msk.f32.mxu1 %vm3562_vm0, %v3563_v4 }
  0xcf   : > { %2943 = vmatprep.mubr.msk.f32.mxu0 %vm447_vm5, %v426_v48  ;;  %3091 = vmatpush3.bf16.msk.msra.mxu0 %vm3731_vm2, %v3846_v46 }
  0xd0   : > { %3098 = vmatprep.subr.msk.bf16.mxu0 %vm3731_vm2, %v3846_v46 }
  0xd1   : > { %2874 = vmatmul.mubr.msk.f32.vlgmr.msra.gmra.mrb[4].mxu1 %vm447_vm5, %v415_v49 }
  0xd2   : > { %3071 = vmatpush3.bf16.msk.msra.mxu1 %vm3731_vm2, %v3061_v29  ;;  %2944 = vmatmul.mubr.msk.f32.gmra.mrb[6].mxu0 %vm447_vm5, %v427_v50  ;;  %v2668_v29 = vld [vmem:[%s4754_s2 + $0xe0] sm:$0xff] }
  0xd3   : > { %2876 = vmatprep.mubr.msk.f32.mxu1 %vm3562_vm0, %v3563_v4  ;;  %2946 = vmatprep.mubr.msk.f32.mxu0 %vm447_vm5, %v428_v51 }
  0xd4   : > { %3072 = vmatprep.subr.bf16.mxu1 %v3561_v3 }
  0xd5   : > { %2877 = vmatmul.mubr.msk.f32.gmra.mrb[6].mxu1 %vm447_vm5, %v416_v52 }
  0xd6   : > { %2947 = vmatmul.mubr.msk.f32.gmra.mrb[8].mxu0 %vm447_vm5, %v429_v53  ;;  %2879 = vmatprep.mubr.msk.f32.mxu1 %vm3562_vm0, %v3563_v4 }
  0xd7   : > { %2949 = vmatprep.mubr.msk.f32.mxu0 %vm447_vm5, %v430_v54 }
  0xd9   : > { %2880 = vmatmul.mubr.msk.f32.gmra.mrb[8].mxu1 %vm447_vm5, %v417_v55 }
  0xda   : > { %2950 = vmatmul.mubr.msk.f32.gmra.mrb[10].mxu0 %vm447_vm5, %v431_v56  ;;  %2886 = vmatprep.mubr.msk.f32.mxu1 %vm3562_vm0, %v3563_v4 }
  0xdb   : > { %2956 = vmatprep.mubr.msk.f32.mxu0 %vm3562_vm0, %v3563_v4 }
  0xdd   : > { %2887 = vmatmul.mubr.msk.f32.vlgmr.msra.gmra.mrb[10].mxu1 %vm447_vm5, %v2606_v57 }
  0xde   : > { %2957 = vmatmul.mubr.msk.f32.vlgmr.msra.gmra.mrb[0].mxu0 %vm447_vm5, %v2653_v58  ;;  %2889 = vmatprep.mubr.msk.f32.mxu1 %vm3562_vm0, %v3563_v4 }
  0xdf   : > { %3101 = vmatpush3.bf16.msk.msra.mxu0 %vm3731_vm2, %v3846_v46  ;;  %3075 = vmatpush3.bf16.msk.msra.mxu1 %vm3731_vm2, %v3729_v10  ;;  %v2582_v10 = vld [vmem:[%s4754_s2 + $0x28] sm:$0xff] }
  0xe0   : > { %2959 = vmatprep.mubr.msk.f32.mxu0 %vm3562_vm0, %v3563_v4  ;;  %3092 = vmatprep.subr.bf16.mxu1 %v3561_v3 }
  0xe1   : > { %2890 = vmatmul.mubr.msk.f32.gmra.mrb[12].mxu1 %vm447_vm5, %v2607_v59  ;;  %3102 = vmatprep.subr.bf16.mxu0 %v3561_v3 }
  0xe2   : > { %2960 = vmatmul.mubr.msk.f32.gmra.mrb[2].mxu0 %vm447_vm5, %v2654_v60  ;;  %2892 = vmatprep.mubr.msk.f32.mxu1 %vm3562_vm0, %v3563_v4 }
  0xe3   : > { %2962 = vmatprep.mubr.msk.f32.mxu0 %vm3562_vm0, %v3563_v4 }
  0xe5   : > { %2893 = vmatmul.mubr.msk.f32.gmra.mrb[14].mxu1 %vm447_vm5, %v2608_v61 }
  0xe6   : > { %2963 = vmatmul.mubr.msk.f32.gmra.mrb[12].mxu0 %vm447_vm5, %v2655_v62  ;;  %2895 = vmatprep.mubr.msk.f32.mxu1 %vm3562_vm0, %v3563_v4 }
  0xe7   : > { %2965 = vmatprep.mubr.msk.f32.mxu0 %vm3562_vm0, %v3563_v4 }
  0xe9   : > { %2896 = vmatmul.mubr.msk.f32.gmra.mrb[16].mxu1 %vm447_vm5, %v2609_v63 }
  0xea   : > { %2966 = vmatmul.mubr.msk.f32.gmra.mrb[14].mxu0 %vm447_vm5, %v2656_v0  ;;  %2898 = vmatprep.mubr.msk.f32.mxu1 %vm3562_vm0, %v3563_v4 }
  0xeb   : > { %2968 = vmatprep.mubr.msk.f32.mxu0 %vm3562_vm0, %v3563_v4 }
  0xed   : > { %2899 = vmatmul.mubr.msk.f32.gmra.mrb[18].mxu1 %vm447_vm5, %v2610_v2 }
  0xee   : > { %2969 = vmatmul.mubr.msk.f32.gmra.mrb[16].mxu0 %vm447_vm5, %v2657_v6  ;;  %2905 = vmatprep.mubr.msk.f32.mxu1 %vm3562_vm0, %v3563_v4 }
  0xef   : > { %2994 = vmatprep.mubr.msk.f32.mxu0 %vm447_vm5, %v2677_v9 }
  0xf1   : > { %2906 = vmatmul.mubr.msk.f32.vlgmr.msra.gmra.mrb[10].mxu1 %vm447_vm5, %v2582_v10 }
  0xf2   : > { %3095 = vmatpush3.bf16.msk.msra.mxu1 %vm3731_vm2, %v3846_v46  ;;  %2995 = vmatmul.mubr.msk.f32.vlgmr.msra.gmra.mrb[4].mxu0 %vm447_vm5, %v2678_v12 }
  0xf3   : > { %2908 = vmatprep.mubr.msk.f32.mxu1 %vm3562_vm0, %v3563_v4  ;;  %2997 = vmatprep.mubr.msk.f32.mxu0 %vm447_vm5, %v2679_v14 }
  0xf4   : > { %3105 = vmatpush3.bf16.msk.msra.mxu0 %vm3731_vm2, %v3103_v13  ;;  %3106 = vmatprep.subr.bf16.mxu1 %v3561_v3  ;;  %v2682_v3 = vld [vmem:[%s4756_s3 + $0xa8] sm:$0xff] }
  0xf5   : > { %2909 = vmatmul.mubr.msk.f32.gmra.mrb[12].mxu1 %vm447_vm5, %v2583_v15  ;;  %3112 = vmatprep.subr.msk.bf16.mxu0 %vm3731_vm2, %v3103_v13 }
  0xf6   : > { %2998 = vmatmul.mubr.msk.f32.gmra.mrb[6].mxu0 %vm447_vm5, %v2680_v16  ;;  %2911 = vmatprep.mubr.msk.f32.mxu1 %vm3562_vm0, %v3563_v4 }
  0xf7   : > { %3000 = vmatprep.mubr.msk.f32.mxu0 %vm447_vm5, %v2681_v17 }
  0xf9   : > { %2912 = vmatmul.mubr.msk.f32.gmra.mrb[14].mxu1 %vm447_vm5, %v2584_v18 }
  0xfa   : > { %3001 = vmatmul.mubr.msk.f32.gmra.mrb[8].mxu0 %vm447_vm5, %v2682_v3  ;;  %2914 = vmatprep.mubr.msk.f32.mxu1 %vm3562_vm0, %v3563_v4 }
  0xfb   : > { %3003 = vmatprep.mubr.msk.f32.mxu0 %vm447_vm5, %v2683_v19 }
  0xfd   : > { %2915 = vmatmul.mubr.msk.f32.gmra.mrb[16].mxu1 %vm447_vm5, %v2585_v20 }
  0xfe   : > { %3004 = vmatmul.mubr.msk.f32.gmra.mrb[10].mxu0 %vm447_vm5, %v2684_v21  ;;  %2917 = vmatprep.mubr.msk.f32.mxu1 %vm3562_vm0, %v3563_v4 }
  0xff   : > { %3010 = vmatprep.mubr.msk.f32.mxu0 %vm3562_vm0, %v3563_v4 }
 0x101   : > { %2918 = vmatmul.mubr.msk.f32.gmra.mrb[18].mxu1 %vm447_vm5, %v2586_v22 }
 0x102   : > { %3011 = vmatmul.mubr.msk.f32.vlgmr.msra.gmra.mrb[0].mxu0 %vm447_vm5, %v2695_v23  ;;  %2975 = vmatprep.mubr.msk.f32.mxu1 %vm3562_vm0, %v3563_v4 }
 0x103   : > { %3115 = vmatpush3.bf16.msk.msra.mxu0 %vm3731_vm2, %v3103_v13  ;;  %3013 = vmatprep.mubr.msk.f32.mxu0 %vm3562_vm0, %v3563_v4 }
 0x105   : > { %2976 = vmatmul.mubr.msk.f32.vlgmr.msra.gmra.mrb[10].mxu1 %vm447_vm5, %v2665_v24 }
 0x106   : > { %3109 = vmatpush3.bf16.msk.msra.mxu1 %vm3731_vm2, %v3103_v13  ;;  %3014 = vmatmul.mubr.msk.f32.gmra.mrb[2].mxu0 %vm447_vm5, %v2696_v25 }
 0x107   : > { %2978 = vmatprep.mubr.msk.f32.mxu1 %vm3562_vm0, %v3563_v4  ;;  %3016 = vmatprep.mubr.msk.f32.mxu0 %vm3562_vm0, %v3563_v4 }
 0x109   : > { %2979 = vmatmul.mubr.msk.f32.gmra.mrb[12].mxu1 %vm447_vm5, %v2666_v26 }
 0x10a   : > { %3017 = vmatmul.mubr.msk.f32.gmra.mrb[12].mxu0 %vm447_vm5, %v2697_v27  ;;  %2981 = vmatprep.mubr.msk.f32.mxu1 %vm3562_vm0, %v3563_v4 }
 0x10b   : > { %3019 = vmatprep.mubr.msk.f32.mxu0 %vm3562_vm0, %v3563_v4 }
 0x10d   : > { %2982 = vmatmul.mubr.msk.f32.gmra.mrb[14].mxu1 %vm447_vm5, %v2667_v11 }
 0x10e   : > { %3020 = vmatmul.mubr.msk.f32.gmra.mrb[14].mxu0 %vm447_vm5, %v2698_v28  ;;  %2984 = vmatprep.mubr.msk.f32.mxu1 %vm3562_vm0, %v3563_v4 }
 0x10f   : > { %3022 = vmatprep.mubr.msk.f32.mxu0 %vm3562_vm0, %v3563_v4 }
 0x111   : > { %2985 = vmatmul.mubr.msk.f32.gmra.mrb[16].mxu1 %vm447_vm5, %v2668_v29 }
 0x112   : > { %3023 = vmatmul.mubr.msk.f32.gmra.mrb[16].mxu0 %vm447_vm5, %v2699_v30  ;;  %2987 = vmatprep.mubr.msk.f32.mxu1 %vm3562_vm0, %v3563_v4 }
 0x113   : > { %3048 = vmatprep.mubr.msk.f32.mxu0 %vm447_vm5, %v2719_v31 }
 0x115   : > { %2988 = vmatmul.mubr.msk.f32.gmra.mrb[18].mxu1 %vm447_vm5, %v2669_v32 }
 0x116   : > { %3049 = vmatmul.mubr.msk.f32.vlgmr.msra.gmra.mrb[4].mxu0 %vm447_vm5, %v2720_v33  ;;  %3029 = vmatprep.mubr.msk.f32.mxu1 %vm3562_vm0, %v3563_v4 }
 0x117   : > { %3051 = vmatprep.mubr.msk.f32.mxu0 %vm447_vm5, %v2721_v34 }
 0x119   : > { %3030 = vmatmul.mubr.msk.f32.vlgmr.msra.gmra.mrb[10].mxu1 %vm447_vm5, %v2707_v35 }
 0x11a   : > { %3052 = vmatmul.mubr.msk.f32.gmra.mrb[6].mxu0 %vm447_vm5, %v2722_v36  ;;  %3032 = vmatprep.mubr.msk.f32.mxu1 %vm3562_vm0, %v3563_v4 }
 0x11b   : > { %3054 = vmatprep.mubr.msk.f32.mxu0 %vm447_vm5, %v2723_v37 }
 0x11d   : > { %3033 = vmatmul.mubr.msk.f32.gmra.mrb[12].mxu1 %vm447_vm5, %v2708_v38 }
 0x11e   : > { %3055 = vmatmul.mubr.msk.f32.gmra.mrb[8].mxu0 %vm447_vm5, %v2724_v39  ;;  %3035 = vmatprep.mubr.msk.f32.mxu1 %vm3562_vm0, %v3563_v4 }
 0x11f   : > { %3057 = vmatprep.mubr.msk.f32.mxu0 %vm447_vm5, %v2725_v40 }
 0x121   : > { %3036 = vmatmul.mubr.msk.f32.gmra.mrb[14].mxu1 %vm447_vm5, %v2709_v41 }
 0x122   : > { %3058 = vmatmul.mubr.msk.f32.gmra.mrb[10].mxu0 %vm447_vm5, %v2726_v42  ;;  %3038 = vmatprep.mubr.msk.f32.mxu1 %vm3562_vm0, %v3563_v4 }
 0x125   : > { %3039 = vmatmul.mubr.msk.f32.gmra.mrb[16].mxu1 %vm447_vm5, %v2710_v43 }
 0x126   : > { %3041 = vmatprep.mubr.msk.f32.mxu1 %vm3562_vm0, %v3563_v4 }
 0x129   : > { %3042 = vmatmul.mubr.msk.f32.gmra.mrb[18].mxu1 %vm447_vm5, %v2711_v44 }
 0x190   : > { %v529_v45 = vpop.f32.mrb[0].mxu1 }
 0x191   : > { %v2850_v46 = vpop.f32.mrb[1].mxu1 }
 0x194   : > { %v534_v47 = vpop.f32.mrb[2].mxu1 }
 0x195   : > { %v2853_v48 = vpop.f32.mrb[3].mxu1 }
 0x1a4   : > { %v644_v49 = vpop.f32.mrb[4].mxu1 }
 0x1a5   : > { %v2875_v50 = vpop.f32.mrb[5].mxu1 }
 0x1a8   : > { %v649_v51 = vpop.f32.mrb[6].mxu1 }
 0x1a9   : > { %v2878_v52 = vpop.f32.mrb[7].mxu1 }
 0x1ac   : > { %v654_v53 = vpop.f32.mrb[8].mxu1 }
 0x1ad   : > { %v2881_v54 = vpop.f32.mrb[9].mxu1 }
 0x1d5   : > { %v1624_v55 = vpop.f32.mrb[0].mxu0 }
 0x1d6   : > { %v4173_v56 = vadd.f32 %v1624_v55, %v529_v45  ;;  %v3012_v57 = vpop.f32.mrb[1].mxu0 }
 0x1d8   : > { %v1915_v13 = vmul.f32 %v4173_v56, %v4173_v56  ;;  %v4192_v14 = vand.u32 2147483647, %v4173_v56 }
 0x1d9   : > { %v1629_v58 = vpop.f32.mrb[2].mxu0 }
 0x1da   : > { %v4175_v59 = vadd.f32 %v1629_v58, %v534_v47  ;;  %v3015_v60 = vpop.f32.mrb[3].mxu0 }
 0x1dc   : > { %v1916_v23 = vmul.f32 %v4175_v59, %v4175_v59  ;;  %v4215_v26 = vand.u32 2147483647, %v4175_v59 }
 0x1dd   : > { %v1634_v61 = vpop.f32.mrb[12].mxu0 }
 0x1de   : > { %v4177_v62 = vadd.f32 %v1634_v61, %v644_v49  ;;  %v3018_v63 = vpop.f32.mrb[13].mxu0 }
 0x1e0   : > { %v1917_v29 = vmul.f32 %v4177_v62, %v4177_v62  ;;  %v4235_v35 = vand.u32 2147483647, %v4177_v62 }
 0x1e1   : > { %v1639_v0 = vpop.f32.mrb[14].mxu0 }
 0x1e2   : > { %v4179_v1 = vadd.f32 %v1639_v0, %v649_v51  ;;  %v3021_v2 = vpop.f32.mrb[15].mxu0 }
 0x1e4   : > { %v1918_v46 = vmul.f32 %v4179_v1, %v4179_v1  ;;  %v4258_v47 = vand.u32 2147483647, %v4179_v1 }
 0x1e5   : > { %v1644_v6 = vpop.f32.mrb[16].mxu0 }
 0x1e6   : > { %v4181_v7 = vadd.f32 %v1644_v6, %v654_v53  ;;  %v3024_v8 = vpop.f32.mrb[17].mxu0 }
 0x1e8   : > { %v1919_v52 = vmul.f32 %v4181_v7, %v4181_v7  ;;  %v4289_v6 = vand.u32 2147483647, %v4181_v7 }
 0x1e9   : > { %v4183_v9 = vpop.f32.mrb[4].mxu0 }
 0x1ea   : > { %v4185_v10 = vpop.f32.mrb[5].mxu0 }
 0x1ec   : > { %v4187_v12 = vpop.f32.mrb[10].mxu1 }
 0x1ed   : > { %v1920_v15 = vmul.f32 %v4187_v12, %v4187_v12  ;;  %v4197_v16 = vand.u32 2147483647, %v4187_v12  ;;  %v3031_v17 = vpop.f32.mrb[11].mxu1  ;;  %v3053_v18 = vpop.f32.mrb[6].mxu0 }
 0x1ee   : > { %2237 = vrot.lane.b32.xlu0 %v3053_v18, %s3568_s13  ;;  %v1878_v3 = vpop.f32.mrb[7].mxu0 }
 0x1ef   : > { %v4200_v19 = vadd.f32 %v1920_v15, %v1915_v13  ;;  %v1980_v20 = vmin.f32 %v4192_v14, %v4197_v16  ;;  %v1985_v21 = vmax.f32 %v4192_v14, %v4197_v16  ;;  %vm2185_vm7 = vcmp.gt.f32.partialorder %v4197_v16, %v4192_v14  ;;  %2235 = vrot.lane.b32.xlu1 %v1878_v3, %s3568_s13  ;;  %s3570_s13 = smov [#allocation3]  }
 0x1f0   : > { %v4209_v22 = vpop.f32.mrb[12].mxu1 }
 0x1f1   : > { %3313 = vrsqrt.f32 %v4200_v19  ;;  %v3034_v24 = vpop.f32.mrb[13].mxu1  ;;  %v3056_v25 = vpop.f32.mrb[8].mxu0  ;;  %vm1990_vm8 = vcmp.gt.f32.partialorder %v1985_v21, 0.0  ;;  %v1921_v27 = vmul.f32 %v4209_v22, %v4209_v22  ;;  %v4220_v11 = vand.u32 2147483647, %v4209_v22 }
 0x1f2   : > { %v1888_v28 = vpop.f32.mrb[9].mxu0  ;;  %v1995_v30 = vsel %vm1990_vm8, %v1985_v21, 1.0  ;;  %vm1932_vm13 = vcmp.eq.f32.partialorder %v4200_v19, inf  ;;  %v1935_v53 = vand.u32 2147483648, %v4200_v19  ;;  %vm1934_vm15 = vcmp.eq.f32.partialorder %v4200_v19, 0.0 }
 0x1f3   : > { %2251 = vrot.lane.b32.xlu1 %v3056_v25, %s3567_s23  ;;  %2249 = vrot.lane.b32.xlu0 %v1888_v28, %s3567_s23  ;;  %3315 = vrcp.f32 %v1995_v30  ;;  %v4226_v31 = vadd.f32 %v1921_v27, %v1916_v23  ;;  %v1981_v32 = vmin.f32 %v4215_v26, %v4220_v11  ;;  %v1986_v33 = vmax.f32 %v4215_v26, %v4220_v11  ;;  %s3373_s23 = scalar_lea.vmem %s4369_s21, 640 }
 0x1f4   : > { %v4232_v34 = vpop.f32.mrb[14].mxu1  ;;  %vm2186_vm9 = vcmp.gt.f32.partialorder %v4220_v11, %v4215_v26  ;;  %p3374_p3 = scmp.ne.s32.totalorder %s4369_s21, %s3373_s23 }
 0x1f5   : > { %v1922_v36 = vmul.f32 %v4232_v34, %v4232_v34  ;;  %v4242_v37 = vand.u32 2147483647, %v4232_v34  ;;  %v3037_v38 = vpop.f32.mrb[15].mxu1  ;;  %v3059_v39 = vpop.f32.mrb[10].mxu0  ;;  %3317 = vrsqrt.f32 %v4226_v31  ;;  %vm1991_vm10 = vcmp.gt.f32.partialorder %v1986_v33, 0.0 }
 0x1f6   : > { %v1898_v40 = vpop.f32.mrb[11].mxu0  ;;  %v1996_v44 = vsel %vm1991_vm10, %v1986_v33, 1.0  ;;  %vm1939_vm2 = vcmp.eq.f32.partialorder %v4226_v31, inf  ;;  %v1942_v24 = vand.u32 2147483648, %v4226_v31  ;;  %vm1941_vm5 = vcmp.eq.f32.partialorder %v4226_v31, 0.0  ;;  %p3375_p4 = pnand %p3374_p3, %p3681_p8 }
 0x1f7   : > { %v4245_v41 = vadd.f32 %v1922_v36, %v1917_v29  ;;  %v1982_v42 = vmin.f32 %v4235_v35, %v4242_v37  ;;  %v1987_v43 = vmax.f32 %v4235_v35, %v4242_v37  ;;  %2265 = vrot.lane.b32.xlu0 %v3059_v39, %s3569_s17  ;;  %2263 = vrot.lane.b32.xlu1 %v1898_v40, %s3569_s17  ;;  %3319 = vrcp.f32 %v1996_v44 }
 0x1f8   : > { %vm2187_vm11 = vcmp.gt.f32.partialorder %v4242_v37, %v4235_v35  ;;  %v4253_v45 = vpop.f32.mrb[16].mxu1  ;;  %p3376_p5 = pneg %p3375_p4 }
 0x1f9   : > { %v3040_v48 = vpop.f32.mrb[17].mxu1  ;;  %3321 = vrsqrt.f32 %v4245_v41  ;;  %vm1992_vm12 = vcmp.gt.f32.partialorder %v1987_v43, 0.0  ;;  %v1923_v49 = vmul.f32 %v4253_v45, %v4253_v45  ;;  %v4265_v50 = vand.u32 2147483647, %v4253_v45 }
 0x1fa   : > { %v1997_v54 = vsel %vm1992_vm12, %v1987_v43, 1.0  ;;  %vm1946_vm10 = vcmp.eq.f32.partialorder %v4245_v41, inf  ;;  %vm1948_vm12 = vcmp.eq.f32.partialorder %v4245_v41, 0.0 }
 0x1fb   : > { %v3314_v51 = vpop.eup %3313  ;;  %2267 = vrot.lane.b32.xlu1 %v3563_v4, %s3569_s17  ;;  %3323 = vrcp.f32 %v1997_v54  ;;  %v4273_v57 = vadd.f32 %v1923_v49, %v1918_v46  ;;  %v1983_v58 = vmin.f32 %v4258_v47, %v4265_v50  ;;  %v1988_v61 = vmax.f32 %v4258_v47, %v4265_v50  ;;  %s4386_s17 = scalar_lea.hbm %s4757_s4, %s4734_s22  ;;  %s3377_s22 = sshll.u32 %s3570_s13, 4  ;;  %s3378_s22 = int_to_ptr.vmem [resolvable:$false] %s3377_s22 }
 0x1fc   : > { %v1931_v55 = vmul.f32 %v3314_v51, %v4200_v19  ;;  %v4277_v60 = vpop.f32.mrb[18].mxu1  ;;  %vm2188_vm14 = vcmp.gt.f32.partialorder %v4265_v50, %v4258_v47  ;;  %s3379_s18 = scalar_lea.vmem %s3378_s22, 1280  ;;  %p3380_p6 = scmp.lt.s32.totalorder %s4369_s21, %s3378_s22 }
 0x1fd   : > { %v1924_v4 = vmul.f32 %v4277_v60, %v4277_v60  ;;  %v4286_v63 = vand.u32 2147483647, %v4277_v60  ;;  %v3043_v0 = vpop.f32.mrb[19].mxu1  ;;  %v3316_v2 = vpop.eup %3315  ;;  %3325 = vrsqrt.f32 %v4273_v57  ;;  %vm1993_vm0 = vcmp.gt.f32.partialorder %v1988_v61, 0.0  ;;  %p3381_p7 = scmp.lt.s32.totalorder %s3379_s18, %s3373_s23 }
 0x1fe   : > { %v1933_v8 = vsel %vm1932_vm13, %v4200_v19, %v1931_v55  ;;  %v4299_v15 = vmul.f32 %v3316_v2, %v1980_v20  ;;  %v1998_v18 = vsel %vm1993_vm0, %v1988_v61, 1.0  ;;  %vm1953_vm13 = vcmp.eq.f32.partialorder %v4273_v57, inf }
 0x1ff   : > { %v1936_v13 = vsel %vm1934_vm15, %v1935_v53, %v1933_v8  ;;  %v3318_v17 = vpop.eup %3317  ;;  %v4306_v3 = vadd.f32 %v1924_v4, %v1919_v52  ;;  %v1984_v19 = vmin.f32 %v4289_v6, %v4286_v63  ;;  %v1989_v21 = vmax.f32 %v4289_v6, %v4286_v63  ;;  %p3382_p10 = por %p3381_p7, %p3380_p6 }
 0x200   : > { %1965 = vst [vmem:[%s4303_s12] sm:$0xff] %v1936_v13  ;;  %v2010_v20 = vmul.f32 %v4299_v15, %v4299_v15  ;;  %v1938_v23 = vmul.f32 %v3318_v17, %v4226_v31  ;;  %3327 = vrcp.f32 %v1998_v18  ;;  %vm2189_vm1 = vcmp.gt.f32.partialorder %v4286_v63, %v4289_v6 }
 0x201   : > { %3329 = vrsqrt.f32 %v4306_v3  ;;  %v3320_v25 = vpop.eup %3319  ;;  %vm1994_vm8 = vcmp.gt.f32.partialorder %v1989_v21, 0.0  ;;  %vm1955_vm15 = vcmp.eq.f32.partialorder %v4273_v57, 0.0  ;;  %vm1960_vm0 = vcmp.eq.f32.partialorder %v4306_v3, inf  ;;  %p3383_p11 = pnand %p3382_p10, %p3376_p5 }
 0x202   : > { %v4320_v27 = vadd.f32 1.0, %v2010_v20  ;;  %v1940_v28 = vsel %vm1939_vm2, %v4226_v31, %v1938_v23  ;;  %v4327_v33 = vmul.f32 %v3320_v25, %v1981_v32  ;;  %v1999_v36 = vsel %vm1994_vm8, %v1989_v21, 1.0 }
 0x203   : > { %v3322_v29 = vpop.eup %3321  ;;  %v1943_v30 = vsel %vm1941_vm5, %v1942_v24, %v1940_v28  ;;  %v1949_v31 = vand.u32 2147483648, %v4245_v41  ;;  %v1963_v2 = vand.u32 2147483648, %v4306_v3  ;;  %vm1962_vm2 = vcmp.eq.f32.partialorder %v4306_v3, 0.0 }
 0x204   : > { %3331 = vrsqrt.f32 %v4320_v27  ;;  %1966 = vst [vmem:[%s4303_s12 + $0x8] sm:$0xff] %v1943_v30  ;;  %v2011_v39 = vmul.f32 %v4327_v33, %v4327_v33  ;;  %v1945_v40 = vmul.f32 %v3322_v29, %v4245_v41  ;;  %vm2022_vm5 = vcmp.eq.f32.partialorder %v4320_v27, inf }
 0x205   : > { %v3324_v38 = vpop.eup %3323  ;;  %3333 = vrcp.f32 %v1999_v36  ;;  %v2025_v18 = vand.u32 2147483648, %v4320_v27  ;;  %vm2024_vm8 = vcmp.eq.f32.partialorder %v4320_v27, 0.0 }
 0x206   : > { %v4340_v32 = vmul.f32 %v3324_v38, %v1982_v42  ;;  %v4342_v44 = vadd.f32 1.0, %v2011_v39  ;;  %v1947_v46 = vsel %vm1946_vm10, %v4245_v41, %v1945_v40  ;;  %v1956_v42 = vand.u32 2147483648, %v4273_v57 }
 0x207   : > { %v3326_v43 = vpop.eup %3325  ;;  %v1950_v48 = vsel %vm1948_vm12, %v1949_v31, %v1947_v46 }
 0x208   : > { %v2012_v49 = vmul.f32 %v4340_v32, %v4340_v32  ;;  %v1952_v51 = vmul.f32 %v3326_v43, %v4273_v57  ;;  %3335 = vrsqrt.f32 %v4342_v44  ;;  %1967 = vst [vmem:[%s4303_s12 + $0x10] sm:$0xff] %v1950_v48 }
 0x20a   : > { %v3328_v52 = vpop.eup %3327  ;;  %v4357_v41 = vadd.f32 1.0, %v2012_v49  ;;  %v1954_v53 = vsel %vm1953_vm13, %v4273_v57, %v1952_v51 }
 0x20b   : > { %v3330_v54 = vpop.eup %3329  ;;  %v1957_v55 = vsel %vm1955_vm15, %v1956_v42, %v1954_v53  ;;  %v4364_v61 = vmul.f32 %v3328_v52, %v1983_v58 }
 0x20c   : > { %3337 = vrsqrt.f32 %v4357_v41  ;;  %1968 = vst [vmem:[%s4303_s12 + $0x18] sm:$0xff] %v1957_v55  ;;  %v1959_v0 = vmul.f32 %v3330_v54, %v4306_v3 }
 0x20d   : > { %v2013_v4 = vmul.f32 %v4364_v61, %v4364_v61 }
 0x20e   : > { %v3332_v57 = vpop.eup %3331  ;;  %v1961_v17 = vsel %vm1960_vm0, %v4306_v3, %v1959_v0 }
 0x20f   : > { %v3334_v8 = vpop.eup %3333  ;;  %v2021_v58 = vmul.f32 %v3332_v57, %v4320_v27  ;;  %v4377_v13 = vadd.f32 1.0, %v2013_v4  ;;  %v1964_v21 = vsel %vm1962_vm2, %v1963_v2, %v1961_v17 }
 0x210   : > { %v4393_v20 = vmul.f32 %v3334_v8, %v1984_v19  ;;  %1969 = vst [vmem:[%s4303_s12 + $0x20] sm:$0xff] %v1964_v21 }
 0x211   : > { %v2023_v23 = vsel %vm2022_vm5, %v4320_v27, %v2021_v58  ;;  %3339 = vrsqrt.f32 %v4377_v13 }
 0x212   : > { %v2026_v3 = vsel %vm2024_vm8, %v2025_v18, %v2023_v23  ;;  %v2014_v24 = vmul.f32 %v4393_v20, %v4393_v20 }
 0x213   : > { %3386 = shalt.err (!%p3383_p11)
}
 0x214   : > { %s3387_s12 = scalar_lea.hbm %s4386_s17, 640  ;;  %s3391_s13 = scalar_lea.hbm %s4757_s4, 2560 }
 0x215   : > { %p3388_p12 = scmp.ne.s32.totalorder %s4386_s17, %s3387_s12  ;;  %p3392_p1 = scmp.lt.u32.totalorder %s4386_s17, %s4757_s4 }
 0x216   : > { %p3393_p2 = scmp.lt.u32.totalorder %s3391_s13, %s3387_s12  ;;  %p3395_p4 = scmp.lt.u32.totalorder %s3387_s12, %s4386_s17 }
 0x217   : > { %p3389_p13 = pnand %p3388_p12, %p3681_p8 }
 0x218   : > { %p3394_p3 = por %p3393_p2, %p3392_p1 }
 0x219   : > { %p3390_p0 = pneg %p3389_p13 }
 0x21a   : > { %p3396_p5 = por %p3395_p4, %p3394_p3 }
 0x21c   : > { %p3397_p6 = pnand %p3396_p5, %p3390_p0 }
 0x21e   : > { %3400 = shalt.err (!%p3397_p6)
}
 0x21f   : > { %s4738_s18 = smov 128   ;;  %s4736_s23 = smov 256   ;;  %v3336_v19 = vpop.eup %3335  ;;  %v2055_v25 = vadd.f32 1.0, %v2026_v3  ;;  %v2019_v28 = vadd.f32 1.0, %v2014_v24  ;;  %vm2029_vm10 = vcmp.eq.f32.partialorder %v4342_v44, inf  ;;  %v2032_v29 = vand.u32 2147483648, %v4342_v44 }
 0x220   : > { %s4740_s2 = smov 8   ;;  %s4758_s0 = scalar_lea.sflag [#allocation4], %s3707_s10  ;;  %v2028_v27 = vmul.f32 %v3336_v19, %v4342_v44  ;;  %v3338_v30 = vpop.eup %3337  ;;  %vm2031_vm12 = vcmp.eq.f32.partialorder %v4342_v44, 0.0  ;;  %vm2036_vm13 = vcmp.eq.f32.partialorder %v4357_v41, inf  ;;  %v2039_v31 = vand.u32 2147483648, %v4357_v41 }
 0x221   : > { %3200 = dma.vmem_to_hbm [thread:$0]  (%p3681_p8), %s4369_s21, 640, %s4386_s17, %s4758_s0, %s4738_s18, %s4736_s23, %s4740_s2   ;;  %3341 = vrcp.f32 %v2055_v25  ;;  %v2035_v39 = vmul.f32 %v3338_v30, %v4357_v41  ;;  %vm2038_vm15 = vcmp.eq.f32.partialorder %v4357_v41, 0.0  ;;  %v3340_v48 = vpop.eup %3339  ;;  %vm2043_vm0 = vcmp.eq.f32.partialorder %v4377_v13, inf }
 0x222   : > { %v2030_v36 = vsel %vm2029_vm10, %v4342_v44, %v2028_v27  ;;  %3343 = vrsqrt.f32 %v2019_v28  ;;  %v2042_v51 = vmul.f32 %v3340_v48, %v4377_v13  ;;  %v2046_v44 = vand.u32 2147483648, %v4377_v13  ;;  %s4759_s1 = smul.u32 40, %s3707_s10  ;;  %s2741_s17 = sshll.u32 %s3547_s28, 2 }
 0x223   : > { %v2033_v38 = vsel %vm2031_vm12, %v2032_v29, %v2030_v36  ;;  %v2037_v43 = vsel %vm2036_vm13, %v4357_v41, %v2035_v39  ;;  %vm2045_vm2 = vcmp.eq.f32.partialorder %v4377_v13, 0.0  ;;  %vm2050_vm5 = vcmp.eq.f32.partialorder %v2019_v28, inf  ;;  %s2743_s14 = sshll.u32 %s3543_s27, 1  ;;  %s4542_s22 = scalar_lea.vmem [#allocation8], %s3711_s9 }
 0x224   : > { %v2056_v40 = vadd.f32 1.0, %v2033_v38  ;;  %v2040_v46 = vsel %vm2038_vm15, %v2039_v31, %v2037_v43  ;;  %v2044_v42 = vsel %vm2043_vm0, %v4377_v13, %v2042_v51  ;;  %v2053_v57 = vand.u32 2147483648, %v2019_v28  ;;  %s4492_s21 = scalar_lea.vmem [#allocation5], %s4759_s1  ;;  %s4522_s13 = sadd.s32 %s2743_s14, %s2741_s17 }
 0x225   : > { %v2057_v49 = vadd.f32 1.0, %v2040_v46  ;;  %v2047_v53 = vsel %vm2045_vm2, %v2046_v44, %v2044_v42  ;;  %vm2052_vm8 = vcmp.eq.f32.partialorder %v2019_v28, 0.0  ;;  %s2328_s12 = sshll.u32 %s4492_s21, 4  ;;  %s2363_s0 = sshll.u32 %s4542_s22, 4  ;;  %s4545_s12 = int_to_ptr.vmem [resolvable:$true] %s2328_s12  ;;  %s4560_s0 = int_to_ptr.vmem [resolvable:$true] %s2363_s0 }
 0x226   : > { %3345 = vrcp.f32 %v2056_v40  ;;  %v2058_v55 = vadd.f32 1.0, %v2047_v53  ;;  %s2745_s1 = sshll.u32 %s4522_s13, 7  ;;  %s4558_s14 = sadd.s32 %s3543_s27, %s2741_s17 }
 0x227   : > { %3347 = vrcp.f32 %v2057_v49  ;;  %s4760_s13 = sadd.s32 4294967295, %s3559_s8   ;;  %s4578_s17 = scalar_lea.hbm %s4730_s7, %s2745_s1 }
 0x228   : > { %3349 = vrcp.f32 %v2058_v55  ;;  %s4568_s23 = sand.u32 1, %s4760_s13   ;;  %s4583_s13 = scalar_lea.vmem [#allocation7], %s3711_s9 }
 0x229   : > { %s4761_s1 = sshll.u32 %s4354_s19, 7  ;;  %s2297_s9 = scalar_lea.sflag [#allocation9], %s3707_s10 }
 0x22a   : > { %s4594_s3 = scalar_lea.hbm %s4728_s5, %s4761_s1  ;;  %s3401_s4 = scalar_lea.vmem %s4560_s0, 256 }
 0x22b   : > { %v3342_v52 = vpop.eup %3341  ;;  %p3402_p7 = scmp.ne.s32.totalorder %s4560_s0, %s3401_s4  ;;  %s3574_s2 = smov [#allocation8]  }
 0x22c   : > { %v3344_v54 = vpop.eup %3343  ;;  %v4444_v41 = vmul.f32 %v3342_v52, %v4299_v15  ;;  %s3405_s18 = sshll.u32 %s3574_s2, 4  ;;  %s3406_s18 = int_to_ptr.vmem [resolvable:$false] %s3405_s18 }
 0x22d   : > { %v2049_v4 = vmul.f32 %v3344_v54, %v2019_v28  ;;  %p3403_p10 = pnand %p3402_p7, %p3681_p8  ;;  %p3408_p12 = scmp.lt.s32.totalorder %s4560_s0, %s3406_s18 }
 0x22e   : > { %v2070_v0 = vmul.f32 %v4444_v41, %v4444_v41 }
 0x22f   : > { %v2051_v2 = vsel %vm2050_vm5, %v2019_v28, %v2049_v4  ;;  %p3404_p11 = pneg %p3403_p10 }
 0x230   : > { %v3346_v8 = vpop.eup %3345  ;;  %v2075_v58 = vadd.f32 1.0, %v2070_v0  ;;  %v2054_v17 = vsel %vm2052_vm8, %v2053_v57, %v2051_v2 }
 0x231   : > { %v4449_v13 = vmul.f32 %v3346_v8, %v4327_v33  ;;  %v2059_v18 = vadd.f32 1.0, %v2054_v17  ;;  %v3348_v15 = vpop.eup %3347 }
 0x232   : > { %3351 = vrsqrt.f32 %v2075_v58  ;;  %v4454_v23 = vmul.f32 %v3348_v15, %v4340_v32  ;;  %v3350_v19 = vpop.eup %3349  ;;  %vm2082_vm10 = vcmp.eq.f32.partialorder %v2075_v58, inf  ;;  %v2085_v32 = vand.u32 2147483648, %v2075_v58 }
 0x233   : > { %v2071_v21 = vmul.f32 %v4449_v13, %v4449_v13  ;;  %3353 = vrcp.f32 %v2059_v18  ;;  %v4459_v33 = vmul.f32 %v3350_v19, %v4364_v61  ;;  %vm2084_vm12 = vcmp.eq.f32.partialorder %v2075_v58, 0.0 }
 0x234   : > { %v2072_v24 = vmul.f32 %v4454_v23, %v4454_v23 }
 0x235   : > { %v2076_v3 = vadd.f32 1.0, %v2071_v21  ;;  %v2073_v27 = vmul.f32 %v4459_v33, %v4459_v33 }
 0x236   : > { %v2077_v25 = vadd.f32 1.0, %v2072_v24 }
 0x237   : > { %3355 = vrsqrt.f32 %v2076_v3  ;;  %v2078_v36 = vadd.f32 1.0, %v2073_v27  ;;  %vm2089_vm13 = vcmp.eq.f32.partialorder %v2076_v3, inf  ;;  %v2092_v49 = vand.u32 2147483648, %v2076_v3 }
 0x238   : > { %3357 = vrsqrt.f32 %v2077_v25  ;;  %vm2091_vm15 = vcmp.eq.f32.partialorder %v2076_v3, 0.0  ;;  %vm2096_vm0 = vcmp.eq.f32.partialorder %v2077_v25, inf  ;;  %v2099_v53 = vand.u32 2147483648, %v2077_v25 }
 0x239   : > { %3359 = vrsqrt.f32 %v2078_v36  ;;  %vm2098_vm2 = vcmp.eq.f32.partialorder %v2077_v25, 0.0  ;;  %vm2103_vm5 = vcmp.eq.f32.partialorder %v2078_v36, inf  ;;  %v2106_v2 = vand.u32 2147483648, %v2078_v36 }
 0x23a   : > { %vm2105_vm8 = vcmp.eq.f32.partialorder %v2078_v36, 0.0 }
 0x23c   : > { %v3352_v28 = vpop.eup %3351 }
 0x23d   : > { %v3354_v29 = vpop.eup %3353  ;;  %v2081_v30 = vmul.f32 %v3352_v28, %v2075_v58 }
 0x23e   : > { %v4464_v38 = vmul.f32 %v3354_v29, %v4393_v20 }
 0x23f   : > { %v2083_v39 = vsel %vm2082_vm10, %v2075_v58, %v2081_v30 }
 0x240   : > { %v2086_v40 = vsel %vm2084_vm12, %v2085_v32, %v2083_v39  ;;  %v2074_v61 = vmul.f32 %v4464_v38, %v4464_v38 }
 0x241   : > { %v3356_v31 = vpop.eup %3355  ;;  %v2115_v43 = vadd.f32 1.0, %v2086_v40 }
 0x242   : > { %v2088_v46 = vmul.f32 %v3356_v31, %v2076_v3  ;;  %v2079_v48 = vadd.f32 1.0, %v2074_v61  ;;  %v3358_v51 = vpop.eup %3357 }
 0x243   : > { %3361 = vrcp.f32 %v2115_v43  ;;  %v2095_v42 = vmul.f32 %v3358_v51, %v2077_v25  ;;  %v3360_v4 = vpop.eup %3359 }
 0x244   : > { %v2090_v44 = vsel %vm2089_vm13, %v2076_v3, %v2088_v46  ;;  %3363 = vrsqrt.f32 %v2079_v48  ;;  %v2102_v57 = vmul.f32 %v3360_v4, %v2078_v36  ;;  %vm2110_vm10 = vcmp.eq.f32.partialorder %v2079_v48, inf }
 0x245   : > { %v2093_v20 = vsel %vm2091_vm15, %v2092_v49, %v2090_v44  ;;  %v2097_v54 = vsel %vm2096_vm0, %v2077_v25, %v2095_v42  ;;  %v2113_v19 = vand.u32 2147483648, %v2079_v48  ;;  %vm2112_vm12 = vcmp.eq.f32.partialorder %v2079_v48, 0.0 }
 0x246   : > { %v2116_v52 = vadd.f32 1.0, %v2093_v20  ;;  %v2100_v55 = vsel %vm2098_vm2, %v2099_v53, %v2097_v54  ;;  %v2104_v8 = vsel %vm2103_vm5, %v2078_v36, %v2102_v57  ;;  %vm2200_vm13 = vcmp.lt.f32.partialorder %v4173_v56, 0.0 }
 0x247   : > { %v2117_v0 = vadd.f32 1.0, %v2100_v55  ;;  %v2107_v17 = vsel %vm2105_vm8, %v2106_v2, %v2104_v8  ;;  %vm2201_vm15 = vcmp.lt.f32.partialorder %v4175_v59, 0.0  ;;  %vm2216_vm0 = vcmp.lt.f32.partialorder %v4209_v22, 0.0 }
 0x248   : > { %3365 = vrcp.f32 %v2116_v52  ;;  %v2118_v21 = vadd.f32 1.0, %v2107_v17  ;;  %vm2203_vm2 = vcmp.lt.f32.partialorder %v4179_v1, 0.0  ;;  %vm2217_vm5 = vcmp.lt.f32.partialorder %v4232_v34, 0.0 }
 0x249   : > { %3367 = vrcp.f32 %v2117_v0 }
 0x24a   : > { %3369 = vrcp.f32 %v2118_v21 }
 0x24d   : > { %v3362_v58 = vpop.eup %3361 }
 0x24e   : > { %v3364_v18 = vpop.eup %3363  ;;  %v2121_v15 = vmul.f32 %v3362_v58, %v4444_v41 }
 0x24f   : > { %v2109_v3 = vmul.f32 %v3364_v18, %v2079_v48 }
 0x250   : > { %v2130_v24 = vmul.f32 %v2121_v15, %v2121_v15 }
 0x251   : > { %v2111_v25 = vsel %vm2110_vm10, %v2079_v48, %v2109_v3 }
 0x252   : > { %v3366_v27 = vpop.eup %3365  ;;  %v2140_v28 = vmul.f32 0.11111111, %v2130_v24  ;;  %v2114_v29 = vsel %vm2112_vm12, %v2113_v19, %v2111_v25 }
 0x253   : > { %v2123_v30 = vmul.f32 %v3366_v27, %v4449_v13  ;;  %v2119_v32 = vadd.f32 1.0, %v2114_v29  ;;  %v3368_v39 = vpop.eup %3367 }
 0x254   : > { %v2145_v36 = vadd.f32 -0.14285715, %v2140_v28  ;;  %v2125_v41 = vmul.f32 %v3368_v39, %v4454_v23  ;;  %v3370_v51 = vpop.eup %3369  ;;  %v2135_v23 = vmul.f32 4.0, %v2121_v15 }
 0x255   : > { %v2131_v40 = vmul.f32 %v2123_v30, %v2123_v30  ;;  %3371 = vrcp.f32 %v2119_v32  ;;  %v2127_v42 = vmul.f32 %v3370_v51, %v4459_v33  ;;  %v2136_v32 = vmul.f32 4.0, %v2123_v30 }
 0x256   : > { %v2150_v61 = vmul.f32 %v2145_v36, %v2130_v24  ;;  %v2132_v46 = vmul.f32 %v2125_v41, %v2125_v41 }
 0x257   : > { %v2141_v31 = vmul.f32 0.11111111, %v2131_v40  ;;  %v2133_v54 = vmul.f32 %v2127_v42, %v2127_v42 }
 0x258   : > { %v2155_v43 = vadd.f32 0.2, %v2150_v61  ;;  %v2142_v48 = vmul.f32 0.11111111, %v2132_v46 }
 0x259   : > { %v2146_v49 = vadd.f32 -0.14285715, %v2141_v31  ;;  %v2143_v2 = vmul.f32 0.11111111, %v2133_v54  ;;  %v4480_v31 = vpop.permute.xlu0 %2253 }
 0x25a   : > { %v2160_v44 = vmul.f32 %v2155_v43, %v2130_v24  ;;  %v2147_v13 = vadd.f32 -0.14285715, %v2142_v48  ;;  %v4482_v43 = vpop.permute.xlu1 %2239 }
 0x25b   : > { %v2151_v20 = vmul.f32 %v2146_v49, %v2131_v40  ;;  %v2148_v21 = vadd.f32 -0.14285715, %v2143_v2 }
 0x25c   : > { %v2165_v52 = vadd.f32 -0.33333334, %v2160_v44  ;;  %v2152_v4 = vmul.f32 %v2147_v13, %v2132_v46  ;;  %v2137_v44 = vmul.f32 4.0, %v2125_v41 }
 0x25d   : > { %v2156_v53 = vadd.f32 0.2, %v2151_v20  ;;  %v2153_v27 = vmul.f32 %v2148_v21, %v2133_v54 }
 0x25e   : > { %v2170_v55 = vmul.f32 %v2165_v52, %v2130_v24  ;;  %v2157_v58 = vadd.f32 0.2, %v2152_v4 }
 0x25f   : > { %v3372_v0 = vpop.eup %3371  ;;  %v2161_v57 = vmul.f32 %v2156_v53, %v2131_v40  ;;  %v2158_v15 = vadd.f32 0.2, %v2153_v27 }
 0x260   : > { %v2175_v8 = vadd.f32 1.0, %v2170_v55  ;;  %v4473_v17 = vmul.f32 %v3372_v0, %v4464_v38  ;;  %v2162_v19 = vmul.f32 %v2157_v58, %v2132_v46 }
 0x261   : > { %v2166_v18 = vadd.f32 -0.33333334, %v2161_v57  ;;  %v2238_v57 = vpop.permute.xlu0 %2237  ;;  %v2236_v2 = vpop.permute.xlu1 %2235 }
 0x262   : > { %v2180_v3 = vmul.f32 %v2175_v8, %v2135_v23  ;;  %v2134_v33 = vmul.f32 %v4473_v17, %v4473_v17  ;;  %v2167_v28 = vadd.f32 -0.33333334, %v2162_v19  ;;  %v2138_v23 = vmul.f32 4.0, %v2127_v42 }
 0x263   : > { %v2171_v25 = vmul.f32 %v2166_v18, %v2131_v40  ;;  %v2163_v40 = vmul.f32 %v2158_v15, %v2133_v54  ;;  %v2243_v27 = vsel %vm432_vm3, %v4482_v43, %v2236_v2  ;;  %v2242_v47 = vsel %vm432_vm3, %v2238_v57, %v4482_v43 }
 0x264   : > { %v2190_v24 = vsub.f32 1.5707964, %v2180_v3  ;;  %v2144_v29 = vmul.f32 0.11111111, %v2134_v33  ;;  %v2172_v39 = vmul.f32 %v2167_v28, %v2132_v46  ;;  %v2241_v1 = vsel %vm432_vm3, %v2236_v2, %v4482_v43 }
 0x265   : > { %v2176_v36 = vadd.f32 1.0, %v2171_v25  ;;  %v2168_v13 = vadd.f32 -0.33333334, %v2163_v40  ;;  %v2252_v21 = vpop.permute.xlu1 %2251  ;;  %v2250_v22 = vpop.permute.xlu0 %2249  ;;  %v2244_v25 = vsel %vm432_vm3, %v4482_v43, %v2238_v57  ;;  %vm2219_vm3 = vcmp.lt.f32.partialorder %v4277_v60, 0.0 }
 0x266   : > { %v2195_v38 = vsel %vm2185_vm7, %v2190_v24, %v2180_v3  ;;  %v2149_v61 = vadd.f32 -0.14285715, %v2144_v29  ;;  %v2177_v48 = vadd.f32 1.0, %v2172_v39  ;;  %vm2215_vm7 = vcmp.lt.f32.partialorder %v4187_v12, 0.0 }
 0x267   : > { %v2205_v49 = vsub.f32 3.1415927, %v2195_v38  ;;  %v2181_v51 = vmul.f32 %v2176_v36, %v2136_v32  ;;  %v2173_v55 = vmul.f32 %v2168_v13, %v2133_v54  ;;  %v2256_v34 = vsel %vm1141_vm4, %v2252_v21, %v4480_v31 }
 0x268   : > { %v2154_v30 = vmul.f32 %v2149_v61, %v2134_v33  ;;  %v2182_v16 = vmul.f32 %v2177_v48, %v2137_v44  ;;  %v2258_v50 = vsel %vm1141_vm4, %v4480_v31, %v2252_v21  ;;  %v2255_v32 = vsel %vm1141_vm4, %v2250_v22, %v4480_v31 }
 0x269   : > { %v2210_v20 = vsel %vm2200_vm13, %v2205_v49, %v2195_v38  ;;  %v2191_v52 = vsub.f32 1.5707964, %v2181_v51  ;;  %v2178_v12 = vadd.f32 1.0, %v2173_v55  ;;  %v2264_v29 = vpop.permute.xlu1 %2263  ;;  %v2257_v36 = vsel %vm1141_vm4, %v4480_v31, %v2250_v22  ;;  %v2266_v44 = vpop.permute.xlu0 %2265 }
 0x26a   : > { %v2220_v14 = vsub.f32 0.0, %v2210_v20  ;;  %v2159_v46 = vadd.f32 0.2, %v2154_v30  ;;  %v2192_v56 = vsub.f32 1.5707964, %v2182_v16  ;;  %v2247_v39 = vadd.f32 %v4183_v9, %v2244_v25 }
 0x26b   : > { %v2196_v53 = vsel %vm2186_vm9, %v2191_v52, %v2181_v51  ;;  %v2183_v18 = vmul.f32 %v2178_v12, %v2138_v23  ;;  %vm2202_vm9 = vcmp.lt.f32.partialorder %v4177_v62, 0.0  ;;  %v2139_v62 = vmul.f32 4.0, %v4473_v17 }
 0x26c   : > { %v2225_v4 = vsel %vm2215_vm7, %v2220_v14, %v2210_v20  ;;  %v2206_v0 = vsub.f32 3.1415927, %v2196_v53  ;;  %v2164_v41 = vmul.f32 %v2159_v46, %v2134_v33  ;;  %v2197_v11 = vsel %vm2187_vm11, %v2192_v56, %v2182_v16 }
 0x26d   : > { %2230 = vst [vmem:[%s4492_s21] sm:$0xff] %v2225_v4  ;;  %v2207_v58 = vsub.f32 3.1415927, %v2197_v11  ;;  %v2193_v19 = vsub.f32 1.5707964, %v2183_v18  ;;  %vm2204_vm11 = vcmp.lt.f32.partialorder %v4181_v7, 0.0  ;;  %v2245_v61 = vadd.f32 %v2243_v27, %v4185_v10  ;;  %v2268_v48 = vpop.permute.xlu1 %2267 }
 0x26e   : > { %v2211_v26 = vsel %vm2201_vm15, %v2206_v0, %v2196_v53  ;;  %v2169_v54 = vadd.f32 -0.33333334, %v2164_v41  ;;  %v2262_v9 = vadd.f32 %v2256_v34, %v2242_v47  ;;  %v2261_v31 = vadd.f32 %v2258_v50, %v2247_v39 }
 0x26f   : > { %v2221_v8 = vsub.f32 0.0, %v2211_v26  ;;  %v2212_v3 = vsel %vm2202_vm9, %v2207_v58, %v2197_v11  ;;  %v2259_v51 = vadd.f32 %v2257_v36, %v2245_v61  ;;  %v2260_v40 = vadd.f32 %v2255_v32, %v2241_v1 }
 0x270   : > { %v2174_v59 = vmul.f32 %v2169_v54, %v2134_v33  ;;  %v2222_v35 = vsub.f32 0.0, %v2212_v3  ;;  %v2198_v33 = vsel %vm2188_vm14, %v2193_v19, %v2183_v18  ;;  %vm2218_vm14 = vcmp.lt.f32.partialorder %v4253_v45, 0.0 }
 0x271   : > { %v2226_v42 = vsel %vm2216_vm0, %v2221_v8, %v2211_v26  ;;  %v2208_v17 = vsub.f32 3.1415927, %v2198_v33  ;;  %v2269_v43 = vsel %vm1528_vm6, %v2264_v29, %v2268_v48  ;;  %v2270_v63 = vsel %vm1528_vm6, %v2266_v44, %v2268_v48 }
 0x272   : > { %2231 = vst [vmem:[%s4492_s21 + $0x8] sm:$0xff] %v2226_v42  ;;  %v2179_v37 = vadd.f32 1.0, %v2174_v59  ;;  %v2227_v24 = vsel %vm2217_vm5, %v2222_v35, %v2212_v3  ;;  %v2271_v6 = vsel %vm1528_vm6, %v2268_v48, %v2264_v29  ;;  %v2272_v20 = vsel %vm1528_vm6, %v2268_v48, %v2266_v44 }
 0x273   : > { %2232 = vst [vmem:[%s4492_s21 + $0x10] sm:$0xff] %v2227_v24  ;;  %v2213_v15 = vsel %vm2203_vm2, %v2208_v17, %v2198_v33  ;;  %v2274_v52 = vadd.f32 %v2269_v43, %v2260_v40  ;;  %v2276_v13 = vadd.f32 %v2270_v63, %v2262_v9  ;;  %v2273_v5 = vadd.f32 %v2271_v6, %v2259_v51 }
 0x274   : > { %v2184_v28 = vmul.f32 %v2179_v37, %v2139_v62  ;;  %v2223_v49 = vsub.f32 0.0, %v2213_v15  ;;  %v2275_v16 = vadd.f32 %v2272_v20, %v2261_v31 }
 0x275   : > { %2279 = vst [vmem:[%s4542_s22] sm:$0xff] %v2274_v52  ;;  %2280 = vst [vmem:[%s4542_s22 + $0x8] sm:$0xff] %v2276_v13  ;;  %s3407_s22 = scalar_lea.vmem %s3406_s18, 512 }
 0x276   : > { %v2194_v38 = vsub.f32 1.5707964, %v2184_v28  ;;  %v2228_v45 = vsel %vm2218_vm14, %v2223_v49, %v2213_v15  ;;  %2277 = vst [vmem:[%s4583_s13] sm:$0xff] %v2273_v5  ;;  %2278 = vst [vmem:[%s4583_s13 + $0x8] sm:$0xff] %v2275_v16  ;;  %p3409_p13 = scmp.lt.s32.totalorder %s3407_s22, %s3401_s4 }
 0x277   : > { %2233 = vst [vmem:[%s4492_s21 + $0x18] sm:$0xff] %v2228_v45 }
 0x278   : > { %v2199_v10 = vsel %vm2189_vm1, %v2194_v38, %v2184_v28  ;;  %p3410_p0 = por %p3409_p13, %p3408_p12 }
 0x279   : > { %v2209_v30 = vsub.f32 3.1415927, %v2199_v10 }
 0x27a   : > { %p3411_p1 = pnand %p3410_p0, %p3404_p11 }
 0x27b   : > { %v2214_v14 = vsel %vm2204_vm11, %v2209_v30, %v2199_v10 }
 0x27c   : > { %v2224_v46 = vsub.f32 0.0, %v2214_v14 }
 0x27d   : > { %3414 = shalt.err (!%p3411_p1)
}
 0x27e   : > { %s3415_s19 = scalar_lea.hbm %s4578_s17, 256  ;;  %s3419_s2 = scalar_lea.hbm %s4730_s7, 1024 }
 0x27f   : > { %p3416_p2 = scmp.ne.s32.totalorder %s4578_s17, %s3415_s19  ;;  %p3420_p5 = scmp.lt.u32.totalorder %s4578_s17, %s4730_s7 }
 0x280   : > { %p3421_p6 = scmp.lt.u32.totalorder %s3419_s2, %s3415_s19  ;;  %p3423_p10 = scmp.lt.u32.totalorder %s3415_s19, %s4578_s17 }
 0x281   : > { %p3417_p3 = pnand %p3416_p2, %p3681_p8 }
 0x282   : > { %p3422_p7 = por %p3421_p6, %p3420_p5 }
 0x283   : > { %p3418_p4 = pneg %p3417_p3 }
 0x284   : > { %p3424_p11 = por %p3423_p10, %p3422_p7 }
 0x286   : > { %p3425_p12 = pnand %p3424_p11, %p3418_p4 }
 0x288   : > { %3428 = shalt.err (!%p3425_p12)
}
 0x289   : > { %s4762_s4 = smov 8   ;;  %s4763_s22 = smov 128   ;;  %v2229_v7 = vsel %vm2219_vm3, %v2224_v46, %v2214_v14 }
 0x28a   : > { %3203 = dma.vmem_to_hbm [thread:$0]  (%p3681_p8), %s4560_s0, 256, %s4578_s17, %s2297_s9, %s4763_s22, %s4763_s22, %s4762_s4  }
 0x28b   : > { %s4764_s19 = sshll.u32 %s4583_s13, 4  ;;  %s4765_s1 = sshll.u32 %s4558_s14, 7  ;;  %2234 = vst [vmem:[%s4492_s21 + $0x20] sm:$0xff] %v2229_v7  ;;  %s4630_s19 = int_to_ptr.vmem [resolvable:$true] %s4764_s19 }
 0x28c   : > { %s4637_s2 = scalar_lea.hbm %s4729_s6, %s4765_s1  ;;  %s2287_s28 = scalar_lea.sflag [#allocation6], %s4568_s23 }
 0x28d   : > { %s3429_s18 = scalar_lea.vmem %s4545_s12, 640  ;;  %s3575_s0 = smov [#allocation5]  }
 0x28e   : > { %p3430_p13 = scmp.ne.s32.totalorder %s4545_s12, %s3429_s18  ;;  %s3433_s17 = sshll.u32 %s3575_s0, 4  ;;  %s3434_s17 = int_to_ptr.vmem [resolvable:$false] %s3433_s17 }
 0x28f   : > { %s3435_s9 = scalar_lea.vmem %s3434_s17, 1280  ;;  %p3436_p2 = scmp.lt.s32.totalorder %s4545_s12, %s3434_s17 }
 0x290   : > { %p3431_p0 = pnand %p3430_p13, %p3681_p8  ;;  %p3437_p3 = scmp.lt.s32.totalorder %s3435_s9, %s3429_s18 }
 0x292   : > { %p3432_p1 = pneg %p3431_p0  ;;  %p3438_p4 = por %p3437_p3, %p3436_p2 }
 0x294   : > { %p3439_p5 = pnand %p3438_p4, %p3432_p1 }
 0x296   : > { %3442 = shalt.err (!%p3439_p5)
}
 0x297   : > { %s3443_s21 = scalar_lea.hbm %s4594_s3, 640  ;;  %s3447_s1 = scalar_lea.hbm %s4728_s5, 2560 }
 0x298   : > { %p3444_p6 = scmp.ne.s32.totalorder %s4594_s3, %s3443_s21  ;;  %p3448_p11 = scmp.lt.u32.totalorder %s4594_s3, %s4728_s5 }
 0x299   : > { %p3449_p12 = scmp.lt.u32.totalorder %s3447_s1, %s3443_s21  ;;  %p3451_p0 = scmp.lt.u32.totalorder %s3443_s21, %s4594_s3 }
 0x29a   : > { %p3445_p7 = pnand %p3444_p6, %p3681_p8 }
 0x29b   : > { %p3450_p13 = por %p3449_p12, %p3448_p11 }
 0x29c   : > { %p3446_p10 = pneg %p3445_p7 }
 0x29d   : > { %p3452_p1 = por %p3451_p0, %p3450_p13 }
 0x29f   : > { %p3453_p2 = pnand %p3452_p1, %p3446_p10 }
 0x2a1   : > { %3456 = shalt.err (!%p3453_p2)
}
 0x2a2   : > { %s4766_s18 = smov 256   ;;  %s3457_s0 = scalar_lea.vmem %s4630_s19, 256 }
 0x2a3   : > { %3201 = dma.vmem_to_hbm [thread:$0]  (%p3681_p8), %s4545_s12, 640, %s4594_s3, %s2287_s28, %s4763_s22, %s4766_s18, %s4762_s4  }
 0x2a4   : > { %p3458_p3 = scmp.ne.s32.totalorder %s4630_s19, %s3457_s0  ;;  %s3576_s17 = smov [#allocation7]  }
 0x2a5   : > { %s3461_s9 = sshll.u32 %s3576_s17, 4  ;;  %s3462_s9 = int_to_ptr.vmem [resolvable:$false] %s3461_s9 }
 0x2a6   : > { %p3459_p4 = pnand %p3458_p3, %p3681_p8  ;;  %s3463_s21 = scalar_lea.vmem %s3462_s9, 512 }
 0x2a7   : > { %p3464_p6 = scmp.lt.s32.totalorder %s4630_s19, %s3462_s9  ;;  %p3465_p7 = scmp.lt.s32.totalorder %s3463_s21, %s3457_s0 }
 0x2a8   : > { %p3460_p5 = pneg %p3459_p4 }
 0x2a9   : > { %p3466_p10 = por %p3465_p7, %p3464_p6 }
 0x2ab   : > { %p3467_p11 = pnand %p3466_p10, %p3460_p5 }
 0x2ad   : > { %3470 = shalt.err (!%p3467_p11)
}
 0x2ae   : > { %s3471_s3 = scalar_lea.hbm %s4637_s2, 256  ;;  %s3475_s13 = scalar_lea.hbm %s4729_s6, 1024 }
 0x2af   : > { %p3472_p12 = scmp.ne.s32.totalorder %s4637_s2, %s3471_s3  ;;  %p3476_p1 = scmp.lt.u32.totalorder %s4637_s2, %s4729_s6 }
 0x2b0   : > { %p3477_p2 = scmp.lt.u32.totalorder %s3475_s13, %s3471_s3  ;;  %p3479_p4 = scmp.lt.u32.totalorder %s3471_s3, %s4637_s2 }
 0x2b1   : > { %p3473_p13 = pnand %p3472_p12, %p3681_p8 }
 0x2b2   : > { %p3478_p3 = por %p3477_p2, %p3476_p1 }
 0x2b3   : > { %p3474_p0 = pneg %p3473_p13 }
 0x2b4   : > { %p3480_p5 = por %p3479_p4, %p3478_p3 }
 0x2b6   : > { %p3481_p6 = pnand %p3480_p5, %p3474_p0 }
 0x2b8   : > { %3484 = shalt.err (!%p3481_p6)
}
 0x2b9   : > { %3202 = dma.vmem_to_hbm [thread:$0]  (%p3681_p8), %s4630_s19, 256, %s4637_s2, %s2287_s28, %s4763_s22, %s4766_s18, %s4762_s4  }
 0x2ba PF: > { %p3221_p7 = scmp.ge.s32.totalorder %s3559_s8, 2  ;;  %s2378_s10 = sand.u32 1, %s3531_s24  }
 0x2bb   : > { %s2379_s0 = scalar_lea.sflag [#allocation4], %s2378_s10 }
 0x2bc   : > { %p3209_p10 = pnand %p3221_p7, %p3685_p9 }
 0x2be   : > { %3518 = dma.done.wait (!%p3209_p10), %s2379_s0, 640  }
 0x2bf   : > { %3520 = vsyncadd (!%p3209_p10), %s2379_s0, 4294966656  ;;  %s4767_s15 = sadd.s32 4294967294, %s3559_s8  }
 0x2c0   : > { %s2387_s17 = sand.u32 1, %s4767_s15  }
 0x2c1   : > { %s2388_s9 = scalar_lea.sflag [#allocation6], %s2387_s17 }
 0x2c2   : > { %3522 = dma.done.wait (!%p3209_p10), %s2388_s9, 896  }
 0x2c3   : > { %3524 = vsyncadd (!%p3209_p10), %s2388_s9, 4294966400  ;;  %s2406_s23 = scalar_lea.sflag [#allocation9], %s2378_s10 }
 0x2c4   : > { %3526 = dma.done.wait (!%p3209_p10), %s2406_s23, 256  }
 0x2c5   : > { %3528 = vsyncadd (!%p3209_p10), %s2406_s23, 4294967040  ;;  %s27_s8 = sadd.s32 1, %s3559_s8   ;;  %s4768_s16 = sld [smem:[#allocation13_spill]] }
 0x2c6   : > { %p24_p8 = scmp.ge.s32.totalorder %s27_s8, 6   ;;  %s4769_s24 = smov %s3535_s25 }
 0x2c7   : > { %s4770_s25 = smov %s3539_s26  ;;  %s4771_s26 = smov %s3693_s20 }
 0x2c8   : > { %s4772_s27 = smov %s3551_s29  ;;  %s4773_s28 = smov %s3555_s30 }
 0x2c9   : > { %s4774_s29 = smov %s4777_s11  ;;  %26 = sbr.rel (!%p24_p8) target bundleno = 15 (0xf), region = 176 }
 0x2cb   : > { %s4775_s30 = smov %s4768_s16 }
 0x2d0   :  { %2411 = vsyncpa [#allocation4], 1 }
 0x2d1   :  { %2413 = vsyncpa [#allocation4 + $0x1], 1 }
 0x2d2   :  { %2414 = vsyncpa [#allocation6], 1 }
 0x2d3   :  { %2416 = vsyncpa [#allocation6 + $0x1], 1 }
 0x2d4   :  { %2417 = vsyncpa [#allocation9], 1 }
 0x2d5   :  { %2419 = vsyncpa [#allocation9 + $0x1], 1 }

</bundles_post_ra>
